<compile_context>
chip_gen: v6e
topology: v6e:2x2x1
jax: 0.10.0
libtpu: 0.0.40
codegen_flags: <defaults>
</compile_context>

<pallas_src>
import math
import numpy as np

import jax
import jax.numpy as jnp
from jax.experimental import pallas as pl
from jax.experimental.pallas import tpu as pltpu

# ----------------------------- model hyper-params (small, synthetic) ----------
EMBED_DIM = 32          # config['embed_dim'] == config['multimodal_hidden_dim'] == BERT hidden
NHEAD = 2
FF_DIM = 64
NUM_CLASSES = 3         # config['num_classes']
VOCAB = 100
MAX_POS = 64
N_VIS_LAYERS = 2
N_AUD_LAYERS = 2
N_MM_LAYERS = 1
N_BERT_LAYERS = 2
VISION_WIDTH = 20
AUDIO_WIDTH = 12

_STACK_KEYS = ("wqkv", "bqkv", "wo", "bo", "g1", "b1",
               "w1", "bf1", "w2", "bf2", "g2", "b2")


# ----------------------------- small helpers ----------------------------------
def _ln_f32(x, g, b, eps):
    """LayerNorm over the last dim; rsqrt runs on the EUP."""
    mu = jnp.mean(x, axis=-1, keepdims=True)
    xc = x - mu
    var = jnp.mean(xc * xc, axis=-1, keepdims=True)
    return xc * jax.lax.rsqrt(var + eps) * g + b


def _encoder_layer(x, w, i, bias, activation, eps, nhead):
    """One post-norm transformer encoder layer on a flat (N, E) token block.

    w is a tuple of refs, each with a leading static layer axis (indexed by i).
    Fused QKV projection + fused output projection; all matmuls accumulate in f32.
    """
    (wqkv, bqkv, wo, bo, g1, b1, w1, bf1, w2, bf2, g2, b2) = w
    N, E = x.shape
    Dh = E // nhead
    scale = 1.0 / math.sqrt(Dh)

    qkv = jnp.dot(x, wqkv[i], preferred_element_type=jnp.float32) + bqkv[i]   # (N, 3E)
    heads = []
    for h in range(nhead):                                   # static unroll (nhead == 2)
        q = qkv[:, h * Dh:(h + 1) * Dh]
        k = qkv[:, E + h * Dh:E + (h + 1) * Dh]
        v = qkv[:, 2 * E + h * Dh:2 * E + (h + 1) * Dh]
        # q @ k^T contracting the head dims directly (no explicit transpose of k).
        s = jax.lax.dot_general(q, k, (((1,), (1,)), ((), ())),
                                preferred_element_type=jnp.float32)
        s = s * scale + bias
        s = s - jnp.max(s, axis=-1, keepdims=True)
        p = jnp.exp(s)
        p = p * pl.reciprocal(jnp.sum(p, axis=-1, keepdims=True), approx=True)
        heads.append(jnp.dot(p, v, preferred_element_type=jnp.float32))       # (N, Dh)
    attn = jnp.dot(jnp.concatenate(heads, axis=-1), wo[i],
                   preferred_element_type=jnp.float32) + bo[i]                # (N, E)

    x = _ln_f32(x + attn, g1[i], b1[i], eps)

    hdn = jnp.dot(x, w1[i], preferred_element_type=jnp.float32) + bf1[i]
    if activation == "relu":
        hdn = jnp.maximum(hdn, 0.0)
    else:
        # TODO(synk): HF BERT uses the exact erf GELU; tanh approximation used here.
        hdn = jax.nn.gelu(hdn, approximate=True)
    ff = jnp.dot(hdn, w2[i], preferred_element_type=jnp.float32) + bf2[i]
    return _ln_f32(x + ff, g2[i], b2[i], eps)


def _stream_spec(a):
    """BlockSpec selecting stream `s` of an array with a leading stream axis."""
    zeros = (0,) * (a.ndim - 1)
    return pl.BlockSpec((None,) + tuple(a.shape[1:]),
                        lambda s, _z=zeros: (s,) + _z)


def _shared_spec(a):
    """Full-array block, same for every grid step."""
    zeros = (0,) * a.ndim
    return pl.BlockSpec(tuple(a.shape), lambda s, _z=zeros: _z)


def _stack_cost(N, E, FF, H, L):
    Dh = E // H
    per_layer = (2 * N * E * 3 * E + H * 4 * N * N * Dh + 2 * N * E * E
                 + 4 * N * E * FF + 24 * N * E)
    return L * per_layer, L * (H * N * N + 4 * N)


# ----------------------------- kernel 1: visual + audio stacks ----------------
def visual_audio_encoder(x_va, bid_r, bid_c, proj_w, proj_b, va_stack):
    """Both unimodal stacks in one pallas_call: grid=(2,) over streams, "parallel"."""
    G, N, Win = x_va.shape
    E = proj_w.shape[-1]
    L = va_stack["wqkv"].shape[1]
    FF = va_stack["w1"].shape[-1]
    weights = [va_stack[k] for k in _STACK_KEYS]             # each (G, L, ...)

    def kernel(*refs):
        x_ref, br_ref, bc_ref, pw_ref, pb_ref = refs[:5]
        w = refs[5:17]
        o_ref = refs[17]

        # same-batch block mask, generated in-kernel from tiny batch-id vectors
        bias = jnp.where(br_ref[...] == bc_ref[...], 0.0, -1e9)
        # fused input projection (layer-0 preamble)
        x = (jnp.dot(x_ref[...], pw_ref[...], preferred_element_type=jnp.float32)
             + pb_ref[...])
        for i in range(L):                                   # static unroll, no act_ref
            x = _encoder_layer(x, w, i, bias, "relu", 1e-5, NHEAD)
        o_ref[...] = x.astype(o_ref.dtype)

    inputs = [x_va, bid_r, bid_c, proj_w, proj_b] + weights
    in_specs = ([_stream_spec(x_va), _shared_spec(bid_r), _shared_spec(bid_c),
                 _stream_spec(proj_w), _stream_spec(proj_b)]
                + [_stream_spec(a) for a in weights])
    out_spec = pl.BlockSpec((None, N, E), lambda s: (s, 0, 0))

    flops, transc = _stack_cost(N, E, FF, NHEAD, L)
    flops = G * (flops + 2 * N * Win * E)
    transc = G * transc
    bytes_accessed = sum(int(np.prod(a.shape)) * 4 for a in inputs) + G * N * E * 4

    return pl.pallas_call(
        kernel,
        out_shape=jax.ShapeDtypeStruct((G, N, E), jnp.float32),
        grid=(G,),
        in_specs=in_specs,
        out_specs=out_spec,
        compiler_params=pltpu.CompilerParams(dimension_semantics=("parallel",)),
        cost_estimate=pl.CostEstimate(flops=int(flops), transcendentals=int(transc),
                                      bytes_accessed=int(bytes_accessed)),
    )(*inputs)


# ------------------- kernel 2: BERT stack + multimodal encoder + head ---------
def text_multimodal_head(emb_sm, visaud2d, t_bid_r, t_bid_c, t_keybias, t_mask,
                         u_bid_r, u_bid_c, sel, emb_g, emb_b,
                         bert_stack, mm_stack, fh1_w, fh1_b, fh2_w, fh2_b,
                         *, num_classes):
    Nt, E = emb_sm.shape
    Nva = visaud2d.shape[0]
    Nu = Nva + Nt
    B = sel.shape[0]
    Lt = bert_stack["wqkv"].shape[0]
    Lm = mm_stack["wqkv"].shape[0]
    FF = bert_stack["w1"].shape[-1]
    tw_arrs = [bert_stack[k] for k in _STACK_KEYS]
    mw_arrs = [mm_stack[k] for k in _STACK_KEYS]

    def kernel(*refs):
        (emb_ref, va_ref, tbr, tbc, tkb, tmsk, ubr, ubc, sel_ref,
         eg_ref, eb_ref) = refs[:11]
        tw = refs[11:23]
        mw = refs[23:35]
        f1w, f1b, f2w, f2b = refs[35:39]
        o_ref = refs[39]
        u_scr = refs[40]

        # ---- text stream: embedding LN -> BERT layers -> F.normalize * mask ----
        t_bias = jnp.where(tbr[...] == tbc[...], 0.0, -1e9) + tkb[...]
        x = _ln_f32(emb_ref[...], eg_ref[...], eb_ref[...], 1e-12)
        for i in range(Lt):
            x = _encoder_layer(x, tw, i, t_bias, "gelu", 1e-12, NHEAD)
        ss = jnp.sum(x * x, axis=-1, keepdims=True)
        x = x * jax.lax.rsqrt(jnp.maximum(ss, 1e-24)) * tmsk[...]   # == x/max(||x||,1e-12)

        # ---- build union rows [visual; audio; text] in a VMEM scratch (no XLA concat) ----
        u_scr[0:Nva, :] = va_ref[...]
        u_scr[Nva:Nu, :] = x
        u = u_scr[...]

        # ---- multimodal encoder + per-batch token mean + fusion head ----
        u_bias = jnp.where(ubr[...] == ubc[...], 0.0, -1e9)
        for i in range(Lm):
            u = _encoder_layer(u, mw, i, u_bias, "relu", 1e-5, NHEAD)
        m = jnp.dot(sel_ref[...], u, preferred_element_type=jnp.float32)      # (B, E)
        h1 = jnp.maximum(jnp.dot(m, f1w[...], preferred_element_type=jnp.float32)
                         + f1b[...], 0.0)
        o_ref[...] = (jnp.dot(h1, f2w[...], preferred_element_type=jnp.float32)
                      + f2b[...]).astype(o_ref.dtype)

    inputs = ([emb_sm, visaud2d, t_bid_r, t_bid_c, t_keybias, t_mask,
               u_bid_r, u_bid_c, sel, emb_g, emb_b]
              + tw_arrs + mw_arrs + [fh1_w, fh1_b, fh2_w, fh2_b])
    in_specs = [_shared_spec(a) for a in inputs]

    f_t, tr_t = _stack_cost(Nt, E, FF, NHEAD, Lt)
    f_m, tr_m = _stack_cost(Nu, E, FF, NHEAD, Lm)
    flops = f_t + f_m + 2 * B * Nu * E + 2 * B * E * E + 2 * B * E * num_classes
    transc = tr_t + tr_m + Nt
    bytes_accessed = (sum(int(np.prod(a.shape)) * 4 for a in inputs)
                      + B * num_classes * 4)

    return pl.pallas_call(
        kernel,
        out_shape=jax.ShapeDtypeStruct((B, num_classes), jnp.float32),
        grid=(1,),
        in_specs=in_specs,
        out_specs=pl.BlockSpec((B, num_classes), lambda s: (0, 0)),
        scratch_shapes=[pltpu.VMEM((Nu, E), jnp.float32)],
        compiler_params=pltpu.CompilerParams(dimension_semantics=("arbitrary",)),
        cost_estimate=pl.CostEstimate(flops=int(flops), transcendentals=int(transc),
                                      bytes_accessed=int(bytes_accessed)),
    )(*inputs)


# ----------------------------- forward ----------------------------------------
def acformer_forward(params, visual, acoustic, bert_sent, bert_sent_type, bert_sent_mask):
    """Inference forward pass (train=False branch) -> prediction (B, NUM_CLASSES)."""
    Sv, B, Vw = visual.shape
    Sa, _, Aw = acoustic.shape
    # TODO(synk): the fused visual/audio kernel assumes equal sequence lengths.
    assert Sv == Sa, "fused visual/audio stream kernel assumes Sv == Sa"
    E = EMBED_DIM
    N = Sv * B
    Wmax = params["va_proj_w"].shape[1]

    # ---- call 1: visual + audio stacks in one kernel (stream grid, parallel) ----
    vis2d = visual.reshape(N, Vw)
    aud2d = acoustic.reshape(N, Aw)
    if Vw < Wmax:
        vis2d = jnp.pad(vis2d, ((0, 0), (0, Wmax - Vw)))
    if Aw < Wmax:
        aud2d = jnp.pad(aud2d, ((0, 0), (0, Wmax - Aw)))
    x_va = jnp.stack([vis2d, aud2d], axis=0)                       # (2, N, Wmax)

    bid = (np.arange(N) % B).astype(np.float32)                    # seq-major batch ids
    va_bid_r = jnp.asarray(bid.reshape(N, 1))
    va_bid_c = jnp.asarray(bid.reshape(1, N))

    visaud = visual_audio_encoder(x_va, va_bid_r, va_bid_c,
                                  params["va_proj_w"], params["va_proj_b"],
                                  params["va_encoder"])            # (2, N, E)

    # ---- text embeddings (seq-major flatten so rows land directly in union order) ----
    bp = params["bert"]
    Bt, St = bert_sent.shape
    Nt = Bt * St
    emb = (bp["word_emb"][bert_sent]
           + bp["pos_emb"][:St][None, :, :]
           + bp["type_emb"][bert_sent_type])                       # (B, St, E)
    emb_sm = jnp.transpose(emb, (1, 0, 2)).reshape(Nt, E)
    mask_f = bert_sent_mask.astype(jnp.float32)                    # (B, St)
    mask_sm = jnp.transpose(mask_f).reshape(Nt, 1)
    keybias_sm = jnp.transpose((1.0 - mask_f) * -1e4).reshape(1, Nt)

    tbid = (np.arange(Nt) % Bt).astype(np.float32)
    t_bid_r = jnp.asarray(tbid.reshape(Nt, 1))
    t_bid_c = jnp.asarray(tbid.reshape(1, Nt))

    # ---- call 2: BERT stack + multimodal encoder + mean + fusion head ----
    Nu = 2 * N + Nt
    Stot = 2 * Sv + St
    ubid = np.arange(Nu) % B
    u_bid_r = jnp.asarray(ubid.astype(np.float32).reshape(Nu, 1))
    u_bid_c = jnp.asarray(ubid.astype(np.float32).reshape(1, Nu))
    sel = np.zeros((B, Nu), np.float32)
    sel[ubid, np.arange(Nu)] = 1.0 / Stot                          # per-batch mean selector
    sel = jnp.asarray(sel)

    pred = text_multimodal_head(
        emb_sm, visaud.reshape(2 * N, E),
        t_bid_r, t_bid_c, keybias_sm, mask_sm,
        u_bid_r, u_bid_c, sel,
        bp["emb_ln_g"], bp["emb_ln_b"], bp["layers"], params["mm_encoder"],
        params["fh1_w"], params["fh1_b"], params["fh2_w"], params["fh2_b"],
        num_classes=NUM_CLASSES)
    return pred


# ----------------------------- pure-JAX reference (for correctness check) -----
def _reference_forward(params, visual, acoustic, bert_sent, bert_sent_type, bert_sent_mask):
    E, H = EMBED_DIM, NHEAD
    Dh = E // H
    hp = dict(precision=jax.lax.Precision.HIGHEST)

    def ln(x, g, b, eps):
        mu = x.mean(-1, keepdims=True)
        var = ((x - mu) ** 2).mean(-1, keepdims=True)
        return (x - mu) / jnp.sqrt(var + eps) * g + b

    def layer(x, s, i, key_bias, activation, eps):
        Bb, T, _ = x.shape
        qkv = jnp.einsum("bte,ef->btf", x, s["wqkv"][i], **hp) + s["bqkv"][i]
        q, k, v = jnp.split(qkv, 3, axis=-1)

        def split_heads(z):
            return z.reshape(Bb, T, H, Dh).transpose(0, 2, 1, 3)

        q, k, v = split_heads(q), split_heads(k), split_heads(v)
        sc = jnp.einsum("bhqd,bhkd->bhqk", q, k, **hp) / math.sqrt(Dh)
        if key_bias is not None:
            sc = sc + key_bias
        p = jax.nn.softmax(sc, axis=-1)
        oh = jnp.einsum("bhqk,bhkd->bhqd", p, v, **hp)
        oh = oh.transpose(0, 2, 1, 3).reshape(Bb, T, E)
        attn = jnp.einsum("bte,ef->btf", oh, s["wo"][i], **hp) + s["bo"][i]
        x = ln(x + attn, s["g1"][i], s["b1"][i], eps)
        hdn = jnp.einsum("bte,ef->btf", x, s["w1"][i], **hp) + s["bf1"][i]
        hdn = jnp.maximum(hdn, 0.0) if activation == "relu" else jax.nn.gelu(hdn, approximate=True)
        ff = jnp.einsum("btf,fe->bte", hdn, s["w2"][i], **hp) + s["bf2"][i]
        return ln(x + ff, s["g2"][i], s["b2"][i], eps)

    def encoder(x, s, activation, eps, key_bias=None):
        for i in range(s["wqkv"].shape[0]):
            x = layer(x, s, i, key_bias, activation, eps)
        return x

    vproj_w = params["va_proj_w"][0, :VISION_WIDTH]
    aproj_w = params["va_proj_w"][1, :AUDIO_WIDTH]
    vproj_b = params["va_proj_b"][0]
    aproj_b = params["va_proj_b"][1]
    vis_stack = {k: params["va_encoder"][k][0] for k in _STACK_KEYS}
    aud_stack = {k: params["va_encoder"][k][1] for k in _STACK_KEYS}

    img = jnp.einsum("sbv,ve->bse", visual, vproj_w, **hp) + vproj_b
    aud = jnp.einsum("sba,ae->bse", acoustic, aproj_w, **hp) + aproj_b
    img = jnp.transpose(encoder(img, vis_stack, "relu", 1e-5), (1, 0, 2))
    aud = jnp.transpose(encoder(aud, aud_stack, "relu", 1e-5), (1, 0, 2))

    bp = params["bert"]
    St = bert_sent.shape[1]
    emb = bp["word_emb"][bert_sent] + bp["pos_emb"][:St][None] + bp["type_emb"][bert_sent_type]
    x = ln(emb, bp["emb_ln_g"], bp["emb_ln_b"], 1e-12)
    mask_f = bert_sent_mask.astype(jnp.float32)
    kb = ((1.0 - mask_f) * -1e4)[:, None, None, :]
    x = encoder(x, bp["layers"], "gelu", 1e-12, key_bias=kb)
    x = x / jnp.maximum(jnp.linalg.norm(x, axis=-1, keepdims=True), 1e-12)
    text = jnp.transpose(x * mask_f[..., None], (1, 0, 2))

    union = jnp.concatenate([img, aud, text], axis=0)               # (Stot, B, E)
    enc = encoder(jnp.transpose(union, (1, 0, 2)), params["mm_encoder"], "relu", 1e-5)
    m = enc.mean(axis=1)                                            # (B, E)
    h1 = jnp.maximum(jnp.einsum("be,ef->bf", m, params["fh1_w"], **hp) + params["fh1_b"], 0.0)
    return jnp.einsum("bf,fc->bc", h1, params["fh2_w"], **hp) + params["fh2_b"]


# ----------------------------- deterministic param init -----------------------
def init_params(key):
    keys = iter(jax.random.split(key, 64))

    def rnd(shape, scale=0.05):
        return jax.random.normal(next(keys), shape, jnp.float32) * scale

    E = EMBED_DIM

    def init_stack(L):
        # fused-QKV layout: wqkv (E, 3E) with [Q | K | V], per-head Dh columns inside each block
        return dict(
            wqkv=rnd((L, E, 3 * E)), bqkv=rnd((L, 1, 3 * E), 0.02),
            wo=rnd((L, E, E)), bo=rnd((L, 1, E), 0.02),
            g1=jnp.ones((L, 1, E), jnp.float32), b1=rnd((L, 1, E), 0.02),
            w1=rnd((L, E, FF_DIM)), bf1=rnd((L, 1, FF_DIM), 0.02),
            w2=rnd((L, FF_DIM, E)), bf2=rnd((L, 1, E), 0.02),
            g2=jnp.ones((L, 1, E), jnp.float32), b2=rnd((L, 1, E), 0.02),
        )

    def stack_streams(stacks):
        return {k: jnp.stack([s[k] for s in stacks], axis=0) for k in _STACK_KEYS}

    vis_stack = init_stack(N_VIS_LAYERS)
    aud_stack = init_stack(N_AUD_LAYERS)

    Wmax = max(VISION_WIDTH, AUDIO_WIDTH)
    vpw = rnd((VISION_WIDTH, E))
    apw = rnd((AUDIO_WIDTH, E))
    vpw_p = jnp.zeros((Wmax, E), jnp.float32).at[:VISION_WIDTH].set(vpw)
    apw_p = jnp.zeros((Wmax, E), jnp.float32).at[:AUDIO_WIDTH].set(apw)

    return dict(
        va_proj_w=jnp.stack([vpw_p, apw_p], axis=0),                 # (2, Wmax, E)
        va_proj_b=jnp.stack([rnd((1, E), 0.02), rnd((1, E), 0.02)], axis=0),
        va_encoder=stack_streams([vis_stack, aud_stack]),            # each (2, L, ...)
        mm_encoder=init_stack(N_MM_LAYERS),
        bert=dict(
            word_emb=rnd((VOCAB, E)),
            pos_emb=rnd((MAX_POS, E)),
            type_emb=rnd((2, E)),
            emb_ln_g=jnp.ones((1, E), jnp.float32),
            emb_ln_b=rnd((1, E), 0.02),
            layers=init_stack(N_BERT_LAYERS),
        ),
        fh1_w=rnd((E, E)), fh1_b=rnd((1, E), 0.02),
        fh2_w=rnd((E, NUM_CLASSES)), fh2_b=rnd((1, NUM_CLASSES), 0.02),
    )


# ----------------------------- main --------------------------------------------
if __name__ == "__main__":
    key = jax.random.PRNGKey(0)
    pkey, dkey = jax.random.split(key)
    params = init_params(pkey)

    B, Sv, Sa, St = 2, 8, 8, 8
    k1, k2, k3 = jax.random.split(dkey, 3)
    visual = jax.random.normal(k1, (Sv, B, VISION_WIDTH), jnp.float32)
    acoustic = jax.random.normal(k2, (Sa, B, AUDIO_WIDTH), jnp.float32)
    bert_sent = jax.random.randint(k3, (B, St), 0, VOCAB, dtype=jnp.int32)
    bert_sent_type = jnp.zeros((B, St), jnp.int32)
    bert_sent_mask = jnp.concatenate(
        [jnp.ones((B, 6), jnp.float32), jnp.zeros((B, 2), jnp.float32)], axis=1)

    fwd = jax.jit(acformer_forward)
    pred = fwd(params, visual, acoustic, bert_sent, bert_sent_type, bert_sent_mask)
    pred = jax.block_until_ready(pred)
    assert pred.shape == (B, NUM_CLASSES)
    assert bool(jnp.all(jnp.isfinite(pred)))

    ref = _reference_forward(params, visual, acoustic, bert_sent, bert_sent_type, bert_sent_mask)
    np.testing.assert_allclose(np.asarray(pred), np.asarray(ref), rtol=5e-2, atol=5e-3)

    print("KERNEL_OK")
</pallas_src>

<mosaic_0001>
module attributes {stable_mosaic.version = 11 : i64} {
  func.func @kernel(%arg0: i32, %arg1: memref<1x16x20xf32, #tpu.memory_space<vmem>>, %arg2: memref<16x1xf32, #tpu.memory_space<vmem>>, %arg3: memref<1x16xf32, #tpu.memory_space<vmem>>, %arg4: memref<1x20x32xf32, #tpu.memory_space<vmem>>, %arg5: memref<1x1x32xf32, #tpu.memory_space<vmem>>, %arg6: memref<1x2x32x96xf32, #tpu.memory_space<vmem>>, %arg7: memref<1x2x1x96xf32, #tpu.memory_space<vmem>>, %arg8: memref<1x2x32x32xf32, #tpu.memory_space<vmem>>, %arg9: memref<1x2x1x32xf32, #tpu.memory_space<vmem>>, %arg10: memref<1x2x1x32xf32, #tpu.memory_space<vmem>>, %arg11: memref<1x2x1x32xf32, #tpu.memory_space<vmem>>, %arg12: memref<1x2x32x64xf32, #tpu.memory_space<vmem>>, %arg13: memref<1x2x1x64xf32, #tpu.memory_space<vmem>>, %arg14: memref<1x2x64x32xf32, #tpu.memory_space<vmem>>, %arg15: memref<1x2x1x32xf32, #tpu.memory_space<vmem>>, %arg16: memref<1x2x1x32xf32, #tpu.memory_space<vmem>>, %arg17: memref<1x2x1x32xf32, #tpu.memory_space<vmem>>, %arg18: memref<1x16x32xf32, #tpu.memory_space<vmem>>) attributes {dimension_semantics = [#tpu.dimension_semantics<parallel>], iteration_bounds = array<i64: 2>, scalar_prefetch = 0 : i64, scratch_operands = 0 : i64, tpu.core_type = #tpu.core_type<tc>, window_params = [{transform_indices = @transform_0, window_bounds = array<i64: 1, 16, 20>}, {pipeline_mode = #tpu.pipeline_mode<synchronous>, transform_indices = @transform_1, window_bounds = array<i64: 16, 1>}, {pipeline_mode = #tpu.pipeline_mode<synchronous>, transform_indices = @transform_2, window_bounds = array<i64: 1, 16>}, {transform_indices = @transform_3, window_bounds = array<i64: 1, 20, 32>}, {transform_indices = @transform_4, window_bounds = array<i64: 1, 1, 32>}, {transform_indices = @transform_5, window_bounds = array<i64: 1, 2, 32, 96>}, {transform_indices = @transform_6, window_bounds = array<i64: 1, 2, 1, 96>}, {transform_indices = @transform_7, window_bounds = array<i64: 1, 2, 32, 32>}, {transform_indices = @transform_8, window_bounds = array<i64: 1, 2, 1, 32>}, {transform_indices = @transform_9, window_bounds = array<i64: 1, 2, 1, 32>}, {transform_indices = @transform_10, window_bounds = array<i64: 1, 2, 1, 32>}, {transform_indices = @transform_11, window_bounds = array<i64: 1, 2, 32, 64>}, {transform_indices = @transform_12, window_bounds = array<i64: 1, 2, 1, 64>}, {transform_indices = @transform_13, window_bounds = array<i64: 1, 2, 64, 32>}, {transform_indices = @transform_14, window_bounds = array<i64: 1, 2, 1, 32>}, {transform_indices = @transform_15, window_bounds = array<i64: 1, 2, 1, 32>}, {transform_indices = @transform_16, window_bounds = array<i64: 1, 2, 1, 32>}, {transform_indices = @transform_17, window_bounds = array<i64: 1, 16, 32>}]} {
    %c0 = arith.constant 0 : index
    %c0_0 = arith.constant 0 : index
    %0 = vector.load %arg2[%c0, %c0_0] : memref<16x1xf32, #tpu.memory_space<vmem>>, vector<16x1xf32>
    %c0_1 = arith.constant 0 : index
    %c0_2 = arith.constant 0 : index
    %1 = vector.load %arg3[%c0_1, %c0_2] : memref<1x16xf32, #tpu.memory_space<vmem>>, vector<1x16xf32>
    %2 = vector.broadcast %0 : vector<16x1xf32> to vector<16x16xf32>
    %3 = vector.broadcast %1 : vector<1x16xf32> to vector<16x16xf32>
    %4 = arith.cmpf oeq, %2, %3 : vector<16x16xf32>
    %cst = arith.constant 0.000000e+00 : f32
    %cst_3 = arith.constant -1.000000e+09 : f32
    %5 = vector.broadcast %cst : f32 to vector<16x16xf32>
    %6 = vector.broadcast %cst_3 : f32 to vector<16x16xf32>
    %7 = arith.select %4, %5, %6 : vector<16x16xi1>, vector<16x16xf32>
    %c0_4 = arith.constant 0 : index
    %c0_5 = arith.constant 0 : index
    %c0_6 = arith.constant 0 : index
    %8 = vector.load %arg1[%c0_4, %c0_5, %c0_6] : memref<1x16x20xf32, #tpu.memory_space<vmem>>, vector<1x16x20xf32>
    %9 = vector.shape_cast %8 : vector<1x16x20xf32> to vector<16x20xf32>
    %c0_7 = arith.constant 0 : index
    %c0_8 = arith.constant 0 : index
    %c0_9 = arith.constant 0 : index
    %10 = vector.load %arg4[%c0_7, %c0_8, %c0_9] : memref<1x20x32xf32, #tpu.memory_space<vmem>>, vector<1x20x32xf32>
    %11 = vector.shape_cast %10 : vector<1x20x32xf32> to vector<20x32xf32>
    %cst_10 = arith.constant dense<0.000000e+00> : vector<16x32xf32>
    %12 = tpu.matmul %9, %11, %cst_10 {dimension_numbers = #tpu.dot_dimension_numbers<[1], [0], [0], [1], [0, 0, 1, 1], [], []>} : vector<16x20xf32>, vector<20x32xf32>, vector<16x32xf32> -> vector<16x32xf32>
    %c0_11 = arith.constant 0 : index
    %c0_12 = arith.constant 0 : index
    %c0_13 = arith.constant 0 : index
    %13 = vector.load %arg5[%c0_11, %c0_12, %c0_13] : memref<1x1x32xf32, #tpu.memory_space<vmem>>, vector<1x1x32xf32>
    %14 = vector.shape_cast %13 : vector<1x1x32xf32> to vector<1x32xf32>
    %15 = vector.broadcast %14 : vector<1x32xf32> to vector<16x32xf32>
    %16 = arith.addf %12, %15 : vector<16x32xf32>
    %c0_14 = arith.constant 0 : index
    %c0_15 = arith.constant 0 : index
    %c0_16 = arith.constant 0 : index
    %c0_17 = arith.constant 0 : index
    %17 = vector.load %arg6[%c0_14, %c0_15, %c0_16, %c0_17] : memref<1x2x32x96xf32, #tpu.memory_space<vmem>>, vector<1x1x32x96xf32>
    %18 = vector.shape_cast %17 : vector<1x1x32x96xf32> to vector<32x96xf32>
    %cst_18 = arith.constant dense<0.000000e+00> : vector<16x96xf32>
    %19 = tpu.matmul %16, %18, %cst_18 {dimension_numbers = #tpu.dot_dimension_numbers<[1], [0], [0], [1], [0, 0, 1, 1], [], []>} : vector<16x32xf32>, vector<32x96xf32>, vector<16x96xf32> -> vector<16x96xf32>
    %c0_19 = arith.constant 0 : index
    %c0_20 = arith.constant 0 : index
    %c0_21 = arith.constant 0 : index
    %c0_22 = arith.constant 0 : index
    %20 = vector.load %arg7[%c0_19, %c0_20, %c0_21, %c0_22] : memref<1x2x1x96xf32, #tpu.memory_space<vmem>>, vector<1x1x1x96xf32>
    %21 = vector.shape_cast %20 : vector<1x1x1x96xf32> to vector<1x96xf32>
    %22 = vector.broadcast %21 : vector<1x96xf32> to vector<16x96xf32>
    %23 = arith.addf %19, %22 : vector<16x96xf32>
    %24 = vector.extract_strided_slice %23 {offsets = [0, 0], sizes = [16, 16], strides = [1, 1]} : vector<16x96xf32> to vector<16x16xf32>
    %25 = vector.extract_strided_slice %23 {offsets = [0, 32], sizes = [16, 16], strides = [1, 1]} : vector<16x96xf32> to vector<16x16xf32>
    %26 = vector.extract_strided_slice %23 {offsets = [0, 64], sizes = [16, 16], strides = [1, 1]} : vector<16x96xf32> to vector<16x16xf32>
    %cst_23 = arith.constant dense<0.000000e+00> : vector<16x16xf32>
    %27 = tpu.matmul %24, %25, %cst_23 {dimension_numbers = #tpu.dot_dimension_numbers<[1], [1], [0], [0], [0, 0, 1, 0], [], []>} : vector<16x16xf32>, vector<16x16xf32>, vector<16x16xf32> -> vector<16x16xf32>
    %cst_24 = arith.constant 2.500000e-01 : f32
    %28 = vector.broadcast %cst_24 : f32 to vector<16x16xf32>
    %29 = arith.mulf %27, %28 : vector<16x16xf32>
    %30 = arith.addf %29, %7 : vector<16x16xf32>
    %cst_25 = arith.constant dense<0xFF800000> : vector<16xf32>
    %31 = vector.multi_reduction <maximumf>, %30, %cst_25 [1] : vector<16x16xf32> to vector<16xf32>
    %32 = vector.shape_cast %31 : vector<16xf32> to vector<16x1xf32>
    %33 = vector.broadcast %32 : vector<16x1xf32> to vector<16x16xf32>
    %34 = arith.subf %30, %33 : vector<16x16xf32>
    %35 = math.exp %34 : vector<16x16xf32>
    %cst_26 = arith.constant dense<0.000000e+00> : vector<16xf32>
    %36 = vector.multi_reduction <add>, %35, %cst_26 [1] : vector<16x16xf32> to vector<16xf32>
    %37 = vector.shape_cast %36 : vector<16xf32> to vector<16x1xf32>
    %38 = tpu.reciprocal %37 {approx = true} : vector<16x1xf32> -> vector<16x1xf32>
    %39 = vector.broadcast %38 : vector<16x1xf32> to vector<16x16xf32>
    %40 = arith.mulf %35, %39 : vector<16x16xf32>
    %cst_27 = arith.constant dense<0.000000e+00> : vector<16x16xf32>
    %41 = tpu.matmul %40, %26, %cst_27 {dimension_numbers = #tpu.dot_dimension_numbers<[1], [0], [0], [1], [0, 0, 1, 1], [], []>} : vector<16x16xf32>, vector<16x16xf32>, vector<16x16xf32> -> vector<16x16xf32>
    %42 = vector.extract_strided_slice %23 {offsets = [0, 16], sizes = [16, 16], strides = [1, 1]} : vector<16x96xf32> to vector<16x16xf32>
    %43 = vector.extract_strided_slice %23 {offsets = [0, 48], sizes = [16, 16], strides = [1, 1]} : vector<16x96xf32> to vector<16x16xf32>
    %44 = vector.extract_strided_slice %23 {offsets = [0, 80], sizes = [16, 16], strides = [1, 1]} : vector<16x96xf32> to vector<16x16xf32>
    %cst_28 = arith.constant dense<0.000000e+00> : vector<16x16xf32>
    %45 = tpu.matmul %42, %43, %cst_28 {dimension_numbers = #tpu.dot_dimension_numbers<[1], [1], [0], [0], [0, 0, 1, 0], [], []>} : vector<16x16xf32>, vector<16x16xf32>, vector<16x16xf32> -> vector<16x16xf32>
    %cst_29 = arith.constant 2.500000e-01 : f32
    %46 = vector.broadcast %cst_29 : f32 to vector<16x16xf32>
    %47 = arith.mulf %45, %46 : vector<16x16xf32>
    %48 = arith.addf %47, %7 : vector<16x16xf32>
    %cst_30 = arith.constant dense<0xFF800000> : vector<16xf32>
    %49 = vector.multi_reduction <maximumf>, %48, %cst_30 [1] : vector<16x16xf32> to vector<16xf32>
    %50 = vector.shape_cast %49 : vector<16xf32> to vector<16x1xf32>
    %51 = vector.broadcast %50 : vector<16x1xf32> to vector<16x16xf32>
    %52 = arith.subf %48, %51 : vector<16x16xf32>
    %53 = math.exp %52 : vector<16x16xf32>
    %cst_31 = arith.constant dense<0.000000e+00> : vector<16xf32>
    %54 = vector.multi_reduction <add>, %53, %cst_31 [1] : vector<16x16xf32> to vector<16xf32>
    %55 = vector.shape_cast %54 : vector<16xf32> to vector<16x1xf32>
    %56 = tpu.reciprocal %55 {approx = true} : vector<16x1xf32> -> vector<16x1xf32>
    %57 = vector.broadcast %56 : vector<16x1xf32> to vector<16x16xf32>
    %58 = arith.mulf %53, %57 : vector<16x16xf32>
    %cst_32 = arith.constant dense<0.000000e+00> : vector<16x16xf32>
    %59 = tpu.matmul %58, %44, %cst_32 {dimension_numbers = #tpu.dot_dimension_numbers<[1], [0], [0], [1], [0, 0, 1, 1], [], []>} : vector<16x16xf32>, vector<16x16xf32>, vector<16x16xf32> -> vector<16x16xf32>
    %60 = tpu.concatenate %41, %59 in 1 : vector<16x16xf32>, vector<16x16xf32> -> vector<16x32xf32>
    %c0_33 = arith.constant 0 : index
    %c0_34 = arith.constant 0 : index
    %c0_35 = arith.constant 0 : index
    %c0_36 = arith.constant 0 : index
    %61 = vector.load %arg8[%c0_33, %c0_34, %c0_35, %c0_36] : memref<1x2x32x32xf32, #tpu.memory_space<vmem>>, vector<1x1x32x32xf32>
    %62 = vector.shape_cast %61 : vector<1x1x32x32xf32> to vector<32x32xf32>
    %cst_37 = arith.constant dense<0.000000e+00> : vector<16x32xf32>
    %63 = tpu.matmul %60, %62, %cst_37 {dimension_numbers = #tpu.dot_dimension_numbers<[1], [0], [0], [1], [0, 0, 1, 1], [], []>} : vector<16x32xf32>, vector<32x32xf32>, vector<16x32xf32> -> vector<16x32xf32>
    %c0_38 = arith.constant 0 : index
    %c0_39 = arith.constant 0 : index
    %c0_40 = arith.constant 0 : index
    %c0_41 = arith.constant 0 : index
    %64 = vector.load %arg9[%c0_38, %c0_39, %c0_40, %c0_41] : memref<1x2x1x32xf32, #tpu.memory_space<vmem>>, vector<1x1x1x32xf32>
    %65 = vector.shape_cast %64 : vector<1x1x1x32xf32> to vector<1x32xf32>
    %66 = vector.broadcast %65 : vector<1x32xf32> to vector<16x32xf32>
    %67 = arith.addf %63, %66 : vector<16x32xf32>
    %68 = arith.addf %16, %67 : vector<16x32xf32>
    %c0_42 = arith.constant 0 : index
    %c0_43 = arith.constant 0 : index
    %c0_44 = arith.constant 0 : index
    %c0_45 = arith.constant 0 : index
    %69 = vector.load %arg10[%c0_42, %c0_43, %c0_44, %c0_45] : memref<1x2x1x32xf32, #tpu.memory_space<vmem>>, vector<1x1x1x32xf32>
    %70 = vector.shape_cast %69 : vector<1x1x1x32xf32> to vector<1x32xf32>
    %c0_46 = arith.constant 0 : index
    %c0_47 = arith.constant 0 : index
    %c0_48 = arith.constant 0 : index
    %c0_49 = arith.constant 0 : index
    %71 = vector.load %arg11[%c0_46, %c0_47, %c0_48, %c0_49] : memref<1x2x1x32xf32, #tpu.memory_space<vmem>>, vector<1x1x1x32xf32>
    %72 = vector.shape_cast %71 : vector<1x1x1x32xf32> to vector<1x32xf32>
    %cst_50 = arith.constant dense<0.000000e+00> : vector<16xf32>
    %73 = vector.multi_reduction <add>, %68, %cst_50 [1] : vector<16x32xf32> to vector<16xf32>
    %74 = vector.shape_cast %73 : vector<16xf32> to vector<16x1xf32>
    %cst_51 = arith.constant 3.200000e+01 : f32
    %75 = vector.broadcast %cst_51 : f32 to vector<16x1xf32>
    %76 = arith.divf %74, %75 : vector<16x1xf32>
    %77 = vector.broadcast %76 : vector<16x1xf32> to vector<16x32xf32>
    %78 = arith.subf %68, %77 : vector<16x32xf32>
    %79 = arith.mulf %78, %78 : vector<16x32xf32>
    %cst_52 = arith.constant dense<0.000000e+00> : vector<16xf32>
    %80 = vector.multi_reduction <add>, %79, %cst_52 [1] : vector<16x32xf32> to vector<16xf32>
    %81 = vector.shape_cast %80 : vector<16xf32> to vector<16x1xf32>
    %cst_53 = arith.constant 3.200000e+01 : f32
    %82 = vector.broadcast %cst_53 : f32 to vector<16x1xf32>
    %83 = arith.divf %81, %82 : vector<16x1xf32>
    %cst_54 = arith.constant 9.99999974E-6 : f32
    %84 = vector.broadcast %cst_54 : f32 to vector<16x1xf32>
    %85 = arith.addf %83, %84 : vector<16x1xf32>
    %86 = math.rsqrt %85 : vector<16x1xf32>
    %87 = vector.broadcast %86 : vector<16x1xf32> to vector<16x32xf32>
    %88 = arith.mulf %78, %87 : vector<16x32xf32>
    %89 = vector.broadcast %70 : vector<1x32xf32> to vector<16x32xf32>
    %90 = arith.mulf %88, %89 : vector<16x32xf32>
    %91 = vector.broadcast %72 : vector<1x32xf32> to vector<16x32xf32>
    %92 = arith.addf %90, %91 : vector<16x32xf32>
    %c0_55 = arith.constant 0 : index
    %c0_56 = arith.constant 0 : index
    %c0_57 = arith.constant 0 : index
    %c0_58 = arith.constant 0 : index
    %93 = vector.load %arg12[%c0_55, %c0_56, %c0_57, %c0_58] : memref<1x2x32x64xf32, #tpu.memory_space<vmem>>, vector<1x1x32x64xf32>
    %94 = vector.shape_cast %93 : vector<1x1x32x64xf32> to vector<32x64xf32>
    %cst_59 = arith.constant dense<0.000000e+00> : vector<16x64xf32>
    %95 = tpu.matmul %92, %94, %cst_59 {dimension_numbers = #tpu.dot_dimension_numbers<[1], [0], [0], [1], [0, 0, 1, 1], [], []>} : vector<16x32xf32>, vector<32x64xf32>, vector<16x64xf32> -> vector<16x64xf32>
    %c0_60 = arith.constant 0 : index
    %c0_61 = arith.constant 0 : index
    %c0_62 = arith.constant 0 : index
    %c0_63 = arith.constant 0 : index
    %96 = vector.load %arg13[%c0_60, %c0_61, %c0_62, %c0_63] : memref<1x2x1x64xf32, #tpu.memory_space<vmem>>, vector<1x1x1x64xf32>
    %97 = vector.shape_cast %96 : vector<1x1x1x64xf32> to vector<1x64xf32>
    %98 = vector.broadcast %97 : vector<1x64xf32> to vector<16x64xf32>
    %99 = arith.addf %95, %98 : vector<16x64xf32>
    %cst_64 = arith.constant 0.000000e+00 : f32
    %100 = vector.broadcast %cst_64 : f32 to vector<16x64xf32>
    %101 = arith.maximumf %99, %100 : vector<16x64xf32>
    %c0_65 = arith.constant 0 : index
    %c0_66 = arith.constant 0 : index
    %c0_67 = arith.constant 0 : index
    %c0_68 = arith.constant 0 : index
    %102 = vector.load %arg14[%c0_65, %c0_66, %c0_67, %c0_68] : memref<1x2x64x32xf32, #tpu.memory_space<vmem>>, vector<1x1x64x32xf32>
    %103 = vector.shape_cast %102 : vector<1x1x64x32xf32> to vector<64x32xf32>
    %cst_69 = arith.constant dense<0.000000e+00> : vector<16x32xf32>
    %104 = tpu.matmul %101, %103, %cst_69 {dimension_numbers = #tpu.dot_dimension_numbers<[1], [0], [0], [1], [0, 0, 1, 1], [], []>} : vector<16x64xf32>, vector<64x32xf32>, vector<16x32xf32> -> vector<16x32xf32>
    %c0_70 = arith.constant 0 : index
    %c0_71 = arith.constant 0 : index
    %c0_72 = arith.constant 0 : index
    %c0_73 = arith.constant 0 : index
    %105 = vector.load %arg15[%c0_70, %c0_71, %c0_72, %c0_73] : memref<1x2x1x32xf32, #tpu.memory_space<vmem>>, vector<1x1x1x32xf32>
    %106 = vector.shape_cast %105 : vector<1x1x1x32xf32> to vector<1x32xf32>
    %107 = vector.broadcast %106 : vector<1x32xf32> to vector<16x32xf32>
    %108 = arith.addf %104, %107 : vector<16x32xf32>
    %109 = arith.addf %92, %108 : vector<16x32xf32>
    %c0_74 = arith.constant 0 : index
    %c0_75 = arith.constant 0 : index
    %c0_76 = arith.constant 0 : index
    %c0_77 = arith.constant 0 : index
    %110 = vector.load %arg16[%c0_74, %c0_75, %c0_76, %c0_77] : memref<1x2x1x32xf32, #tpu.memory_space<vmem>>, vector<1x1x1x32xf32>
    %111 = vector.shape_cast %110 : vector<1x1x1x32xf32> to vector<1x32xf32>
    %c0_78 = arith.constant 0 : index
    %c0_79 = arith.constant 0 : index
    %c0_80 = arith.constant 0 : index
    %c0_81 = arith.constant 0 : index
    %112 = vector.load %arg17[%c0_78, %c0_79, %c0_80, %c0_81] : memref<1x2x1x32xf32, #tpu.memory_space<vmem>>, vector<1x1x1x32xf32>
    %113 = vector.shape_cast %112 : vector<1x1x1x32xf32> to vector<1x32xf32>
    %cst_82 = arith.constant dense<0.000000e+00> : vector<16xf32>
    %114 = vector.multi_reduction <add>, %109, %cst_82 [1] : vector<16x32xf32> to vector<16xf32>
    %115 = vector.shape_cast %114 : vector<16xf32> to vector<16x1xf32>
    %cst_83 = arith.constant 3.200000e+01 : f32
    %116 = vector.broadcast %cst_83 : f32 to vector<16x1xf32>
    %117 = arith.divf %115, %116 : vector<16x1xf32>
    %118 = vector.broadcast %117 : vector<16x1xf32> to vector<16x32xf32>
    %119 = arith.subf %109, %118 : vector<16x32xf32>
    %120 = arith.mulf %119, %119 : vector<16x32xf32>
    %cst_84 = arith.constant dense<0.000000e+00> : vector<16xf32>
    %121 = vector.multi_reduction <add>, %120, %cst_84 [1] : vector<16x32xf32> to vector<16xf32>
    %122 = vector.shape_cast %121 : vector<16xf32> to vector<16x1xf32>
    %cst_85 = arith.constant 3.200000e+01 : f32
    %123 = vector.broadcast %cst_85 : f32 to vector<16x1xf32>
    %124 = arith.divf %122, %123 : vector<16x1xf32>
    %cst_86 = arith.constant 9.99999974E-6 : f32
    %125 = vector.broadcast %cst_86 : f32 to vector<16x1xf32>
    %126 = arith.addf %124, %125 : vector<16x1xf32>
    %127 = math.rsqrt %126 : vector<16x1xf32>
    %128 = vector.broadcast %127 : vector<16x1xf32> to vector<16x32xf32>
    %129 = arith.mulf %119, %128 : vector<16x32xf32>
    %130 = vector.broadcast %111 : vector<1x32xf32> to vector<16x32xf32>
    %131 = arith.mulf %129, %130 : vector<16x32xf32>
    %132 = vector.broadcast %113 : vector<1x32xf32> to vector<16x32xf32>
    %133 = arith.addf %131, %132 : vector<16x32xf32>
    %c0_87 = arith.constant 0 : index
    %c1 = arith.constant 1 : index
    %c0_88 = arith.constant 0 : index
    %c0_89 = arith.constant 0 : index
    %134 = vector.load %arg6[%c0_87, %c1, %c0_88, %c0_89] : memref<1x2x32x96xf32, #tpu.memory_space<vmem>>, vector<1x1x32x96xf32>
    %135 = vector.shape_cast %134 : vector<1x1x32x96xf32> to vector<32x96xf32>
    %cst_90 = arith.constant dense<0.000000e+00> : vector<16x96xf32>
    %136 = tpu.matmul %133, %135, %cst_90 {dimension_numbers = #tpu.dot_dimension_numbers<[1], [0], [0], [1], [0, 0, 1, 1], [], []>} : vector<16x32xf32>, vector<32x96xf32>, vector<16x96xf32> -> vector<16x96xf32>
    %c0_91 = arith.constant 0 : index
    %c1_92 = arith.constant 1 : index
    %c0_93 = arith.constant 0 : index
    %c0_94 = arith.constant 0 : index
    %137 = vector.load %arg7[%c0_91, %c1_92, %c0_93, %c0_94] : memref<1x2x1x96xf32, #tpu.memory_space<vmem>>, vector<1x1x1x96xf32>
    %138 = vector.shape_cast %137 : vector<1x1x1x96xf32> to vector<1x96xf32>
    %139 = vector.broadcast %138 : vector<1x96xf32> to vector<16x96xf32>
    %140 = arith.addf %136, %139 : vector<16x96xf32>
    %141 = vector.extract_strided_slice %140 {offsets = [0, 0], sizes = [16, 16], strides = [1, 1]} : vector<16x96xf32> to vector<16x16xf32>
    %142 = vector.extract_strided_slice %140 {offsets = [0, 32], sizes = [16, 16], strides = [1, 1]} : vector<16x96xf32> to vector<16x16xf32>
    %143 = vector.extract_strided_slice %140 {offsets = [0, 64], sizes = [16, 16], strides = [1, 1]} : vector<16x96xf32> to vector<16x16xf32>
    %cst_95 = arith.constant dense<0.000000e+00> : vector<16x16xf32>
    %144 = tpu.matmul %141, %142, %cst_95 {dimension_numbers = #tpu.dot_dimension_numbers<[1], [1], [0], [0], [0, 0, 1, 0], [], []>} : vector<16x16xf32>, vector<16x16xf32>, vector<16x16xf32> -> vector<16x16xf32>
    %cst_96 = arith.constant 2.500000e-01 : f32
    %145 = vector.broadcast %cst_96 : f32 to vector<16x16xf32>
    %146 = arith.mulf %144, %145 : vector<16x16xf32>
    %147 = arith.addf %146, %7 : vector<16x16xf32>
    %cst_97 = arith.constant dense<0xFF800000> : vector<16xf32>
    %148 = vector.multi_reduction <maximumf>, %147, %cst_97 [1] : vector<16x16xf32> to vector<16xf32>
    %149 = vector.shape_cast %148 : vector<16xf32> to vector<16x1xf32>
    %150 = vector.broadcast %149 : vector<16x1xf32> to vector<16x16xf32>
    %151 = arith.subf %147, %150 : vector<16x16xf32>
    %152 = math.exp %151 : vector<16x16xf32>
    %cst_98 = arith.constant dense<0.000000e+00> : vector<16xf32>
    %153 = vector.multi_reduction <add>, %152, %cst_98 [1] : vector<16x16xf32> to vector<16xf32>
    %154 = vector.shape_cast %153 : vector<16xf32> to vector<16x1xf32>
    %155 = tpu.reciprocal %154 {approx = true} : vector<16x1xf32> -> vector<16x1xf32>
    %156 = vector.broadcast %155 : vector<16x1xf32> to vector<16x16xf32>
    %157 = arith.mulf %152, %156 : vector<16x16xf32>
    %cst_99 = arith.constant dense<0.000000e+00> : vector<16x16xf32>
    %158 = tpu.matmul %157, %143, %cst_99 {dimension_numbers = #tpu.dot_dimension_numbers<[1], [0], [0], [1], [0, 0, 1, 1], [], []>} : vector<16x16xf32>, vector<16x16xf32>, vector<16x16xf32> -> vector<16x16xf32>
    %159 = vector.extract_strided_slice %140 {offsets = [0, 16], sizes = [16, 16], strides = [1, 1]} : vector<16x96xf32> to vector<16x16xf32>
    %160 = vector.extract_strided_slice %140 {offsets = [0, 48], sizes = [16, 16], strides = [1, 1]} : vector<16x96xf32> to vector<16x16xf32>
    %161 = vector.extract_strided_slice %140 {offsets = [0, 80], sizes = [16, 16], strides = [1, 1]} : vector<16x96xf32> to vector<16x16xf32>
    %cst_100 = arith.constant dense<0.000000e+00> : vector<16x16xf32>
    %162 = tpu.matmul %159, %160, %cst_100 {dimension_numbers = #tpu.dot_dimension_numbers<[1], [1], [0], [0], [0, 0, 1, 0], [], []>} : vector<16x16xf32>, vector<16x16xf32>, vector<16x16xf32> -> vector<16x16xf32>
    %cst_101 = arith.constant 2.500000e-01 : f32
    %163 = vector.broadcast %cst_101 : f32 to vector<16x16xf32>
    %164 = arith.mulf %162, %163 : vector<16x16xf32>
    %165 = arith.addf %164, %7 : vector<16x16xf32>
    %cst_102 = arith.constant dense<0xFF800000> : vector<16xf32>
    %166 = vector.multi_reduction <maximumf>, %165, %cst_102 [1] : vector<16x16xf32> to vector<16xf32>
    %167 = vector.shape_cast %166 : vector<16xf32> to vector<16x1xf32>
    %168 = vector.broadcast %167 : vector<16x1xf32> to vector<16x16xf32>
    %169 = arith.subf %165, %168 : vector<16x16xf32>
    %170 = math.exp %169 : vector<16x16xf32>
    %cst_103 = arith.constant dense<0.000000e+00> : vector<16xf32>
    %171 = vector.multi_reduction <add>, %170, %cst_103 [1] : vector<16x16xf32> to vector<16xf32>
    %172 = vector.shape_cast %171 : vector<16xf32> to vector<16x1xf32>
    %173 = tpu.reciprocal %172 {approx = true} : vector<16x1xf32> -> vector<16x1xf32>
    %174 = vector.broadcast %173 : vector<16x1xf32> to vector<16x16xf32>
    %175 = arith.mulf %170, %174 : vector<16x16xf32>
    %cst_104 = arith.constant dense<0.000000e+00> : vector<16x16xf32>
    %176 = tpu.matmul %175, %161, %cst_104 {dimension_numbers = #tpu.dot_dimension_numbers<[1], [0], [0], [1], [0, 0, 1, 1], [], []>} : vector<16x16xf32>, vector<16x16xf32>, vector<16x16xf32> -> vector<16x16xf32>
    %177 = tpu.concatenate %158, %176 in 1 : vector<16x16xf32>, vector<16x16xf32> -> vector<16x32xf32>
    %c0_105 = arith.constant 0 : index
    %c1_106 = arith.constant 1 : index
    %c0_107 = arith.constant 0 : index
    %c0_108 = arith.constant 0 : index
    %178 = vector.load %arg8[%c0_105, %c1_106, %c0_107, %c0_108] : memref<1x2x32x32xf32, #tpu.memory_space<vmem>>, vector<1x1x32x32xf32>
    %179 = vector.shape_cast %178 : vector<1x1x32x32xf32> to vector<32x32xf32>
    %cst_109 = arith.constant dense<0.000000e+00> : vector<16x32xf32>
    %180 = tpu.matmul %177, %179, %cst_109 {dimension_numbers = #tpu.dot_dimension_numbers<[1], [0], [0], [1], [0, 0, 1, 1], [], []>} : vector<16x32xf32>, vector<32x32xf32>, vector<16x32xf32> -> vector<16x32xf32>
    %c0_110 = arith.constant 0 : index
    %c1_111 = arith.constant 1 : index
    %c0_112 = arith.constant 0 : index
    %c0_113 = arith.constant 0 : index
    %181 = vector.load %arg9[%c0_110, %c1_111, %c0_112, %c0_113] : memref<1x2x1x32xf32, #tpu.memory_space<vmem>>, vector<1x1x1x32xf32>
    %182 = vector.shape_cast %181 : vector<1x1x1x32xf32> to vector<1x32xf32>
    %183 = vector.broadcast %182 : vector<1x32xf32> to vector<16x32xf32>
    %184 = arith.addf %180, %183 : vector<16x32xf32>
    %185 = arith.addf %133, %184 : vector<16x32xf32>
    %c0_114 = arith.constant 0 : index
    %c1_115 = arith.constant 1 : index
    %c0_116 = arith.constant 0 : index
    %c0_117 = arith.constant 0 : index
    %186 = vector.load %arg10[%c0_114, %c1_115, %c0_116, %c0_117] : memref<1x2x1x32xf32, #tpu.memory_space<vmem>>, vector<1x1x1x32xf32>
    %187 = vector.shape_cast %186 : vector<1x1x1x32xf32> to vector<1x32xf32>
    %c0_118 = arith.constant 0 : index
    %c1_119 = arith.constant 1 : index
    %c0_120 = arith.constant 0 : index
    %c0_121 = arith.constant 0 : index
    %188 = vector.load %arg11[%c0_118, %c1_119, %c0_120, %c0_121] : memref<1x2x1x32xf32, #tpu.memory_space<vmem>>, vector<1x1x1x32xf32>
    %189 = vector.shape_cast %188 : vector<1x1x1x32xf32> to vector<1x32xf32>
    %cst_122 = arith.constant dense<0.000000e+00> : vector<16xf32>
    %190 = vector.multi_reduction <add>, %185, %cst_122 [1] : vector<16x32xf32> to vector<16xf32>
    %191 = vector.shape_cast %190 : vector<16xf32> to vector<16x1xf32>
    %cst_123 = arith.constant 3.200000e+01 : f32
    %192 = vector.broadcast %cst_123 : f32 to vector<16x1xf32>
    %193 = arith.divf %191, %192 : vector<16x1xf32>
    %194 = vector.broadcast %193 : vector<16x1xf32> to vector<16x32xf32>
    %195 = arith.subf %185, %194 : vector<16x32xf32>
    %196 = arith.mulf %195, %195 : vector<16x32xf32>
    %cst_124 = arith.constant dense<0.000000e+00> : vector<16xf32>
    %197 = vector.multi_reduction <add>, %196, %cst_124 [1] : vector<16x32xf32> to vector<16xf32>
    %198 = vector.shape_cast %197 : vector<16xf32> to vector<16x1xf32>
    %cst_125 = arith.constant 3.200000e+01 : f32
    %199 = vector.broadcast %cst_125 : f32 to vector<16x1xf32>
    %200 = arith.divf %198, %199 : vector<16x1xf32>
    %cst_126 = arith.constant 9.99999974E-6 : f32
    %201 = vector.broadcast %cst_126 : f32 to vector<16x1xf32>
    %202 = arith.addf %200, %201 : vector<16x1xf32>
    %203 = math.rsqrt %202 : vector<16x1xf32>
    %204 = vector.broadcast %203 : vector<16x1xf32> to vector<16x32xf32>
    %205 = arith.mulf %195, %204 : vector<16x32xf32>
    %206 = vector.broadcast %187 : vector<1x32xf32> to vector<16x32xf32>
    %207 = arith.mulf %205, %206 : vector<16x32xf32>
    %208 = vector.broadcast %189 : vector<1x32xf32> to vector<16x32xf32>
    %209 = arith.addf %207, %208 : vector<16x32xf32>
    %c0_127 = arith.constant 0 : index
    %c1_128 = arith.constant 1 : index
    %c0_129 = arith.constant 0 : index
    %c0_130 = arith.constant 0 : index
    %210 = vector.load %arg12[%c0_127, %c1_128, %c0_129, %c0_130] : memref<1x2x32x64xf32, #tpu.memory_space<vmem>>, vector<1x1x32x64xf32>
    %211 = vector.shape_cast %210 : vector<1x1x32x64xf32> to vector<32x64xf32>
    %cst_131 = arith.constant dense<0.000000e+00> : vector<16x64xf32>
    %212 = tpu.matmul %209, %211, %cst_131 {dimension_numbers = #tpu.dot_dimension_numbers<[1], [0], [0], [1], [0, 0, 1, 1], [], []>} : vector<16x32xf32>, vector<32x64xf32>, vector<16x64xf32> -> vector<16x64xf32>
    %c0_132 = arith.constant 0 : index
    %c1_133 = arith.constant 1 : index
    %c0_134 = arith.constant 0 : index
    %c0_135 = arith.constant 0 : index
    %213 = vector.load %arg13[%c0_132, %c1_133, %c0_134, %c0_135] : memref<1x2x1x64xf32, #tpu.memory_space<vmem>>, vector<1x1x1x64xf32>
    %214 = vector.shape_cast %213 : vector<1x1x1x64xf32> to vector<1x64xf32>
    %215 = vector.broadcast %214 : vector<1x64xf32> to vector<16x64xf32>
    %216 = arith.addf %212, %215 : vector<16x64xf32>
    %cst_136 = arith.constant 0.000000e+00 : f32
    %217 = vector.broadcast %cst_136 : f32 to vector<16x64xf32>
    %218 = arith.maximumf %216, %217 : vector<16x64xf32>
    %c0_137 = arith.constant 0 : index
    %c1_138 = arith.constant 1 : index
    %c0_139 = arith.constant 0 : index
    %c0_140 = arith.constant 0 : index
    %219 = vector.load %arg14[%c0_137, %c1_138, %c0_139, %c0_140] : memref<1x2x64x32xf32, #tpu.memory_space<vmem>>, vector<1x1x64x32xf32>
    %220 = vector.shape_cast %219 : vector<1x1x64x32xf32> to vector<64x32xf32>
    %cst_141 = arith.constant dense<0.000000e+00> : vector<16x32xf32>
    %221 = tpu.matmul %218, %220, %cst_141 {dimension_numbers = #tpu.dot_dimension_numbers<[1], [0], [0], [1], [0, 0, 1, 1], [], []>} : vector<16x64xf32>, vector<64x32xf32>, vector<16x32xf32> -> vector<16x32xf32>
    %c0_142 = arith.constant 0 : index
    %c1_143 = arith.constant 1 : index
    %c0_144 = arith.constant 0 : index
    %c0_145 = arith.constant 0 : index
    %222 = vector.load %arg15[%c0_142, %c1_143, %c0_144, %c0_145] : memref<1x2x1x32xf32, #tpu.memory_space<vmem>>, vector<1x1x1x32xf32>
    %223 = vector.shape_cast %222 : vector<1x1x1x32xf32> to vector<1x32xf32>
    %224 = vector.broadcast %223 : vector<1x32xf32> to vector<16x32xf32>
    %225 = arith.addf %221, %224 : vector<16x32xf32>
    %226 = arith.addf %209, %225 : vector<16x32xf32>
    %c0_146 = arith.constant 0 : index
    %c1_147 = arith.constant 1 : index
    %c0_148 = arith.constant 0 : index
    %c0_149 = arith.constant 0 : index
    %227 = vector.load %arg16[%c0_146, %c1_147, %c0_148, %c0_149] : memref<1x2x1x32xf32, #tpu.memory_space<vmem>>, vector<1x1x1x32xf32>
    %228 = vector.shape_cast %227 : vector<1x1x1x32xf32> to vector<1x32xf32>
    %c0_150 = arith.constant 0 : index
    %c1_151 = arith.constant 1 : index
    %c0_152 = arith.constant 0 : index
    %c0_153 = arith.constant 0 : index
    %229 = vector.load %arg17[%c0_150, %c1_151, %c0_152, %c0_153] : memref<1x2x1x32xf32, #tpu.memory_space<vmem>>, vector<1x1x1x32xf32>
    %230 = vector.shape_cast %229 : vector<1x1x1x32xf32> to vector<1x32xf32>
    %cst_154 = arith.constant dense<0.000000e+00> : vector<16xf32>
    %231 = vector.multi_reduction <add>, %226, %cst_154 [1] : vector<16x32xf32> to vector<16xf32>
    %232 = vector.shape_cast %231 : vector<16xf32> to vector<16x1xf32>
    %cst_155 = arith.constant 3.200000e+01 : f32
    %233 = vector.broadcast %cst_155 : f32 to vector<16x1xf32>
    %234 = arith.divf %232, %233 : vector<16x1xf32>
    %235 = vector.broadcast %234 : vector<16x1xf32> to vector<16x32xf32>
    %236 = arith.subf %226, %235 : vector<16x32xf32>
    %237 = arith.mulf %236, %236 : vector<16x32xf32>
    %cst_156 = arith.constant dense<0.000000e+00> : vector<16xf32>
    %238 = vector.multi_reduction <add>, %237, %cst_156 [1] : vector<16x32xf32> to vector<16xf32>
    %239 = vector.shape_cast %238 : vector<16xf32> to vector<16x1xf32>
    %cst_157 = arith.constant 3.200000e+01 : f32
    %240 = vector.broadcast %cst_157 : f32 to vector<16x1xf32>
    %241 = arith.divf %239, %240 : vector<16x1xf32>
    %cst_158 = arith.constant 9.99999974E-6 : f32
    %242 = vector.broadcast %cst_158 : f32 to vector<16x1xf32>
    %243 = arith.addf %241, %242 : vector<16x1xf32>
    %244 = math.rsqrt %243 : vector<16x1xf32>
    %245 = vector.broadcast %244 : vector<16x1xf32> to vector<16x32xf32>
    %246 = arith.mulf %236, %245 : vector<16x32xf32>
    %247 = vector.broadcast %228 : vector<1x32xf32> to vector<16x32xf32>
    %248 = arith.mulf %246, %247 : vector<16x32xf32>
    %249 = vector.broadcast %230 : vector<1x32xf32> to vector<16x32xf32>
    %250 = arith.addf %248, %249 : vector<16x32xf32>
    %c0_159 = arith.constant 0 : index
    %c0_160 = arith.constant 0 : index
    %c0_161 = arith.constant 0 : index
    %251 = vector.load %arg18[%c0_159, %c0_160, %c0_161] : memref<1x16x32xf32, #tpu.memory_space<vmem>>, vector<1x16x32xf32>
    %252 = vector.shape_cast %251 : vector<1x16x32xf32> to vector<16x32xf32>
    %253 = vector.shape_cast %250 : vector<16x32xf32> to vector<1x16x32xf32>
    tpu.vector_store %arg18[%c0_159, %c0_160, %c0_161], %253 {strides = array<i32>} : memref<1x16x32xf32, #tpu.memory_space<vmem>>, vector<1x16x32xf32>,
    return
  }
  func.func @transform_0(%arg0: i32) -> (i32, i32, i32) {
    %c0_i32 = arith.constant 0 : i32
    %c0_i32_0 = arith.constant 0 : i32
    %c0_i32_1 = arith.constant 0 : i32
    return %arg0, %c0_i32, %c0_i32_0 : i32, i32, i32
  }
  func.func @transform_1(%arg0: i32) -> (i32, i32) {
    %c0_i32 = arith.constant 0 : i32
    %c0_i32_0 = arith.constant 0 : i32
    %c0_i32_1 = arith.constant 0 : i32
    return %c0_i32, %c0_i32_0 : i32, i32
  }
  func.func @transform_2(%arg0: i32) -> (i32, i32) {
    %c0_i32 = arith.constant 0 : i32
    %c0_i32_0 = arith.constant 0 : i32
    %c0_i32_1 = arith.constant 0 : i32
    return %c0_i32, %c0_i32_0 : i32, i32
  }
  func.func @transform_3(%arg0: i32) -> (i32, i32, i32) {
    %c0_i32 = arith.constant 0 : i32
    %c0_i32_0 = arith.constant 0 : i32
    %c0_i32_1 = arith.constant 0 : i32
    return %arg0, %c0_i32, %c0_i32_0 : i32, i32, i32
  }
  func.func @transform_4(%arg0: i32) -> (i32, i32, i32) {
    %c0_i32 = arith.constant 0 : i32
    %c0_i32_0 = arith.constant 0 : i32
    %c0_i32_1 = arith.constant 0 : i32
    return %arg0, %c0_i32, %c0_i32_0 : i32, i32, i32
  }
  func.func @transform_5(%arg0: i32) -> (i32, i32, i32, i32) {
    %c0_i32 = arith.constant 0 : i32
    %c0_i32_0 = arith.constant 0 : i32
    %c0_i32_1 = arith.constant 0 : i32
    %c0_i32_2 = arith.constant 0 : i32
    return %arg0, %c0_i32, %c0_i32_0, %c0_i32_1 : i32, i32, i32, i32
  }
  func.func @transform_6(%arg0: i32) -> (i32, i32, i32, i32) {
    %c0_i32 = arith.constant 0 : i32
    %c0_i32_0 = arith.constant 0 : i32
    %c0_i32_1 = arith.constant 0 : i32
    %c0_i32_2 = arith.constant 0 : i32
    return %arg0, %c0_i32, %c0_i32_0, %c0_i32_1 : i32, i32, i32, i32
  }
  func.func @transform_7(%arg0: i32) -> (i32, i32, i32, i32) {
    %c0_i32 = arith.constant 0 : i32
    %c0_i32_0 = arith.constant 0 : i32
    %c0_i32_1 = arith.constant 0 : i32
    %c0_i32_2 = arith.constant 0 : i32
    return %arg0, %c0_i32, %c0_i32_0, %c0_i32_1 : i32, i32, i32, i32
  }
  func.func @transform_8(%arg0: i32) -> (i32, i32, i32, i32) {
    %c0_i32 = arith.constant 0 : i32
    %c0_i32_0 = arith.constant 0 : i32
    %c0_i32_1 = arith.constant 0 : i32
    %c0_i32_2 = arith.constant 0 : i32
    return %arg0, %c0_i32, %c0_i32_0, %c0_i32_1 : i32, i32, i32, i32
  }
  func.func @transform_9(%arg0: i32) -> (i32, i32, i32, i32) {
    %c0_i32 = arith.constant 0 : i32
    %c0_i32_0 = arith.constant 0 : i32
    %c0_i32_1 = arith.constant 0 : i32
    %c0_i32_2 = arith.constant 0 : i32
    return %arg0, %c0_i32, %c0_i32_0, %c0_i32_1 : i32, i32, i32, i32
  }
  func.func @transform_10(%arg0: i32) -> (i32, i32, i32, i32) {
    %c0_i32 = arith.constant 0 : i32
    %c0_i32_0 = arith.constant 0 : i32
    %c0_i32_1 = arith.constant 0 : i32
    %c0_i32_2 = arith.constant 0 : i32
    return %arg0, %c0_i32, %c0_i32_0, %c0_i32_1 : i32, i32, i32, i32
  }
  func.func @transform_11(%arg0: i32) -> (i32, i32, i32, i32) {
    %c0_i32 = arith.constant 0 : i32
    %c0_i32_0 = arith.constant 0 : i32
    %c0_i32_1 = arith.constant 0 : i32
    %c0_i32_2 = arith.constant 0 : i32
    return %arg0, %c0_i32, %c0_i32_0, %c0_i32_1 : i32, i32, i32, i32
  }
  func.func @transform_12(%arg0: i32) -> (i32, i32, i32, i32) {
    %c0_i32 = arith.constant 0 : i32
    %c0_i32_0 = arith.constant 0 : i32
    %c0_i32_1 = arith.constant 0 : i32
    %c0_i32_2 = arith.constant 0 : i32
    return %arg0, %c0_i32, %c0_i32_0, %c0_i32_1 : i32, i32, i32, i32
  }
  func.func @transform_13(%arg0: i32) -> (i32, i32, i32, i32) {
    %c0_i32 = arith.constant 0 : i32
    %c0_i32_0 = arith.constant 0 : i32
    %c0_i32_1 = arith.constant 0 : i32
    %c0_i32_2 = arith.constant 0 : i32
    return %arg0, %c0_i32, %c0_i32_0, %c0_i32_1 : i32, i32, i32, i32
  }
  func.func @transform_14(%arg0: i32) -> (i32, i32, i32, i32) {
    %c0_i32 = arith.constant 0 : i32
    %c0_i32_0 = arith.constant 0 : i32
    %c0_i32_1 = arith.constant 0 : i32
    %c0_i32_2 = arith.constant 0 : i32
    return %arg0, %c0_i32, %c0_i32_0, %c0_i32_1 : i32, i32, i32, i32
  }
  func.func @transform_15(%arg0: i32) -> (i32, i32, i32, i32) {
    %c0_i32 = arith.constant 0 : i32
    %c0_i32_0 = arith.constant 0 : i32
    %c0_i32_1 = arith.constant 0 : i32
    %c0_i32_2 = arith.constant 0 : i32
    return %arg0, %c0_i32, %c0_i32_0, %c0_i32_1 : i32, i32, i32, i32
  }
  func.func @transform_16(%arg0: i32) -> (i32, i32, i32, i32) {
    %c0_i32 = arith.constant 0 : i32
    %c0_i32_0 = arith.constant 0 : i32
    %c0_i32_1 = arith.constant 0 : i32
    %c0_i32_2 = arith.constant 0 : i32
    return %arg0, %c0_i32, %c0_i32_0, %c0_i32_1 : i32, i32, i32, i32
  }
  func.func @transform_17(%arg0: i32) -> (i32, i32, i32) {
    %c0_i32 = arith.constant 0 : i32
    %c0_i32_0 = arith.constant 0 : i32
    %c0_i32_1 = arith.constant 0 : i32
    return %arg0, %c0_i32, %c0_i32_0 : i32, i32, i32
  }
}

module attributes {stable_mosaic.version = 11 : i64} {
  func.func @kernel(%arg0: i32, %arg1: memref<16x32xf32, #tpu.memory_space<vmem>>, %arg2: memref<32x32xf32, #tpu.memory_space<vmem>>, %arg3: memref<16x1xf32, #tpu.memory_space<vmem>>, %arg4: memref<1x16xf32, #tpu.memory_space<vmem>>, %arg5: memref<1x16xf32, #tpu.memory_space<vmem>>, %arg6: memref<16x1xf32, #tpu.memory_space<vmem>>, %arg7: memref<48x1xf32, #tpu.memory_space<vmem>>, %arg8: memref<1x48xf32, #tpu.memory_space<vmem>>, %arg9: memref<2x48xf32, #tpu.memory_space<vmem>>, %arg10: memref<1x32xf32, #tpu.memory_space<vmem>>, %arg11: memref<1x32xf32, #tpu.memory_space<vmem>>, %arg12: memref<2x32x96xf32, #tpu.memory_space<vmem>>, %arg13: memref<2x1x96xf32, #tpu.memory_space<vmem>>, %arg14: memref<2x32x32xf32, #tpu.memory_space<vmem>>, %arg15: memref<2x1x32xf32, #tpu.memory_space<vmem>>, %arg16: memref<2x1x32xf32, #tpu.memory_space<vmem>>, %arg17: memref<2x1x32xf32, #tpu.memory_space<vmem>>, %arg18: memref<2x32x64xf32, #tpu.memory_space<vmem>>, %arg19: memref<2x1x64xf32, #tpu.memory_space<vmem>>, %arg20: memref<2x64x32xf32, #tpu.memory_space<vmem>>, %arg21: memref<2x1x32xf32, #tpu.memory_space<vmem>>, %arg22: memref<2x1x32xf32, #tpu.memory_space<vmem>>, %arg23: memref<2x1x32xf32, #tpu.memory_space<vmem>>, %arg24: memref<1x32x96xf32, #tpu.memory_space<vmem>>, %arg25: memref<1x1x96xf32, #tpu.memory_space<vmem>>, %arg26: memref<1x32x32xf32, #tpu.memory_space<vmem>>, %arg27: memref<1x1x32xf32, #tpu.memory_space<vmem>>, %arg28: memref<1x1x32xf32, #tpu.memory_space<vmem>>, %arg29: memref<1x1x32xf32, #tpu.memory_space<vmem>>, %arg30: memref<1x32x64xf32, #tpu.memory_space<vmem>>, %arg31: memref<1x1x64xf32, #tpu.memory_space<vmem>>, %arg32: memref<1x64x32xf32, #tpu.memory_space<vmem>>, %arg33: memref<1x1x32xf32, #tpu.memory_space<vmem>>, %arg34: memref<1x1x32xf32, #tpu.memory_space<vmem>>, %arg35: memref<1x1x32xf32, #tpu.memory_space<vmem>>, %arg36: memref<32x32xf32, #tpu.memory_space<vmem>>, %arg37: memref<1x32xf32, #tpu.memory_space<vmem>>, %arg38: memref<32x3xf32, #tpu.memory_space<vmem>>, %arg39: memref<1x3xf32, #tpu.memory_space<vmem>>, %arg40: memref<2x3xf32, #tpu.memory_space<vmem>>, %arg41: memref<48x32xf32, #tpu.memory_space<vmem>>) attributes {dimension_semantics = [#tpu.dimension_semantics<arbitrary>], iteration_bounds = array<i64: 1>, scalar_prefetch = 0 : i64, scratch_operands = 1 : i64, tpu.core_type = #tpu.core_type<tc>, window_params = [{pipeline_mode = #tpu.pipeline_mode<synchronous>, transform_indices = @transform_0, window_bounds = array<i64: 16, 32>}, {pipeline_mode = #tpu.pipeline_mode<synchronous>, transform_indices = @transform_1, window_bounds = array<i64: 32, 32>}, {pipeline_mode = #tpu.pipeline_mode<synchronous>, transform_indices = @transform_2, window_bounds = array<i64: 16, 1>}, {pipeline_mode = #tpu.pipeline_mode<synchronous>, transform_indices = @transform_3, window_bounds = array<i64: 1, 16>}, {pipeline_mode = #tpu.pipeline_mode<synchronous>, transform_indices = @transform_4, window_bounds = array<i64: 1, 16>}, {pipeline_mode = #tpu.pipeline_mode<synchronous>, transform_indices = @transform_5, window_bounds = array<i64: 16, 1>}, {pipeline_mode = #tpu.pipeline_mode<synchronous>, transform_indices = @transform_6, window_bounds = array<i64: 48, 1>}, {pipeline_mode = #tpu.pipeline_mode<synchronous>, transform_indices = @transform_7, window_bounds = array<i64: 1, 48>}, {pipeline_mode = #tpu.pipeline_mode<synchronous>, transform_indices = @transform_8, window_bounds = array<i64: 2, 48>}, {pipeline_mode = #tpu.pipeline_mode<synchronous>, transform_indices = @transform_9, window_bounds = array<i64: 1, 32>}, {pipeline_mode = #tpu.pipeline_mode<synchronous>, transform_indices = @transform_10, window_bounds = array<i64: 1, 32>}, {pipeline_mode = #tpu.pipeline_mode<synchronous>, transform_indices = @transform_11, window_bounds = array<i64: 2, 32, 96>}, {pipeline_mode = #tpu.pipeline_mode<synchronous>, transform_indices = @transform_12, window_bounds = array<i64: 2, 1, 96>}, {pipeline_mode = #tpu.pipeline_mode<synchronous>, transform_indices = @transform_13, window_bounds = array<i64: 2, 32, 32>}, {pipeline_mode = #tpu.pipeline_mode<synchronous>, transform_indices = @transform_14, window_bounds = array<i64: 2, 1, 32>}, {pipeline_mode = #tpu.pipeline_mode<synchronous>, transform_indices = @transform_15, window_bounds = array<i64: 2, 1, 32>}, {pipeline_mode = #tpu.pipeline_mode<synchronous>, transform_indices = @transform_16, window_bounds = array<i64: 2, 1, 32>}, {pipeline_mode = #tpu.pipeline_mode<synchronous>, transform_indices = @transform_17, window_bounds = array<i64: 2, 32, 64>}, {pipeline_mode = #tpu.pipeline_mode<synchronous>, transform_indices = @transform_18, window_bounds = array<i64: 2, 1, 64>}, {pipeline_mode = #tpu.pipeline_mode<synchronous>, transform_indices = @transform_19, window_bounds = array<i64: 2, 64, 32>}, {pipeline_mode = #tpu.pipeline_mode<synchronous>, transform_indices = @transform_20, window_bounds = array<i64: 2, 1, 32>}, {pipeline_mode = #tpu.pipeline_mode<synchronous>, transform_indices = @transform_21, window_bounds = array<i64: 2, 1, 32>}, {pipeline_mode = #tpu.pipeline_mode<synchronous>, transform_indices = @transform_22, window_bounds = array<i64: 2, 1, 32>}, {pipeline_mode = #tpu.pipeline_mode<synchronous>, transform_indices = @transform_23, window_bounds = array<i64: 1, 32, 96>}, {pipeline_mode = #tpu.pipeline_mode<synchronous>, transform_indices = @transform_24, window_bounds = array<i64: 1, 1, 96>}, {pipeline_mode = #tpu.pipeline_mode<synchronous>, transform_indices = @transform_25, window_bounds = array<i64: 1, 32, 32>}, {pipeline_mode = #tpu.pipeline_mode<synchronous>, transform_indices = @transform_26, window_bounds = array<i64: 1, 1, 32>}, {pipeline_mode = #tpu.pipeline_mode<synchronous>, transform_indices = @transform_27, window_bounds = array<i64: 1, 1, 32>}, {pipeline_mode = #tpu.pipeline_mode<synchronous>, transform_indices = @transform_28, window_bounds = array<i64: 1, 1, 32>}, {pipeline_mode = #tpu.pipeline_mode<synchronous>, transform_indices = @transform_29, window_bounds = array<i64: 1, 32, 64>}, {pipeline_mode = #tpu.pipeline_mode<synchronous>, transform_indices = @transform_30, window_bounds = array<i64: 1, 1, 64>}, {pipeline_mode = #tpu.pipeline_mode<synchronous>, transform_indices = @transform_31, window_bounds = array<i64: 1, 64, 32>}, {pipeline_mode = #tpu.pipeline_mode<synchronous>, transform_indices = @transform_32, window_bounds = array<i64: 1, 1, 32>}, {pipeline_mode = #tpu.pipeline_mode<synchronous>, transform_indices = @transform_33, window_bounds = array<i64: 1, 1, 32>}, {pipeline_mode = #tpu.pipeline_mode<synchronous>, transform_indices = @transform_34, window_bounds = array<i64: 1, 1, 32>}, {pipeline_mode = #tpu.pipeline_mode<synchronous>, transform_indices = @transform_35, window_bounds = array<i64: 32, 32>}, {pipeline_mode = #tpu.pipeline_mode<synchronous>, transform_indices = @transform_36, window_bounds = array<i64: 1, 32>}, {pipeline_mode = #tpu.pipeline_mode<synchronous>, transform_indices = @transform_37, window_bounds = array<i64: 32, 3>}, {pipeline_mode = #tpu.pipeline_mode<synchronous>, transform_indices = @transform_38, window_bounds = array<i64: 1, 3>}, {pipeline_mode = #tpu.pipeline_mode<synchronous>, transform_indices = @transform_39, window_bounds = array<i64: 2, 3>}]} {
    %c0 = arith.constant 0 : index
    %c0_0 = arith.constant 0 : index
    %0 = vector.load %arg3[%c0, %c0_0] : memref<16x1xf32, #tpu.memory_space<vmem>>, vector<16x1xf32>
    %c0_1 = arith.constant 0 : index
    %c0_2 = arith.constant 0 : index
    %1 = vector.load %arg4[%c0_1, %c0_2] : memref<1x16xf32, #tpu.memory_space<vmem>>, vector<1x16xf32>
    %2 = vector.broadcast %0 : vector<16x1xf32> to vector<16x16xf32>
    %3 = vector.broadcast %1 : vector<1x16xf32> to vector<16x16xf32>
    %4 = arith.cmpf oeq, %2, %3 : vector<16x16xf32>
    %cst = arith.constant 0.000000e+00 : f32
    %cst_3 = arith.constant -1.000000e+09 : f32
    %5 = vector.broadcast %cst : f32 to vector<16x16xf32>
    %6 = vector.broadcast %cst_3 : f32 to vector<16x16xf32>
    %7 = arith.select %4, %5, %6 : vector<16x16xi1>, vector<16x16xf32>
    %c0_4 = arith.constant 0 : index
    %c0_5 = arith.constant 0 : index
    %8 = vector.load %arg5[%c0_4, %c0_5] : memref<1x16xf32, #tpu.memory_space<vmem>>, vector<1x16xf32>
    %9 = vector.broadcast %8 : vector<1x16xf32> to vector<16x16xf32>
    %10 = arith.addf %7, %9 : vector<16x16xf32>
    %c0_6 = arith.constant 0 : index
    %c0_7 = arith.constant 0 : index
    %11 = vector.load %arg1[%c0_6, %c0_7] : memref<16x32xf32, #tpu.memory_space<vmem>>, vector<16x32xf32>
    %c0_8 = arith.constant 0 : index
    %c0_9 = arith.constant 0 : index
    %12 = vector.load %arg10[%c0_8, %c0_9] : memref<1x32xf32, #tpu.memory_space<vmem>>, vector<1x32xf32>
    %c0_10 = arith.constant 0 : index
    %c0_11 = arith.constant 0 : index
    %13 = vector.load %arg11[%c0_10, %c0_11] : memref<1x32xf32, #tpu.memory_space<vmem>>, vector<1x32xf32>
    %cst_12 = arith.constant dense<0.000000e+00> : vector<16xf32>
    %14 = vector.multi_reduction <add>, %11, %cst_12 [1] : vector<16x32xf32> to vector<16xf32>
    %15 = vector.shape_cast %14 : vector<16xf32> to vector<16x1xf32>
    %cst_13 = arith.constant 3.200000e+01 : f32
    %16 = vector.broadcast %cst_13 : f32 to vector<16x1xf32>
    %17 = arith.divf %15, %16 : vector<16x1xf32>
    %18 = vector.broadcast %17 : vector<16x1xf32> to vector<16x32xf32>
    %19 = arith.subf %11, %18 : vector<16x32xf32>
    %20 = arith.mulf %19, %19 : vector<16x32xf32>
    %cst_14 = arith.constant dense<0.000000e+00> : vector<16xf32>
    %21 = vector.multi_reduction <add>, %20, %cst_14 [1] : vector<16x32xf32> to vector<16xf32>
    %22 = vector.shape_cast %21 : vector<16xf32> to vector<16x1xf32>
    %cst_15 = arith.constant 3.200000e+01 : f32
    %23 = vector.broadcast %cst_15 : f32 to vector<16x1xf32>
    %24 = arith.divf %22, %23 : vector<16x1xf32>
    %cst_16 = arith.constant 9.99999996E-13 : f32
    %25 = vector.broadcast %cst_16 : f32 to vector<16x1xf32>
    %26 = arith.addf %24, %25 : vector<16x1xf32>
    %27 = math.rsqrt %26 : vector<16x1xf32>
    %28 = vector.broadcast %27 : vector<16x1xf32> to vector<16x32xf32>
    %29 = arith.mulf %19, %28 : vector<16x32xf32>
    %30 = vector.broadcast %12 : vector<1x32xf32> to vector<16x32xf32>
    %31 = arith.mulf %29, %30 : vector<16x32xf32>
    %32 = vector.broadcast %13 : vector<1x32xf32> to vector<16x32xf32>
    %33 = arith.addf %31, %32 : vector<16x32xf32>
    %c0_17 = arith.constant 0 : index
    %c0_18 = arith.constant 0 : index
    %c0_19 = arith.constant 0 : index
    %34 = vector.load %arg12[%c0_17, %c0_18, %c0_19] : memref<2x32x96xf32, #tpu.memory_space<vmem>>, vector<1x32x96xf32>
    %35 = vector.shape_cast %34 : vector<1x32x96xf32> to vector<32x96xf32>
    %cst_20 = arith.constant dense<0.000000e+00> : vector<16x96xf32>
    %36 = tpu.matmul %33, %35, %cst_20 {dimension_numbers = #tpu.dot_dimension_numbers<[1], [0], [0], [1], [0, 0, 1, 1], [], []>} : vector<16x32xf32>, vector<32x96xf32>, vector<16x96xf32> -> vector<16x96xf32>
    %c0_21 = arith.constant 0 : index
    %c0_22 = arith.constant 0 : index
    %c0_23 = arith.constant 0 : index
    %37 = vector.load %arg13[%c0_21, %c0_22, %c0_23] : memref<2x1x96xf32, #tpu.memory_space<vmem>>, vector<1x1x96xf32>
    %38 = vector.shape_cast %37 : vector<1x1x96xf32> to vector<1x96xf32>
    %39 = vector.broadcast %38 : vector<1x96xf32> to vector<16x96xf32>
    %40 = arith.addf %36, %39 : vector<16x96xf32>
    %41 = vector.extract_strided_slice %40 {offsets = [0, 0], sizes = [16, 16], strides = [1, 1]} : vector<16x96xf32> to vector<16x16xf32>
    %42 = vector.extract_strided_slice %40 {offsets = [0, 32], sizes = [16, 16], strides = [1, 1]} : vector<16x96xf32> to vector<16x16xf32>
    %43 = vector.extract_strided_slice %40 {offsets = [0, 64], sizes = [16, 16], strides = [1, 1]} : vector<16x96xf32> to vector<16x16xf32>
    %cst_24 = arith.constant dense<0.000000e+00> : vector<16x16xf32>
    %44 = tpu.matmul %41, %42, %cst_24 {dimension_numbers = #tpu.dot_dimension_numbers<[1], [1], [0], [0], [0, 0, 1, 0], [], []>} : vector<16x16xf32>, vector<16x16xf32>, vector<16x16xf32> -> vector<16x16xf32>
    %cst_25 = arith.constant 2.500000e-01 : f32
    %45 = vector.broadcast %cst_25 : f32 to vector<16x16xf32>
    %46 = arith.mulf %44, %45 : vector<16x16xf32>
    %47 = arith.addf %46, %10 : vector<16x16xf32>
    %cst_26 = arith.constant dense<0xFF800000> : vector<16xf32>
    %48 = vector.multi_reduction <maximumf>, %47, %cst_26 [1] : vector<16x16xf32> to vector<16xf32>
    %49 = vector.shape_cast %48 : vector<16xf32> to vector<16x1xf32>
    %50 = vector.broadcast %49 : vector<16x1xf32> to vector<16x16xf32>
    %51 = arith.subf %47, %50 : vector<16x16xf32>
    %52 = math.exp %51 : vector<16x16xf32>
    %cst_27 = arith.constant dense<0.000000e+00> : vector<16xf32>
    %53 = vector.multi_reduction <add>, %52, %cst_27 [1] : vector<16x16xf32> to vector<16xf32>
    %54 = vector.shape_cast %53 : vector<16xf32> to vector<16x1xf32>
    %55 = tpu.reciprocal %54 {approx = true} : vector<16x1xf32> -> vector<16x1xf32>
    %56 = vector.broadcast %55 : vector<16x1xf32> to vector<16x16xf32>
    %57 = arith.mulf %52, %56 : vector<16x16xf32>
    %cst_28 = arith.constant dense<0.000000e+00> : vector<16x16xf32>
    %58 = tpu.matmul %57, %43, %cst_28 {dimension_numbers = #tpu.dot_dimension_numbers<[1], [0], [0], [1], [0, 0, 1, 1], [], []>} : vector<16x16xf32>, vector<16x16xf32>, vector<16x16xf32> -> vector<16x16xf32>
    %59 = vector.extract_strided_slice %40 {offsets = [0, 16], sizes = [16, 16], strides = [1, 1]} : vector<16x96xf32> to vector<16x16xf32>
    %60 = vector.extract_strided_slice %40 {offsets = [0, 48], sizes = [16, 16], strides = [1, 1]} : vector<16x96xf32> to vector<16x16xf32>
    %61 = vector.extract_strided_slice %40 {offsets = [0, 80], sizes = [16, 16], strides = [1, 1]} : vector<16x96xf32> to vector<16x16xf32>
    %cst_29 = arith.constant dense<0.000000e+00> : vector<16x16xf32>
    %62 = tpu.matmul %59, %60, %cst_29 {dimension_numbers = #tpu.dot_dimension_numbers<[1], [1], [0], [0], [0, 0, 1, 0], [], []>} : vector<16x16xf32>, vector<16x16xf32>, vector<16x16xf32> -> vector<16x16xf32>
    %cst_30 = arith.constant 2.500000e-01 : f32
    %63 = vector.broadcast %cst_30 : f32 to vector<16x16xf32>
    %64 = arith.mulf %62, %63 : vector<16x16xf32>
    %65 = arith.addf %64, %10 : vector<16x16xf32>
    %cst_31 = arith.constant dense<0xFF800000> : vector<16xf32>
    %66 = vector.multi_reduction <maximumf>, %65, %cst_31 [1] : vector<16x16xf32> to vector<16xf32>
    %67 = vector.shape_cast %66 : vector<16xf32> to vector<16x1xf32>
    %68 = vector.broadcast %67 : vector<16x1xf32> to vector<16x16xf32>
    %69 = arith.subf %65, %68 : vector<16x16xf32>
    %70 = math.exp %69 : vector<16x16xf32>
    %cst_32 = arith.constant dense<0.000000e+00> : vector<16xf32>
    %71 = vector.multi_reduction <add>, %70, %cst_32 [1] : vector<16x16xf32> to vector<16xf32>
    %72 = vector.shape_cast %71 : vector<16xf32> to vector<16x1xf32>
    %73 = tpu.reciprocal %72 {approx = true} : vector<16x1xf32> -> vector<16x1xf32>
    %74 = vector.broadcast %73 : vector<16x1xf32> to vector<16x16xf32>
    %75 = arith.mulf %70, %74 : vector<16x16xf32>
    %cst_33 = arith.constant dense<0.000000e+00> : vector<16x16xf32>
    %76 = tpu.matmul %75, %61, %cst_33 {dimension_numbers = #tpu.dot_dimension_numbers<[1], [0], [0], [1], [0, 0, 1, 1], [], []>} : vector<16x16xf32>, vector<16x16xf32>, vector<16x16xf32> -> vector<16x16xf32>
    %77 = tpu.concatenate %58, %76 in 1 : vector<16x16xf32>, vector<16x16xf32> -> vector<16x32xf32>
    %c0_34 = arith.constant 0 : index
    %c0_35 = arith.constant 0 : index
    %c0_36 = arith.constant 0 : index
    %78 = vector.load %arg14[%c0_34, %c0_35, %c0_36] : memref<2x32x32xf32, #tpu.memory_space<vmem>>, vector<1x32x32xf32>
    %79 = vector.shape_cast %78 : vector<1x32x32xf32> to vector<32x32xf32>
    %cst_37 = arith.constant dense<0.000000e+00> : vector<16x32xf32>
    %80 = tpu.matmul %77, %79, %cst_37 {dimension_numbers = #tpu.dot_dimension_numbers<[1], [0], [0], [1], [0, 0, 1, 1], [], []>} : vector<16x32xf32>, vector<32x32xf32>, vector<16x32xf32> -> vector<16x32xf32>
    %c0_38 = arith.constant 0 : index
    %c0_39 = arith.constant 0 : index
    %c0_40 = arith.constant 0 : index
    %81 = vector.load %arg15[%c0_38, %c0_39, %c0_40] : memref<2x1x32xf32, #tpu.memory_space<vmem>>, vector<1x1x32xf32>
    %82 = vector.shape_cast %81 : vector<1x1x32xf32> to vector<1x32xf32>
    %83 = vector.broadcast %82 : vector<1x32xf32> to vector<16x32xf32>
    %84 = arith.addf %80, %83 : vector<16x32xf32>
    %85 = arith.addf %33, %84 : vector<16x32xf32>
    %c0_41 = arith.constant 0 : index
    %c0_42 = arith.constant 0 : index
    %c0_43 = arith.constant 0 : index
    %86 = vector.load %arg16[%c0_41, %c0_42, %c0_43] : memref<2x1x32xf32, #tpu.memory_space<vmem>>, vector<1x1x32xf32>
    %87 = vector.shape_cast %86 : vector<1x1x32xf32> to vector<1x32xf32>
    %c0_44 = arith.constant 0 : index
    %c0_45 = arith.constant 0 : index
    %c0_46 = arith.constant 0 : index
    %88 = vector.load %arg17[%c0_44, %c0_45, %c0_46] : memref<2x1x32xf32, #tpu.memory_space<vmem>>, vector<1x1x32xf32>
    %89 = vector.shape_cast %88 : vector<1x1x32xf32> to vector<1x32xf32>
    %cst_47 = arith.constant dense<0.000000e+00> : vector<16xf32>
    %90 = vector.multi_reduction <add>, %85, %cst_47 [1] : vector<16x32xf32> to vector<16xf32>
    %91 = vector.shape_cast %90 : vector<16xf32> to vector<16x1xf32>
    %cst_48 = arith.constant 3.200000e+01 : f32
    %92 = vector.broadcast %cst_48 : f32 to vector<16x1xf32>
    %93 = arith.divf %91, %92 : vector<16x1xf32>
    %94 = vector.broadcast %93 : vector<16x1xf32> to vector<16x32xf32>
    %95 = arith.subf %85, %94 : vector<16x32xf32>
    %96 = arith.mulf %95, %95 : vector<16x32xf32>
    %cst_49 = arith.constant dense<0.000000e+00> : vector<16xf32>
    %97 = vector.multi_reduction <add>, %96, %cst_49 [1] : vector<16x32xf32> to vector<16xf32>
    %98 = vector.shape_cast %97 : vector<16xf32> to vector<16x1xf32>
    %cst_50 = arith.constant 3.200000e+01 : f32
    %99 = vector.broadcast %cst_50 : f32 to vector<16x1xf32>
    %100 = arith.divf %98, %99 : vector<16x1xf32>
    %cst_51 = arith.constant 9.99999996E-13 : f32
    %101 = vector.broadcast %cst_51 : f32 to vector<16x1xf32>
    %102 = arith.addf %100, %101 : vector<16x1xf32>
    %103 = math.rsqrt %102 : vector<16x1xf32>
    %104 = vector.broadcast %103 : vector<16x1xf32> to vector<16x32xf32>
    %105 = arith.mulf %95, %104 : vector<16x32xf32>
    %106 = vector.broadcast %87 : vector<1x32xf32> to vector<16x32xf32>
    %107 = arith.mulf %105, %106 : vector<16x32xf32>
    %108 = vector.broadcast %89 : vector<1x32xf32> to vector<16x32xf32>
    %109 = arith.addf %107, %108 : vector<16x32xf32>
    %c0_52 = arith.constant 0 : index
    %c0_53 = arith.constant 0 : index
    %c0_54 = arith.constant 0 : index
    %110 = vector.load %arg18[%c0_52, %c0_53, %c0_54] : memref<2x32x64xf32, #tpu.memory_space<vmem>>, vector<1x32x64xf32>
    %111 = vector.shape_cast %110 : vector<1x32x64xf32> to vector<32x64xf32>
    %cst_55 = arith.constant dense<0.000000e+00> : vector<16x64xf32>
    %112 = tpu.matmul %109, %111, %cst_55 {dimension_numbers = #tpu.dot_dimension_numbers<[1], [0], [0], [1], [0, 0, 1, 1], [], []>} : vector<16x32xf32>, vector<32x64xf32>, vector<16x64xf32> -> vector<16x64xf32>
    %c0_56 = arith.constant 0 : index
    %c0_57 = arith.constant 0 : index
    %c0_58 = arith.constant 0 : index
    %113 = vector.load %arg19[%c0_56, %c0_57, %c0_58] : memref<2x1x64xf32, #tpu.memory_space<vmem>>, vector<1x1x64xf32>
    %114 = vector.shape_cast %113 : vector<1x1x64xf32> to vector<1x64xf32>
    %115 = vector.broadcast %114 : vector<1x64xf32> to vector<16x64xf32>
    %116 = arith.addf %112, %115 : vector<16x64xf32>
    %117 = arith.mulf %116, %116 : vector<16x64xf32>
    %118 = arith.mulf %116, %117 : vector<16x64xf32>
    %cst_59 = arith.constant 4.471500e-02 : f32
    %119 = vector.broadcast %cst_59 : f32 to vector<16x64xf32>
    %120 = arith.mulf %119, %118 : vector<16x64xf32>
    %121 = arith.addf %116, %120 : vector<16x64xf32>
    %cst_60 = arith.constant 0.797884583 : f32
    %122 = vector.broadcast %cst_60 : f32 to vector<16x64xf32>
    %123 = arith.mulf %122, %121 : vector<16x64xf32>
    %124 = math.tanh %123 : vector<16x64xf32>
    %cst_61 = arith.constant 1.000000e+00 : f32
    %125 = vector.broadcast %cst_61 : f32 to vector<16x64xf32>
    %126 = arith.addf %125, %124 : vector<16x64xf32>
    %cst_62 = arith.constant 5.000000e-01 : f32
    %127 = vector.broadcast %cst_62 : f32 to vector<16x64xf32>
    %128 = arith.mulf %127, %126 : vector<16x64xf32>
    %129 = arith.mulf %116, %128 : vector<16x64xf32>
    %c0_63 = arith.constant 0 : index
    %c0_64 = arith.constant 0 : index
    %c0_65 = arith.constant 0 : index
    %130 = vector.load %arg20[%c0_63, %c0_64, %c0_65] : memref<2x64x32xf32, #tpu.memory_space<vmem>>, vector<1x64x32xf32>
    %131 = vector.shape_cast %130 : vector<1x64x32xf32> to vector<64x32xf32>
    %cst_66 = arith.constant dense<0.000000e+00> : vector<16x32xf32>
    %132 = tpu.matmul %129, %131, %cst_66 {dimension_numbers = #tpu.dot_dimension_numbers<[1], [0], [0], [1], [0, 0, 1, 1], [], []>} : vector<16x64xf32>, vector<64x32xf32>, vector<16x32xf32> -> vector<16x32xf32>
    %c0_67 = arith.constant 0 : index
    %c0_68 = arith.constant 0 : index
    %c0_69 = arith.constant 0 : index
    %133 = vector.load %arg21[%c0_67, %c0_68, %c0_69] : memref<2x1x32xf32, #tpu.memory_space<vmem>>, vector<1x1x32xf32>
    %134 = vector.shape_cast %133 : vector<1x1x32xf32> to vector<1x32xf32>
    %135 = vector.broadcast %134 : vector<1x32xf32> to vector<16x32xf32>
    %136 = arith.addf %132, %135 : vector<16x32xf32>
    %137 = arith.addf %109, %136 : vector<16x32xf32>
    %c0_70 = arith.constant 0 : index
    %c0_71 = arith.constant 0 : index
    %c0_72 = arith.constant 0 : index
    %138 = vector.load %arg22[%c0_70, %c0_71, %c0_72] : memref<2x1x32xf32, #tpu.memory_space<vmem>>, vector<1x1x32xf32>
    %139 = vector.shape_cast %138 : vector<1x1x32xf32> to vector<1x32xf32>
    %c0_73 = arith.constant 0 : index
    %c0_74 = arith.constant 0 : index
    %c0_75 = arith.constant 0 : index
    %140 = vector.load %arg23[%c0_73, %c0_74, %c0_75] : memref<2x1x32xf32, #tpu.memory_space<vmem>>, vector<1x1x32xf32>
    %141 = vector.shape_cast %140 : vector<1x1x32xf32> to vector<1x32xf32>
    %cst_76 = arith.constant dense<0.000000e+00> : vector<16xf32>
    %142 = vector.multi_reduction <add>, %137, %cst_76 [1] : vector<16x32xf32> to vector<16xf32>
    %143 = vector.shape_cast %142 : vector<16xf32> to vector<16x1xf32>
    %cst_77 = arith.constant 3.200000e+01 : f32
    %144 = vector.broadcast %cst_77 : f32 to vector<16x1xf32>
    %145 = arith.divf %143, %144 : vector<16x1xf32>
    %146 = vector.broadcast %145 : vector<16x1xf32> to vector<16x32xf32>
    %147 = arith.subf %137, %146 : vector<16x32xf32>
    %148 = arith.mulf %147, %147 : vector<16x32xf32>
    %cst_78 = arith.constant dense<0.000000e+00> : vector<16xf32>
    %149 = vector.multi_reduction <add>, %148, %cst_78 [1] : vector<16x32xf32> to vector<16xf32>
    %150 = vector.shape_cast %149 : vector<16xf32> to vector<16x1xf32>
    %cst_79 = arith.constant 3.200000e+01 : f32
    %151 = vector.broadcast %cst_79 : f32 to vector<16x1xf32>
    %152 = arith.divf %150, %151 : vector<16x1xf32>
    %cst_80 = arith.constant 9.99999996E-13 : f32
    %153 = vector.broadcast %cst_80 : f32 to vector<16x1xf32>
    %154 = arith.addf %152, %153 : vector<16x1xf32>
    %155 = math.rsqrt %154 : vector<16x1xf32>
    %156 = vector.broadcast %155 : vector<16x1xf32> to vector<16x32xf32>
    %157 = arith.mulf %147, %156 : vector<16x32xf32>
    %158 = vector.broadcast %139 : vector<1x32xf32> to vector<16x32xf32>
    %159 = arith.mulf %157, %158 : vector<16x32xf32>
    %160 = vector.broadcast %141 : vector<1x32xf32> to vector<16x32xf32>
    %161 = arith.addf %159, %160 : vector<16x32xf32>
    %c1 = arith.constant 1 : index
    %c0_81 = arith.constant 0 : index
    %c0_82 = arith.constant 0 : index
    %162 = vector.load %arg12[%c1, %c0_81, %c0_82] : memref<2x32x96xf32, #tpu.memory_space<vmem>>, vector<1x32x96xf32>
    %163 = vector.shape_cast %162 : vector<1x32x96xf32> to vector<32x96xf32>
    %cst_83 = arith.constant dense<0.000000e+00> : vector<16x96xf32>
    %164 = tpu.matmul %161, %163, %cst_83 {dimension_numbers = #tpu.dot_dimension_numbers<[1], [0], [0], [1], [0, 0, 1, 1], [], []>} : vector<16x32xf32>, vector<32x96xf32>, vector<16x96xf32> -> vector<16x96xf32>
    %c1_84 = arith.constant 1 : index
    %c0_85 = arith.constant 0 : index
    %c0_86 = arith.constant 0 : index
    %165 = vector.load %arg13[%c1_84, %c0_85, %c0_86] : memref<2x1x96xf32, #tpu.memory_space<vmem>>, vector<1x1x96xf32>
    %166 = vector.shape_cast %165 : vector<1x1x96xf32> to vector<1x96xf32>
    %167 = vector.broadcast %166 : vector<1x96xf32> to vector<16x96xf32>
    %168 = arith.addf %164, %167 : vector<16x96xf32>
    %169 = vector.extract_strided_slice %168 {offsets = [0, 0], sizes = [16, 16], strides = [1, 1]} : vector<16x96xf32> to vector<16x16xf32>
    %170 = vector.extract_strided_slice %168 {offsets = [0, 32], sizes = [16, 16], strides = [1, 1]} : vector<16x96xf32> to vector<16x16xf32>
    %171 = vector.extract_strided_slice %168 {offsets = [0, 64], sizes = [16, 16], strides = [1, 1]} : vector<16x96xf32> to vector<16x16xf32>
    %cst_87 = arith.constant dense<0.000000e+00> : vector<16x16xf32>
    %172 = tpu.matmul %169, %170, %cst_87 {dimension_numbers = #tpu.dot_dimension_numbers<[1], [1], [0], [0], [0, 0, 1, 0], [], []>} : vector<16x16xf32>, vector<16x16xf32>, vector<16x16xf32> -> vector<16x16xf32>
    %cst_88 = arith.constant 2.500000e-01 : f32
    %173 = vector.broadcast %cst_88 : f32 to vector<16x16xf32>
    %174 = arith.mulf %172, %173 : vector<16x16xf32>
    %175 = arith.addf %174, %10 : vector<16x16xf32>
    %cst_89 = arith.constant dense<0xFF800000> : vector<16xf32>
    %176 = vector.multi_reduction <maximumf>, %175, %cst_89 [1] : vector<16x16xf32> to vector<16xf32>
    %177 = vector.shape_cast %176 : vector<16xf32> to vector<16x1xf32>
    %178 = vector.broadcast %177 : vector<16x1xf32> to vector<16x16xf32>
    %179 = arith.subf %175, %178 : vector<16x16xf32>
    %180 = math.exp %179 : vector<16x16xf32>
    %cst_90 = arith.constant dense<0.000000e+00> : vector<16xf32>
    %181 = vector.multi_reduction <add>, %180, %cst_90 [1] : vector<16x16xf32> to vector<16xf32>
    %182 = vector.shape_cast %181 : vector<16xf32> to vector<16x1xf32>
    %183 = tpu.reciprocal %182 {approx = true} : vector<16x1xf32> -> vector<16x1xf32>
    %184 = vector.broadcast %183 : vector<16x1xf32> to vector<16x16xf32>
    %185 = arith.mulf %180, %184 : vector<16x16xf32>
    %cst_91 = arith.constant dense<0.000000e+00> : vector<16x16xf32>
    %186 = tpu.matmul %185, %171, %cst_91 {dimension_numbers = #tpu.dot_dimension_numbers<[1], [0], [0], [1], [0, 0, 1, 1], [], []>} : vector<16x16xf32>, vector<16x16xf32>, vector<16x16xf32> -> vector<16x16xf32>
    %187 = vector.extract_strided_slice %168 {offsets = [0, 16], sizes = [16, 16], strides = [1, 1]} : vector<16x96xf32> to vector<16x16xf32>
    %188 = vector.extract_strided_slice %168 {offsets = [0, 48], sizes = [16, 16], strides = [1, 1]} : vector<16x96xf32> to vector<16x16xf32>
    %189 = vector.extract_strided_slice %168 {offsets = [0, 80], sizes = [16, 16], strides = [1, 1]} : vector<16x96xf32> to vector<16x16xf32>
    %cst_92 = arith.constant dense<0.000000e+00> : vector<16x16xf32>
    %190 = tpu.matmul %187, %188, %cst_92 {dimension_numbers = #tpu.dot_dimension_numbers<[1], [1], [0], [0], [0, 0, 1, 0], [], []>} : vector<16x16xf32>, vector<16x16xf32>, vector<16x16xf32> -> vector<16x16xf32>
    %cst_93 = arith.constant 2.500000e-01 : f32
    %191 = vector.broadcast %cst_93 : f32 to vector<16x16xf32>
    %192 = arith.mulf %190, %191 : vector<16x16xf32>
    %193 = arith.addf %192, %10 : vector<16x16xf32>
    %cst_94 = arith.constant dense<0xFF800000> : vector<16xf32>
    %194 = vector.multi_reduction <maximumf>, %193, %cst_94 [1] : vector<16x16xf32> to vector<16xf32>
    %195 = vector.shape_cast %194 : vector<16xf32> to vector<16x1xf32>
    %196 = vector.broadcast %195 : vector<16x1xf32> to vector<16x16xf32>
    %197 = arith.subf %193, %196 : vector<16x16xf32>
    %198 = math.exp %197 : vector<16x16xf32>
    %cst_95 = arith.constant dense<0.000000e+00> : vector<16xf32>
    %199 = vector.multi_reduction <add>, %198, %cst_95 [1] : vector<16x16xf32> to vector<16xf32>
    %200 = vector.shape_cast %199 : vector<16xf32> to vector<16x1xf32>
    %201 = tpu.reciprocal %200 {approx = true} : vector<16x1xf32> -> vector<16x1xf32>
    %202 = vector.broadcast %201 : vector<16x1xf32> to vector<16x16xf32>
    %203 = arith.mulf %198, %202 : vector<16x16xf32>
    %cst_96 = arith.constant dense<0.000000e+00> : vector<16x16xf32>
    %204 = tpu.matmul %203, %189, %cst_96 {dimension_numbers = #tpu.dot_dimension_numbers<[1], [0], [0], [1], [0, 0, 1, 1], [], []>} : vector<16x16xf32>, vector<16x16xf32>, vector<16x16xf32> -> vector<16x16xf32>
    %205 = tpu.concatenate %186, %204 in 1 : vector<16x16xf32>, vector<16x16xf32> -> vector<16x32xf32>
    %c1_97 = arith.constant 1 : index
    %c0_98 = arith.constant 0 : index
    %c0_99 = arith.constant 0 : index
    %206 = vector.load %arg14[%c1_97, %c0_98, %c0_99] : memref<2x32x32xf32, #tpu.memory_space<vmem>>, vector<1x32x32xf32>
    %207 = vector.shape_cast %206 : vector<1x32x32xf32> to vector<32x32xf32>
    %cst_100 = arith.constant dense<0.000000e+00> : vector<16x32xf32>
    %208 = tpu.matmul %205, %207, %cst_100 {dimension_numbers = #tpu.dot_dimension_numbers<[1], [0], [0], [1], [0, 0, 1, 1], [], []>} : vector<16x32xf32>, vector<32x32xf32>, vector<16x32xf32> -> vector<16x32xf32>
    %c1_101 = arith.constant 1 : index
    %c0_102 = arith.constant 0 : index
    %c0_103 = arith.constant 0 : index
    %209 = vector.load %arg15[%c1_101, %c0_102, %c0_103] : memref<2x1x32xf32, #tpu.memory_space<vmem>>, vector<1x1x32xf32>
    %210 = vector.shape_cast %209 : vector<1x1x32xf32> to vector<1x32xf32>
    %211 = vector.broadcast %210 : vector<1x32xf32> to vector<16x32xf32>
    %212 = arith.addf %208, %211 : vector<16x32xf32>
    %213 = arith.addf %161, %212 : vector<16x32xf32>
    %c1_104 = arith.constant 1 : index
    %c0_105 = arith.constant 0 : index
    %c0_106 = arith.constant 0 : index
    %214 = vector.load %arg16[%c1_104, %c0_105, %c0_106] : memref<2x1x32xf32, #tpu.memory_space<vmem>>, vector<1x1x32xf32>
    %215 = vector.shape_cast %214 : vector<1x1x32xf32> to vector<1x32xf32>
    %c1_107 = arith.constant 1 : index
    %c0_108 = arith.constant 0 : index
    %c0_109 = arith.constant 0 : index
    %216 = vector.load %arg17[%c1_107, %c0_108, %c0_109] : memref<2x1x32xf32, #tpu.memory_space<vmem>>, vector<1x1x32xf32>
    %217 = vector.shape_cast %216 : vector<1x1x32xf32> to vector<1x32xf32>
    %cst_110 = arith.constant dense<0.000000e+00> : vector<16xf32>
    %218 = vector.multi_reduction <add>, %213, %cst_110 [1] : vector<16x32xf32> to vector<16xf32>
    %219 = vector.shape_cast %218 : vector<16xf32> to vector<16x1xf32>
    %cst_111 = arith.constant 3.200000e+01 : f32
    %220 = vector.broadcast %cst_111 : f32 to vector<16x1xf32>
    %221 = arith.divf %219, %220 : vector<16x1xf32>
    %222 = vector.broadcast %221 : vector<16x1xf32> to vector<16x32xf32>
    %223 = arith.subf %213, %222 : vector<16x32xf32>
    %224 = arith.mulf %223, %223 : vector<16x32xf32>
    %cst_112 = arith.constant dense<0.000000e+00> : vector<16xf32>
    %225 = vector.multi_reduction <add>, %224, %cst_112 [1] : vector<16x32xf32> to vector<16xf32>
    %226 = vector.shape_cast %225 : vector<16xf32> to vector<16x1xf32>
    %cst_113 = arith.constant 3.200000e+01 : f32
    %227 = vector.broadcast %cst_113 : f32 to vector<16x1xf32>
    %228 = arith.divf %226, %227 : vector<16x1xf32>
    %cst_114 = arith.constant 9.99999996E-13 : f32
    %229 = vector.broadcast %cst_114 : f32 to vector<16x1xf32>
    %230 = arith.addf %228, %229 : vector<16x1xf32>
    %231 = math.rsqrt %230 : vector<16x1xf32>
    %232 = vector.broadcast %231 : vector<16x1xf32> to vector<16x32xf32>
    %233 = arith.mulf %223, %232 : vector<16x32xf32>
    %234 = vector.broadcast %215 : vector<1x32xf32> to vector<16x32xf32>
    %235 = arith.mulf %233, %234 : vector<16x32xf32>
    %236 = vector.broadcast %217 : vector<1x32xf32> to vector<16x32xf32>
    %237 = arith.addf %235, %236 : vector<16x32xf32>
    %c1_115 = arith.constant 1 : index
    %c0_116 = arith.constant 0 : index
    %c0_117 = arith.constant 0 : index
    %238 = vector.load %arg18[%c1_115, %c0_116, %c0_117] : memref<2x32x64xf32, #tpu.memory_space<vmem>>, vector<1x32x64xf32>
    %239 = vector.shape_cast %238 : vector<1x32x64xf32> to vector<32x64xf32>
    %cst_118 = arith.constant dense<0.000000e+00> : vector<16x64xf32>
    %240 = tpu.matmul %237, %239, %cst_118 {dimension_numbers = #tpu.dot_dimension_numbers<[1], [0], [0], [1], [0, 0, 1, 1], [], []>} : vector<16x32xf32>, vector<32x64xf32>, vector<16x64xf32> -> vector<16x64xf32>
    %c1_119 = arith.constant 1 : index
    %c0_120 = arith.constant 0 : index
    %c0_121 = arith.constant 0 : index
    %241 = vector.load %arg19[%c1_119, %c0_120, %c0_121] : memref<2x1x64xf32, #tpu.memory_space<vmem>>, vector<1x1x64xf32>
    %242 = vector.shape_cast %241 : vector<1x1x64xf32> to vector<1x64xf32>
    %243 = vector.broadcast %242 : vector<1x64xf32> to vector<16x64xf32>
    %244 = arith.addf %240, %243 : vector<16x64xf32>
    %245 = arith.mulf %244, %244 : vector<16x64xf32>
    %246 = arith.mulf %244, %245 : vector<16x64xf32>
    %cst_122 = arith.constant 4.471500e-02 : f32
    %247 = vector.broadcast %cst_122 : f32 to vector<16x64xf32>
    %248 = arith.mulf %247, %246 : vector<16x64xf32>
    %249 = arith.addf %244, %248 : vector<16x64xf32>
    %cst_123 = arith.constant 0.797884583 : f32
    %250 = vector.broadcast %cst_123 : f32 to vector<16x64xf32>
    %251 = arith.mulf %250, %249 : vector<16x64xf32>
    %252 = math.tanh %251 : vector<16x64xf32>
    %cst_124 = arith.constant 1.000000e+00 : f32
    %253 = vector.broadcast %cst_124 : f32 to vector<16x64xf32>
    %254 = arith.addf %253, %252 : vector<16x64xf32>
    %cst_125 = arith.constant 5.000000e-01 : f32
    %255 = vector.broadcast %cst_125 : f32 to vector<16x64xf32>
    %256 = arith.mulf %255, %254 : vector<16x64xf32>
    %257 = arith.mulf %244, %256 : vector<16x64xf32>
    %c1_126 = arith.constant 1 : index
    %c0_127 = arith.constant 0 : index
    %c0_128 = arith.constant 0 : index
    %258 = vector.load %arg20[%c1_126, %c0_127, %c0_128] : memref<2x64x32xf32, #tpu.memory_space<vmem>>, vector<1x64x32xf32>
    %259 = vector.shape_cast %258 : vector<1x64x32xf32> to vector<64x32xf32>
    %cst_129 = arith.constant dense<0.000000e+00> : vector<16x32xf32>
    %260 = tpu.matmul %257, %259, %cst_129 {dimension_numbers = #tpu.dot_dimension_numbers<[1], [0], [0], [1], [0, 0, 1, 1], [], []>} : vector<16x64xf32>, vector<64x32xf32>, vector<16x32xf32> -> vector<16x32xf32>
    %c1_130 = arith.constant 1 : index
    %c0_131 = arith.constant 0 : index
    %c0_132 = arith.constant 0 : index
    %261 = vector.load %arg21[%c1_130, %c0_131, %c0_132] : memref<2x1x32xf32, #tpu.memory_space<vmem>>, vector<1x1x32xf32>
    %262 = vector.shape_cast %261 : vector<1x1x32xf32> to vector<1x32xf32>
    %263 = vector.broadcast %262 : vector<1x32xf32> to vector<16x32xf32>
    %264 = arith.addf %260, %263 : vector<16x32xf32>
    %265 = arith.addf %237, %264 : vector<16x32xf32>
    %c1_133 = arith.constant 1 : index
    %c0_134 = arith.constant 0 : index
    %c0_135 = arith.constant 0 : index
    %266 = vector.load %arg22[%c1_133, %c0_134, %c0_135] : memref<2x1x32xf32, #tpu.memory_space<vmem>>, vector<1x1x32xf32>
    %267 = vector.shape_cast %266 : vector<1x1x32xf32> to vector<1x32xf32>
    %c1_136 = arith.constant 1 : index
    %c0_137 = arith.constant 0 : index
    %c0_138 = arith.constant 0 : index
    %268 = vector.load %arg23[%c1_136, %c0_137, %c0_138] : memref<2x1x32xf32, #tpu.memory_space<vmem>>, vector<1x1x32xf32>
    %269 = vector.shape_cast %268 : vector<1x1x32xf32> to vector<1x32xf32>
    %cst_139 = arith.constant dense<0.000000e+00> : vector<16xf32>
    %270 = vector.multi_reduction <add>, %265, %cst_139 [1] : vector<16x32xf32> to vector<16xf32>
    %271 = vector.shape_cast %270 : vector<16xf32> to vector<16x1xf32>
    %cst_140 = arith.constant 3.200000e+01 : f32
    %272 = vector.broadcast %cst_140 : f32 to vector<16x1xf32>
    %273 = arith.divf %271, %272 : vector<16x1xf32>
    %274 = vector.broadcast %273 : vector<16x1xf32> to vector<16x32xf32>
    %275 = arith.subf %265, %274 : vector<16x32xf32>
    %276 = arith.mulf %275, %275 : vector<16x32xf32>
    %cst_141 = arith.constant dense<0.000000e+00> : vector<16xf32>
    %277 = vector.multi_reduction <add>, %276, %cst_141 [1] : vector<16x32xf32> to vector<16xf32>
    %278 = vector.shape_cast %277 : vector<16xf32> to vector<16x1xf32>
    %cst_142 = arith.constant 3.200000e+01 : f32
    %279 = vector.broadcast %cst_142 : f32 to vector<16x1xf32>
    %280 = arith.divf %278, %279 : vector<16x1xf32>
    %cst_143 = arith.constant 9.99999996E-13 : f32
    %281 = vector.broadcast %cst_143 : f32 to vector<16x1xf32>
    %282 = arith.addf %280, %281 : vector<16x1xf32>
    %283 = math.rsqrt %282 : vector<16x1xf32>
    %284 = vector.broadcast %283 : vector<16x1xf32> to vector<16x32xf32>
    %285 = arith.mulf %275, %284 : vector<16x32xf32>
    %286 = vector.broadcast %267 : vector<1x32xf32> to vector<16x32xf32>
    %287 = arith.mulf %285, %286 : vector<16x32xf32>
    %288 = vector.broadcast %269 : vector<1x32xf32> to vector<16x32xf32>
    %289 = arith.addf %287, %288 : vector<16x32xf32>
    %290 = arith.mulf %289, %289 : vector<16x32xf32>
    %cst_144 = arith.constant dense<0.000000e+00> : vector<16xf32>
    %291 = vector.multi_reduction <add>, %290, %cst_144 [1] : vector<16x32xf32> to vector<16xf32>
    %292 = vector.shape_cast %291 : vector<16xf32> to vector<16x1xf32>
    %cst_145 = arith.constant 1.000000e-24 : f32
    %293 = vector.broadcast %cst_145 : f32 to vector<16x1xf32>
    %294 = arith.maximumf %292, %293 : vector<16x1xf32>
    %295 = math.rsqrt %294 : vector<16x1xf32>
    %296 = vector.broadcast %295 : vector<16x1xf32> to vector<16x32xf32>
    %297 = arith.mulf %289, %296 : vector<16x32xf32>
    %c0_146 = arith.constant 0 : index
    %c0_147 = arith.constant 0 : index
    %298 = vector.load %arg6[%c0_146, %c0_147] : memref<16x1xf32, #tpu.memory_space<vmem>>, vector<16x1xf32>
    %299 = vector.broadcast %298 : vector<16x1xf32> to vector<16x32xf32>
    %300 = arith.mulf %297, %299 : vector<16x32xf32>
    %c0_148 = arith.constant 0 : index
    %c0_149 = arith.constant 0 : index
    %301 = vector.load %arg2[%c0_148, %c0_149] : memref<32x32xf32, #tpu.memory_space<vmem>>, vector<32x32xf32>
    %c0_150 = arith.constant 0 : index
    %c0_151 = arith.constant 0 : index
    %302 = vector.load %arg41[%c0_150, %c0_151] : memref<48x32xf32, #tpu.memory_space<vmem>>, vector<32x32xf32>
    tpu.vector_store %arg41[%c0_150, %c0_151], %301 {strides = array<i32>} : memref<48x32xf32, #tpu.memory_space<vmem>>, vector<32x32xf32>,
    %c32 = arith.constant 32 : index
    %c0_152 = arith.constant 0 : index
    %303 = vector.load %arg41[%c32, %c0_152] : memref<48x32xf32, #tpu.memory_space<vmem>>, vector<16x32xf32>
    tpu.vector_store %arg41[%c32, %c0_152], %300 {strides = array<i32>} : memref<48x32xf32, #tpu.memory_space<vmem>>, vector<16x32xf32>,
    %c0_153 = arith.constant 0 : index
    %c0_154 = arith.constant 0 : index
    %304 = vector.load %arg41[%c0_153, %c0_154] : memref<48x32xf32, #tpu.memory_space<vmem>>, vector<48x32xf32>
    %c0_155 = arith.constant 0 : index
    %c0_156 = arith.constant 0 : index
    %305 = vector.load %arg7[%c0_155, %c0_156] : memref<48x1xf32, #tpu.memory_space<vmem>>, vector<48x1xf32>
    %c0_157 = arith.constant 0 : index
    %c0_158 = arith.constant 0 : index
    %306 = vector.load %arg8[%c0_157, %c0_158] : memref<1x48xf32, #tpu.memory_space<vmem>>, vector<1x48xf32>
    %307 = vector.broadcast %305 : vector<48x1xf32> to vector<48x48xf32>
    %308 = vector.broadcast %306 : vector<1x48xf32> to vector<48x48xf32>
    %309 = arith.cmpf oeq, %307, %308 : vector<48x48xf32>
    %cst_159 = arith.constant 0.000000e+00 : f32
    %cst_160 = arith.constant -1.000000e+09 : f32
    %310 = vector.broadcast %cst_159 : f32 to vector<48x48xf32>
    %311 = vector.broadcast %cst_160 : f32 to vector<48x48xf32>
    %312 = arith.select %309, %310, %311 : vector<48x48xi1>, vector<48x48xf32>
    %c0_161 = arith.constant 0 : index
    %c0_162 = arith.constant 0 : index
    %c0_163 = arith.constant 0 : index
    %313 = vector.load %arg24[%c0_161, %c0_162, %c0_163] : memref<1x32x96xf32, #tpu.memory_space<vmem>>, vector<1x32x96xf32>
    %314 = vector.shape_cast %313 : vector<1x32x96xf32> to vector<32x96xf32>
    %cst_164 = arith.constant dense<0.000000e+00> : vector<48x96xf32>
    %315 = tpu.matmul %304, %314, %cst_164 {dimension_numbers = #tpu.dot_dimension_numbers<[1], [0], [0], [1], [0, 0, 1, 1], [], []>} : vector<48x32xf32>, vector<32x96xf32>, vector<48x96xf32> -> vector<48x96xf32>
    %c0_165 = arith.constant 0 : index
    %c0_166 = arith.constant 0 : index
    %c0_167 = arith.constant 0 : index
    %316 = vector.load %arg25[%c0_165, %c0_166, %c0_167] : memref<1x1x96xf32, #tpu.memory_space<vmem>>, vector<1x1x96xf32>
    %317 = vector.shape_cast %316 : vector<1x1x96xf32> to vector<1x96xf32>
    %318 = vector.broadcast %317 : vector<1x96xf32> to vector<48x96xf32>
    %319 = arith.addf %315, %318 : vector<48x96xf32>
    %320 = vector.extract_strided_slice %319 {offsets = [0, 0], sizes = [48, 16], strides = [1, 1]} : vector<48x96xf32> to vector<48x16xf32>
    %321 = vector.extract_strided_slice %319 {offsets = [0, 32], sizes = [48, 16], strides = [1, 1]} : vector<48x96xf32> to vector<48x16xf32>
    %322 = vector.extract_strided_slice %319 {offsets = [0, 64], sizes = [48, 16], strides = [1, 1]} : vector<48x96xf32> to vector<48x16xf32>
    %cst_168 = arith.constant dense<0.000000e+00> : vector<48x48xf32>
    %323 = tpu.matmul %320, %321, %cst_168 {dimension_numbers = #tpu.dot_dimension_numbers<[1], [1], [0], [0], [0, 0, 1, 0], [], []>} : vector<48x16xf32>, vector<48x16xf32>, vector<48x48xf32> -> vector<48x48xf32>
    %cst_169 = arith.constant 2.500000e-01 : f32
    %324 = vector.broadcast %cst_169 : f32 to vector<48x48xf32>
    %325 = arith.mulf %323, %324 : vector<48x48xf32>
    %326 = arith.addf %325, %312 : vector<48x48xf32>
    %cst_170 = arith.constant dense<0xFF800000> : vector<48xf32>
    %327 = vector.multi_reduction <maximumf>, %326, %cst_170 [1] : vector<48x48xf32> to vector<48xf32>
    %328 = vector.shape_cast %327 : vector<48xf32> to vector<48x1xf32>
    %329 = vector.broadcast %328 : vector<48x1xf32> to vector<48x48xf32>
    %330 = arith.subf %326, %329 : vector<48x48xf32>
    %331 = math.exp %330 : vector<48x48xf32>
    %cst_171 = arith.constant dense<0.000000e+00> : vector<48xf32>
    %332 = vector.multi_reduction <add>, %331, %cst_171 [1] : vector<48x48xf32> to vector<48xf32>
    %333 = vector.shape_cast %332 : vector<48xf32> to vector<48x1xf32>
    %334 = tpu.reciprocal %333 {approx = true} : vector<48x1xf32> -> vector<48x1xf32>
    %335 = vector.broadcast %334 : vector<48x1xf32> to vector<48x48xf32>
    %336 = arith.mulf %331, %335 : vector<48x48xf32>
    %cst_172 = arith.constant dense<0.000000e+00> : vector<48x16xf32>
    %337 = tpu.matmul %336, %322, %cst_172 {dimension_numbers = #tpu.dot_dimension_numbers<[1], [0], [0], [1], [0, 0, 1, 1], [], []>} : vector<48x48xf32>, vector<48x16xf32>, vector<48x16xf32> -> vector<48x16xf32>
    %338 = vector.extract_strided_slice %319 {offsets = [0, 16], sizes = [48, 16], strides = [1, 1]} : vector<48x96xf32> to vector<48x16xf32>
    %339 = vector.extract_strided_slice %319 {offsets = [0, 48], sizes = [48, 16], strides = [1, 1]} : vector<48x96xf32> to vector<48x16xf32>
    %340 = vector.extract_strided_slice %319 {offsets = [0, 80], sizes = [48, 16], strides = [1, 1]} : vector<48x96xf32> to vector<48x16xf32>
    %cst_173 = arith.constant dense<0.000000e+00> : vector<48x48xf32>
    %341 = tpu.matmul %338, %339, %cst_173 {dimension_numbers = #tpu.dot_dimension_numbers<[1], [1], [0], [0], [0, 0, 1, 0], [], []>} : vector<48x16xf32>, vector<48x16xf32>, vector<48x48xf32> -> vector<48x48xf32>
    %cst_174 = arith.constant 2.500000e-01 : f32
    %342 = vector.broadcast %cst_174 : f32 to vector<48x48xf32>
    %343 = arith.mulf %341, %342 : vector<48x48xf32>
    %344 = arith.addf %343, %312 : vector<48x48xf32>
    %cst_175 = arith.constant dense<0xFF800000> : vector<48xf32>
    %345 = vector.multi_reduction <maximumf>, %344, %cst_175 [1] : vector<48x48xf32> to vector<48xf32>
    %346 = vector.shape_cast %345 : vector<48xf32> to vector<48x1xf32>
    %347 = vector.broadcast %346 : vector<48x1xf32> to vector<48x48xf32>
    %348 = arith.subf %344, %347 : vector<48x48xf32>
    %349 = math.exp %348 : vector<48x48xf32>
    %cst_176 = arith.constant dense<0.000000e+00> : vector<48xf32>
    %350 = vector.multi_reduction <add>, %349, %cst_176 [1] : vector<48x48xf32> to vector<48xf32>
    %351 = vector.shape_cast %350 : vector<48xf32> to vector<48x1xf32>
    %352 = tpu.reciprocal %351 {approx = true} : vector<48x1xf32> -> vector<48x1xf32>
    %353 = vector.broadcast %352 : vector<48x1xf32> to vector<48x48xf32>
    %354 = arith.mulf %349, %353 : vector<48x48xf32>
    %cst_177 = arith.constant dense<0.000000e+00> : vector<48x16xf32>
    %355 = tpu.matmul %354, %340, %cst_177 {dimension_numbers = #tpu.dot_dimension_numbers<[1], [0], [0], [1], [0, 0, 1, 1], [], []>} : vector<48x48xf32>, vector<48x16xf32>, vector<48x16xf32> -> vector<48x16xf32>
    %356 = tpu.concatenate %337, %355 in 1 : vector<48x16xf32>, vector<48x16xf32> -> vector<48x32xf32>
    %c0_178 = arith.constant 0 : index
    %c0_179 = arith.constant 0 : index
    %c0_180 = arith.constant 0 : index
    %357 = vector.load %arg26[%c0_178, %c0_179, %c0_180] : memref<1x32x32xf32, #tpu.memory_space<vmem>>, vector<1x32x32xf32>
    %358 = vector.shape_cast %357 : vector<1x32x32xf32> to vector<32x32xf32>
    %cst_181 = arith.constant dense<0.000000e+00> : vector<48x32xf32>
    %359 = tpu.matmul %356, %358, %cst_181 {dimension_numbers = #tpu.dot_dimension_numbers<[1], [0], [0], [1], [0, 0, 1, 1], [], []>} : vector<48x32xf32>, vector<32x32xf32>, vector<48x32xf32> -> vector<48x32xf32>
    %c0_182 = arith.constant 0 : index
    %c0_183 = arith.constant 0 : index
    %c0_184 = arith.constant 0 : index
    %360 = vector.load %arg27[%c0_182, %c0_183, %c0_184] : memref<1x1x32xf32, #tpu.memory_space<vmem>>, vector<1x1x32xf32>
    %361 = vector.shape_cast %360 : vector<1x1x32xf32> to vector<1x32xf32>
    %362 = vector.broadcast %361 : vector<1x32xf32> to vector<48x32xf32>
    %363 = arith.addf %359, %362 : vector<48x32xf32>
    %364 = arith.addf %304, %363 : vector<48x32xf32>
    %c0_185 = arith.constant 0 : index
    %c0_186 = arith.constant 0 : index
    %c0_187 = arith.constant 0 : index
    %365 = vector.load %arg28[%c0_185, %c0_186, %c0_187] : memref<1x1x32xf32, #tpu.memory_space<vmem>>, vector<1x1x32xf32>
    %366 = vector.shape_cast %365 : vector<1x1x32xf32> to vector<1x32xf32>
    %c0_188 = arith.constant 0 : index
    %c0_189 = arith.constant 0 : index
    %c0_190 = arith.constant 0 : index
    %367 = vector.load %arg29[%c0_188, %c0_189, %c0_190] : memref<1x1x32xf32, #tpu.memory_space<vmem>>, vector<1x1x32xf32>
    %368 = vector.shape_cast %367 : vector<1x1x32xf32> to vector<1x32xf32>
    %cst_191 = arith.constant dense<0.000000e+00> : vector<48xf32>
    %369 = vector.multi_reduction <add>, %364, %cst_191 [1] : vector<48x32xf32> to vector<48xf32>
    %370 = vector.shape_cast %369 : vector<48xf32> to vector<48x1xf32>
    %cst_192 = arith.constant 3.200000e+01 : f32
    %371 = vector.broadcast %cst_192 : f32 to vector<48x1xf32>
    %372 = arith.divf %370, %371 : vector<48x1xf32>
    %373 = vector.broadcast %372 : vector<48x1xf32> to vector<48x32xf32>
    %374 = arith.subf %364, %373 : vector<48x32xf32>
    %375 = arith.mulf %374, %374 : vector<48x32xf32>
    %cst_193 = arith.constant dense<0.000000e+00> : vector<48xf32>
    %376 = vector.multi_reduction <add>, %375, %cst_193 [1] : vector<48x32xf32> to vector<48xf32>
    %377 = vector.shape_cast %376 : vector<48xf32> to vector<48x1xf32>
    %cst_194 = arith.constant 3.200000e+01 : f32
    %378 = vector.broadcast %cst_194 : f32 to vector<48x1xf32>
    %379 = arith.divf %377, %378 : vector<48x1xf32>
    %cst_195 = arith.constant 9.99999974E-6 : f32
    %380 = vector.broadcast %cst_195 : f32 to vector<48x1xf32>
    %381 = arith.addf %379, %380 : vector<48x1xf32>
    %382 = math.rsqrt %381 : vector<48x1xf32>
    %383 = vector.broadcast %382 : vector<48x1xf32> to vector<48x32xf32>
    %384 = arith.mulf %374, %383 : vector<48x32xf32>
    %385 = vector.broadcast %366 : vector<1x32xf32> to vector<48x32xf32>
    %386 = arith.mulf %384, %385 : vector<48x32xf32>
    %387 = vector.broadcast %368 : vector<1x32xf32> to vector<48x32xf32>
    %388 = arith.addf %386, %387 : vector<48x32xf32>
    %c0_196 = arith.constant 0 : index
    %c0_197 = arith.constant 0 : index
    %c0_198 = arith.constant 0 : index
    %389 = vector.load %arg30[%c0_196, %c0_197, %c0_198] : memref<1x32x64xf32, #tpu.memory_space<vmem>>, vector<1x32x64xf32>
    %390 = vector.shape_cast %389 : vector<1x32x64xf32> to vector<32x64xf32>
    %cst_199 = arith.constant dense<0.000000e+00> : vector<48x64xf32>
    %391 = tpu.matmul %388, %390, %cst_199 {dimension_numbers = #tpu.dot_dimension_numbers<[1], [0], [0], [1], [0, 0, 1, 1], [], []>} : vector<48x32xf32>, vector<32x64xf32>, vector<48x64xf32> -> vector<48x64xf32>
    %c0_200 = arith.constant 0 : index
    %c0_201 = arith.constant 0 : index
    %c0_202 = arith.constant 0 : index
    %392 = vector.load %arg31[%c0_200, %c0_201, %c0_202] : memref<1x1x64xf32, #tpu.memory_space<vmem>>, vector<1x1x64xf32>
    %393 = vector.shape_cast %392 : vector<1x1x64xf32> to vector<1x64xf32>
    %394 = vector.broadcast %393 : vector<1x64xf32> to vector<48x64xf32>
    %395 = arith.addf %391, %394 : vector<48x64xf32>
    %cst_203 = arith.constant 0.000000e+00 : f32
    %396 = vector.broadcast %cst_203 : f32 to vector<48x64xf32>
    %397 = arith.maximumf %395, %396 : vector<48x64xf32>
    %c0_204 = arith.constant 0 : index
    %c0_205 = arith.constant 0 : index
    %c0_206 = arith.constant 0 : index
    %398 = vector.load %arg32[%c0_204, %c0_205, %c0_206] : memref<1x64x32xf32, #tpu.memory_space<vmem>>, vector<1x64x32xf32>
    %399 = vector.shape_cast %398 : vector<1x64x32xf32> to vector<64x32xf32>
    %cst_207 = arith.constant dense<0.000000e+00> : vector<48x32xf32>
    %400 = tpu.matmul %397, %399, %cst_207 {dimension_numbers = #tpu.dot_dimension_numbers<[1], [0], [0], [1], [0, 0, 1, 1], [], []>} : vector<48x64xf32>, vector<64x32xf32>, vector<48x32xf32> -> vector<48x32xf32>
    %c0_208 = arith.constant 0 : index
    %c0_209 = arith.constant 0 : index
    %c0_210 = arith.constant 0 : index
    %401 = vector.load %arg33[%c0_208, %c0_209, %c0_210] : memref<1x1x32xf32, #tpu.memory_space<vmem>>, vector<1x1x32xf32>
    %402 = vector.shape_cast %401 : vector<1x1x32xf32> to vector<1x32xf32>
    %403 = vector.broadcast %402 : vector<1x32xf32> to vector<48x32xf32>
    %404 = arith.addf %400, %403 : vector<48x32xf32>
    %405 = arith.addf %388, %404 : vector<48x32xf32>
    %c0_211 = arith.constant 0 : index
    %c0_212 = arith.constant 0 : index
    %c0_213 = arith.constant 0 : index
    %406 = vector.load %arg34[%c0_211, %c0_212, %c0_213] : memref<1x1x32xf32, #tpu.memory_space<vmem>>, vector<1x1x32xf32>
    %407 = vector.shape_cast %406 : vector<1x1x32xf32> to vector<1x32xf32>
    %c0_214 = arith.constant 0 : index
    %c0_215 = arith.constant 0 : index
    %c0_216 = arith.constant 0 : index
    %408 = vector.load %arg35[%c0_214, %c0_215, %c0_216] : memref<1x1x32xf32, #tpu.memory_space<vmem>>, vector<1x1x32xf32>
    %409 = vector.shape_cast %408 : vector<1x1x32xf32> to vector<1x32xf32>
    %cst_217 = arith.constant dense<0.000000e+00> : vector<48xf32>
    %410 = vector.multi_reduction <add>, %405, %cst_217 [1] : vector<48x32xf32> to vector<48xf32>
    %411 = vector.shape_cast %410 : vector<48xf32> to vector<48x1xf32>
    %cst_218 = arith.constant 3.200000e+01 : f32
    %412 = vector.broadcast %cst_218 : f32 to vector<48x1xf32>
    %413 = arith.divf %411, %412 : vector<48x1xf32>
    %414 = vector.broadcast %413 : vector<48x1xf32> to vector<48x32xf32>
    %415 = arith.subf %405, %414 : vector<48x32xf32>
    %416 = arith.mulf %415, %415 : vector<48x32xf32>
    %cst_219 = arith.constant dense<0.000000e+00> : vector<48xf32>
    %417 = vector.multi_reduction <add>, %416, %cst_219 [1] : vector<48x32xf32> to vector<48xf32>
    %418 = vector.shape_cast %417 : vector<48xf32> to vector<48x1xf32>
    %cst_220 = arith.constant 3.200000e+01 : f32
    %419 = vector.broadcast %cst_220 : f32 to vector<48x1xf32>
    %420 = arith.divf %418, %419 : vector<48x1xf32>
    %cst_221 = arith.constant 9.99999974E-6 : f32
    %421 = vector.broadcast %cst_221 : f32 to vector<48x1xf32>
    %422 = arith.addf %420, %421 : vector<48x1xf32>
    %423 = math.rsqrt %422 : vector<48x1xf32>
    %424 = vector.broadcast %423 : vector<48x1xf32> to vector<48x32xf32>
    %425 = arith.mulf %415, %424 : vector<48x32xf32>
    %426 = vector.broadcast %407 : vector<1x32xf32> to vector<48x32xf32>
    %427 = arith.mulf %425, %426 : vector<48x32xf32>
    %428 = vector.broadcast %409 : vector<1x32xf32> to vector<48x32xf32>
    %429 = arith.addf %427, %428 : vector<48x32xf32>
    %c0_222 = arith.constant 0 : index
    %c0_223 = arith.constant 0 : index
    %430 = vector.load %arg9[%c0_222, %c0_223] : memref<2x48xf32, #tpu.memory_space<vmem>>, vector<2x48xf32>
    %cst_224 = arith.constant dense<0.000000e+00> : vector<2x32xf32>
    %431 = tpu.matmul %430, %429, %cst_224 {dimension_numbers = #tpu.dot_dimension_numbers<[1], [0], [0], [1], [0, 0, 1, 1], [], []>} : vector<2x48xf32>, vector<48x32xf32>, vector<2x32xf32> -> vector<2x32xf32>
    %c0_225 = arith.constant 0 : index
    %c0_226 = arith.constant 0 : index
    %432 = vector.load %arg36[%c0_225, %c0_226] : memref<32x32xf32, #tpu.memory_space<vmem>>, vector<32x32xf32>
    %cst_227 = arith.constant dense<0.000000e+00> : vector<2x32xf32>
    %433 = tpu.matmul %431, %432, %cst_227 {dimension_numbers = #tpu.dot_dimension_numbers<[1], [0], [0], [1], [0, 0, 1, 1], [], []>} : vector<2x32xf32>, vector<32x32xf32>, vector<2x32xf32> -> vector<2x32xf32>
    %c0_228 = arith.constant 0 : index
    %c0_229 = arith.constant 0 : index
    %434 = vector.load %arg37[%c0_228, %c0_229] : memref<1x32xf32, #tpu.memory_space<vmem>>, vector<1x32xf32>
    %435 = vector.broadcast %434 : vector<1x32xf32> to vector<2x32xf32>
    %436 = arith.addf %433, %435 : vector<2x32xf32>
    %cst_230 = arith.constant 0.000000e+00 : f32
    %437 = vector.broadcast %cst_230 : f32 to vector<2x32xf32>
    %438 = arith.maximumf %436, %437 : vector<2x32xf32>
    %c0_231 = arith.constant 0 : index
    %c0_232 = arith.constant 0 : index
    %439 = vector.load %arg38[%c0_231, %c0_232] : memref<32x3xf32, #tpu.memory_space<vmem>>, vector<32x3xf32>
    %cst_233 = arith.constant dense<0.000000e+00> : vector<2x3xf32>
    %440 = tpu.matmul %438, %439, %cst_233 {dimension_numbers = #tpu.dot_dimension_numbers<[1], [0], [0], [1], [0, 0, 1, 1], [], []>} : vector<2x32xf32>, vector<32x3xf32>, vector<2x3xf32> -> vector<2x3xf32>
    %c0_234 = arith.constant 0 : index
    %c0_235 = arith.constant 0 : index
    %441 = vector.load %arg39[%c0_234, %c0_235] : memref<1x3xf32, #tpu.memory_space<vmem>>, vector<1x3xf32>
    %442 = vector.broadcast %441 : vector<1x3xf32> to vector<2x3xf32>
    %443 = arith.addf %440, %442 : vector<2x3xf32>
    %c0_236 = arith.constant 0 : index
    %c0_237 = arith.constant 0 : index
    %444 = vector.load %arg40[%c0_236, %c0_237] : memref<2x3xf32, #tpu.memory_space<vmem>>, vector<2x3xf32>
    tpu.vector_store %arg40[%c0_236, %c0_237], %443 {strides = array<i32>} : memref<2x3xf32, #tpu.memory_space<vmem>>, vector<2x3xf32>,
    return
  }
  func.func @transform_0(%arg0: i32) -> (i32, i32) {
    %c0_i32 = arith.constant 0 : i32
    %c0_i32_0 = arith.constant 0 : i32
    %c0_i32_1 = arith.constant 0 : i32
    return %c0_i32, %c0_i32_0 : i32, i32
  }
  func.func @transform_1(%arg0: i32) -> (i32, i32) {
    %c0_i32 = arith.constant 0 : i32
    %c0_i32_0 = arith.constant 0 : i32
    %c0_i32_1 = arith.constant 0 : i32
    return %c0_i32, %c0_i32_0 : i32, i32
  }
  func.func @transform_2(%arg0: i32) -> (i32, i32) {
    %c0_i32 = arith.constant 0 : i32
    %c0_i32_0 = arith.constant 0 : i32
    %c0_i32_1 = arith.constant 0 : i32
    return %c0_i32, %c0_i32_0 : i32, i32
  }
  func.func @transform_3(%arg0: i32) -> (i32, i32) {
    %c0_i32 = arith.constant 0 : i32
    %c0_i32_0 = arith.constant 0 : i32
    %c0_i32_1 = arith.constant 0 : i32
    return %c0_i32, %c0_i32_0 : i32, i32
  }
  func.func @transform_4(%arg0: i32) -> (i32, i32) {
    %c0_i32 = arith.constant 0 : i32
    %c0_i32_0 = arith.constant 0 : i32
    %c0_i32_1 = arith.constant 0 : i32
    return %c0_i32, %c0_i32_0 : i32, i32
  }
  func.func @transform_5(%arg0: i32) -> (i32, i32) {
    %c0_i32 = arith.constant 0 : i32
    %c0_i32_0 = arith.constant 0 : i32
    %c0_i32_1 = arith.constant 0 : i32
    return %c0_i32, %c0_i32_0 : i32, i32
  }
  func.func @transform_6(%arg0: i32) -> (i32, i32) {
    %c0_i32 = arith.constant 0 : i32
    %c0_i32_0 = arith.constant 0 : i32
    %c0_i32_1 = arith.constant 0 : i32
    return %c0_i32, %c0_i32_0 : i32, i32
  }
  func.func @transform_7(%arg0: i32) -> (i32, i32) {
    %c0_i32 = arith.constant 0 : i32
    %c0_i32_0 = arith.constant 0 : i32
    %c0_i32_1 = arith.constant 0 : i32
    return %c0_i32, %c0_i32_0 : i32, i32
  }
  func.func @transform_8(%arg0: i32) -> (i32, i32) {
    %c0_i32 = arith.constant 0 : i32
    %c0_i32_0 = arith.constant 0 : i32
    %c0_i32_1 = arith.constant 0 : i32
    return %c0_i32, %c0_i32_0 : i32, i32
  }
  func.func @transform_9(%arg0: i32) -> (i32, i32) {
    %c0_i32 = arith.constant 0 : i32
    %c0_i32_0 = arith.constant 0 : i32
    %c0_i32_1 = arith.constant 0 : i32
    return %c0_i32, %c0_i32_0 : i32, i32
  }
  func.func @transform_10(%arg0: i32) -> (i32, i32) {
    %c0_i32 = arith.constant 0 : i32
    %c0_i32_0 = arith.constant 0 : i32
    %c0_i32_1 = arith.constant 0 : i32
    return %c0_i32, %c0_i32_0 : i32, i32
  }
  func.func @transform_11(%arg0: i32) -> (i32, i32, i32) {
    %c0_i32 = arith.constant 0 : i32
    %c0_i32_0 = arith.constant 0 : i32
    %c0_i32_1 = arith.constant 0 : i32
    %c0_i32_2 = arith.constant 0 : i32
    return %c0_i32, %c0_i32_0, %c0_i32_1 : i32, i32, i32
  }
  func.func @transform_12(%arg0: i32) -> (i32, i32, i32) {
    %c0_i32 = arith.constant 0 : i32
    %c0_i32_0 = arith.constant 0 : i32
    %c0_i32_1 = arith.constant 0 : i32
    %c0_i32_2 = arith.constant 0 : i32
    return %c0_i32, %c0_i32_0, %c0_i32_1 : i32, i32, i32
  }
  func.func @transform_13(%arg0: i32) -> (i32, i32, i32) {
    %c0_i32 = arith.constant 0 : i32
    %c0_i32_0 = arith.constant 0 : i32
    %c0_i32_1 = arith.constant 0 : i32
    %c0_i32_2 = arith.constant 0 : i32
    return %c0_i32, %c0_i32_0, %c0_i32_1 : i32, i32, i32
  }
  func.func @transform_14(%arg0: i32) -> (i32, i32, i32) {
    %c0_i32 = arith.constant 0 : i32
    %c0_i32_0 = arith.constant 0 : i32
    %c0_i32_1 = arith.constant 0 : i32
    %c0_i32_2 = arith.constant 0 : i32
    return %c0_i32, %c0_i32_0, %c0_i32_1 : i32, i32, i32
  }
  func.func @transform_15(%arg0: i32) -> (i32, i32, i32) {
    %c0_i32 = arith.constant 0 : i32
    %c0_i32_0 = arith.constant 0 : i32
    %c0_i32_1 = arith.constant 0 : i32
    %c0_i32_2 = arith.constant 0 : i32
    return %c0_i32, %c0_i32_0, %c0_i32_1 : i32, i32, i32
  }
  func.func @transform_16(%arg0: i32) -> (i32, i32, i32) {
    %c0_i32 = arith.constant 0 : i32
    %c0_i32_0 = arith.constant 0 : i32
    %c0_i32_1 = arith.constant 0 : i32
    %c0_i32_2 = arith.constant 0 : i32
    return %c0_i32, %c0_i32_0, %c0_i32_1 : i32, i32, i32
  }
  func.func @transform_17(%arg0: i32) -> (i32, i32, i32) {
    %c0_i32 = arith.constant 0 : i32
    %c0_i32_0 = arith.constant 0 : i32
    %c0_i32_1 = arith.constant 0 : i32
    %c0_i32_2 = arith.constant 0 : i32
    return %c0_i32, %c0_i32_0, %c0_i32_1 : i32, i32, i32
  }
  func.func @transform_18(%arg0: i32) -> (i32, i32, i32) {
    %c0_i32 = arith.constant 0 : i32
    %c0_i32_0 = arith.constant 0 : i32
    %c0_i32_1 = arith.constant 0 : i32
    %c0_i32_2 = arith.constant 0 : i32
    return %c0_i32, %c0_i32_0, %c0_i32_1 : i32, i32, i32
  }
  func.func @transform_19(%arg0: i32) -> (i32, i32, i32) {
    %c0_i32 = arith.constant 0 : i32
    %c0_i32_0 = arith.constant 0 : i32
    %c0_i32_1 = arith.constant 0 : i32
    %c0_i32_2 = arith.constant 0 : i32
    return %c0_i32, %c0_i32_0, %c0_i32_1 : i32, i32, i32
  }
  func.func @transform_20(%arg0: i32) -> (i32, i32, i32) {
    %c0_i32 = arith.constant 0 : i32
    %c0_i32_0 = arith.constant 0 : i32
    %c0_i32_1 = arith.constant 0 : i32
    %c0_i32_2 = arith.constant 0 : i32
    return %c0_i32, %c0_i32_0, %c0_i32_1 : i32, i32, i32
  }
  func.func @transform_21(%arg0: i32) -> (i32, i32, i32) {
    %c0_i32 = arith.constant 0 : i32
    %c0_i32_0 = arith.constant 0 : i32
    %c0_i32_1 = arith.constant 0 : i32
    %c0_i32_2 = arith.constant 0 : i32
    return %c0_i32, %c0_i32_0, %c0_i32_1 : i32, i32, i32
  }
  func.func @transform_22(%arg0: i32) -> (i32, i32, i32) {
    %c0_i32 = arith.constant 0 : i32
    %c0_i32_0 = arith.constant 0 : i32
    %c0_i32_1 = arith.constant 0 : i32
    %c0_i32_2 = arith.constant 0 : i32
    return %c0_i32, %c0_i32_0, %c0_i32_1 : i32, i32, i32
  }
  func.func @transform_23(%arg0: i32) -> (i32, i32, i32) {
    %c0_i32 = arith.constant 0 : i32
    %c0_i32_0 = arith.constant 0 : i32
    %c0_i32_1 = arith.constant 0 : i32
    %c0_i32_2 = arith.constant 0 : i32
    return %c0_i32, %c0_i32_0, %c0_i32_1 : i32, i32, i32
  }
  func.func @transform_24(%arg0: i32) -> (i32, i32, i32) {
    %c0_i32 = arith.constant 0 : i32
    %c0_i32_0 = arith.constant 0 : i32
    %c0_i32_1 = arith.constant 0 : i32
    %c0_i32_2 = arith.constant 0 : i32
    return %c0_i32, %c0_i32_0, %c0_i32_1 : i32, i32, i32
  }
  func.func @transform_25(%arg0: i32) -> (i32, i32, i32) {
    %c0_i32 = arith.constant 0 : i32
    %c0_i32_0 = arith.constant 0 : i32
    %c0_i32_1 = arith.constant 0 : i32
    %c0_i32_2 = arith.constant 0 : i32
    return %c0_i32, %c0_i32_0, %c0_i32_1 : i32, i32, i32
  }
  func.func @transform_26(%arg0: i32) -> (i32, i32, i32) {
    %c0_i32 = arith.constant 0 : i32
    %c0_i32_0 = arith.constant 0 : i32
    %c0_i32_1 = arith.constant 0 : i32
    %c0_i32_2 = arith.constant 0 : i32
    return %c0_i32, %c0_i32_0, %c0_i32_1 : i32, i32, i32
  }
  func.func @transform_27(%arg0: i32) -> (i32, i32, i32) {
    %c0_i32 = arith.constant 0 : i32
    %c0_i32_0 = arith.constant 0 : i32
    %c0_i32_1 = arith.constant 0 : i32
    %c0_i32_2 = arith.constant 0 : i32
    return %c0_i32, %c0_i32_0, %c0_i32_1 : i32, i32, i32
  }
  func.func @transform_28(%arg0: i32) -> (i32, i32, i32) {
    %c0_i32 = arith.constant 0 : i32
    %c0_i32_0 = arith.constant 0 : i32
    %c0_i32_1 = arith.constant 0 : i32
    %c0_i32_2 = arith.constant 0 : i32
    return %c0_i32, %c0_i32_0, %c0_i32_1 : i32, i32, i32
  }
  func.func @transform_29(%arg0: i32) -> (i32, i32, i32) {
    %c0_i32 = arith.constant 0 : i32
    %c0_i32_0 = arith.constant 0 : i32
    %c0_i32_1 = arith.constant 0 : i32
    %c0_i32_2 = arith.constant 0 : i32
    return %c0_i32, %c0_i32_0, %c0_i32_1 : i32, i32, i32
  }
  func.func @transform_30(%arg0: i32) -> (i32, i32, i32) {
    %c0_i32 = arith.constant 0 : i32
    %c0_i32_0 = arith.constant 0 : i32
    %c0_i32_1 = arith.constant 0 : i32
    %c0_i32_2 = arith.constant 0 : i32
    return %c0_i32, %c0_i32_0, %c0_i32_1 : i32, i32, i32
  }
  func.func @transform_31(%arg0: i32) -> (i32, i32, i32) {
    %c0_i32 = arith.constant 0 : i32
    %c0_i32_0 = arith.constant 0 : i32
    %c0_i32_1 = arith.constant 0 : i32
    %c0_i32_2 = arith.constant 0 : i32
    return %c0_i32, %c0_i32_0, %c0_i32_1 : i32, i32, i32
  }
  func.func @transform_32(%arg0: i32) -> (i32, i32, i32) {
    %c0_i32 = arith.constant 0 : i32
    %c0_i32_0 = arith.constant 0 : i32
    %c0_i32_1 = arith.constant 0 : i32
    %c0_i32_2 = arith.constant 0 : i32
    return %c0_i32, %c0_i32_0, %c0_i32_1 : i32, i32, i32
  }
  func.func @transform_33(%arg0: i32) -> (i32, i32, i32) {
    %c0_i32 = arith.constant 0 : i32
    %c0_i32_0 = arith.constant 0 : i32
    %c0_i32_1 = arith.constant 0 : i32
    %c0_i32_2 = arith.constant 0 : i32
    return %c0_i32, %c0_i32_0, %c0_i32_1 : i32, i32, i32
  }
  func.func @transform_34(%arg0: i32) -> (i32, i32, i32) {
    %c0_i32 = arith.constant 0 : i32
    %c0_i32_0 = arith.constant 0 : i32
    %c0_i32_1 = arith.constant 0 : i32
    %c0_i32_2 = arith.constant 0 : i32
    return %c0_i32, %c0_i32_0, %c0_i32_1 : i32, i32, i32
  }
  func.func @transform_35(%arg0: i32) -> (i32, i32) {
    %c0_i32 = arith.constant 0 : i32
    %c0_i32_0 = arith.constant 0 : i32
    %c0_i32_1 = arith.constant 0 : i32
    return %c0_i32, %c0_i32_0 : i32, i32
  }
  func.func @transform_36(%arg0: i32) -> (i32, i32) {
    %c0_i32 = arith.constant 0 : i32
    %c0_i32_0 = arith.constant 0 : i32
    %c0_i32_1 = arith.constant 0 : i32
    return %c0_i32, %c0_i32_0 : i32, i32
  }
  func.func @transform_37(%arg0: i32) -> (i32, i32) {
    %c0_i32 = arith.constant 0 : i32
    %c0_i32_0 = arith.constant 0 : i32
    %c0_i32_1 = arith.constant 0 : i32
    return %c0_i32, %c0_i32_0 : i32, i32
  }
  func.func @transform_38(%arg0: i32) -> (i32, i32) {
    %c0_i32 = arith.constant 0 : i32
    %c0_i32_0 = arith.constant 0 : i32
    %c0_i32_1 = arith.constant 0 : i32
    return %c0_i32, %c0_i32_0 : i32, i32
  }
  func.func @transform_39(%arg0: i32) -> (i32, i32) {
    %c0_i32 = arith.constant 0 : i32
    %c0_i32_0 = arith.constant 0 : i32
    %c0_i32_1 = arith.constant 0 : i32
    return %c0_i32, %c0_i32_0 : i32, i32
  }
}

</mosaic_0001>

<bundles_post_ra>
// kernel: acformer_forward.2
= control target key start
LH: loop header
LB: loop body
LE: loop exit
PB: predicated region body
PF: predicated region fallthrough
CT: control target
= control target key end

     0   :  { %s3480_s24 = smov 0   ;;  %s3833_s0 = inlined_call_operand.vmem [shape: f32[2,16,20], index: 0, kind: input, shape index: {}]   ;;  %s3834_s1 = inlined_call_operand.vmem [shape: f32[16,1], index: 1, kind: input, shape index: {}]   ;;  %s3835_s2 = inlined_call_operand.vmem [shape: f32[1,16], index: 2, kind: input, shape index: {}]   ;;  %s3836_s3 = inlined_call_operand.vmem [shape: f32[2,20,32], index: 3, kind: input, shape index: {}]   ;;  %s3837_s4 = inlined_call_operand.vmem [shape: f32[2,1,32], index: 4, kind: input, shape index: {}]   ;;  %s3838_s5 = inlined_call_operand.vmem [shape: f32[2,2,32,96], index: 5, kind: input, shape index: {}]   ;;  %s3839_s6 = inlined_call_operand.vmem [shape: f32[2,2,1,96], index: 6, kind: input, shape index: {}]   ;;  %s3840_s7 = inlined_call_operand.vmem [shape: f32[2,2,32,32], index: 7, kind: input, shape index: {}]   ;;  %s3841_s8 = inlined_call_operand.vmem [shape: f32[2,2,1,32], index: 8, kind: input, shape index: {}]   ;;  %s3842_s9 = inlined_call_operand.vmem [shape: f32[2,2,1,32], index: 9, kind: input, shape index: {}]   ;;  %s3843_s10 = inlined_call_operand.vmem [shape: f32[2,2,1,32], index: 10, kind: input, shape index: {}]   ;;  %s3844_s11 = inlined_call_operand.vmem [shape: f32[2,2,32,64], index: 11, kind: input, shape index: {}]   ;;  %s3845_s12 = inlined_call_operand.vmem [shape: f32[2,2,1,64], index: 12, kind: input, shape index: {}]   ;;  %s3846_s13 = inlined_call_operand.vmem [shape: f32[2,2,64,32], index: 13, kind: input, shape index: {}]   ;;  %s3847_s14 = inlined_call_operand.vmem [shape: f32[2,2,1,32], index: 14, kind: input, shape index: {}]   ;;  %s3848_s15 = inlined_call_operand.vmem [shape: f32[2,2,1,32], index: 15, kind: input, shape index: {}]   ;;  %s3849_s16 = inlined_call_operand.vmem [shape: f32[2,2,1,32], index: 16, kind: input, shape index: {}]   ;;  %s3850_s17 = inlined_call_operand.vmem [shape: f32[2,16,32], index: 17, kind: output, shape index: {}]  }
   0x1   :  { %3865 = sst [smem:[#allocation2_spill]] %s3833_s0 }
   0x2   :  { %3866 = sst [smem:[#allocation3_spill]] %s3834_s1 }
   0x3   :  { %3867 = sst [smem:[#allocation4_spill]] %s3835_s2 }
   0x4   :  { %3868 = sst [smem:[#allocation5_spill]] %s3836_s3 }
   0x5   :  { %3869 = sst [smem:[#allocation6_spill]] %s3837_s4 }
   0x6   :  { %3870 = sst [smem:[#allocation7_spill]] %s3838_s5 }
   0x7 LB: > { %s2922_s25 = sadd.s32 4294967295, %s3380_s24   ;;  %p2926_p0 = scmp.ge.s32.totalorder %s3380_s24, 1  ;;  %s3380_s24 = sphi %s3480_s24, %s27_s24  }
   0x8   : > { %p617_p1 = scmp.lt.s32.totalorder %s3380_s24, 3 }
   0xa   : > { %p618_p2 = pnand %p2926_p0, %p617_p1 }
   0xb   : > { %p729_p3 = scmp.lt.s32.totalorder (!%p618_p2), %s2922_s25, 1  ;;  %s3871_s3 = sld [smem:[#allocation5_spill]] (!%p618_p2) }
   0xc   : > { %621 = sbr.rel (%p618_p2) target bundleno = 5528 (0x1598), region = 88  ;;  %s3872_s19 = sld [smem:[#allocation2_spill]] (!%p618_p2) }
   0xd   : > { %s3873_s5 = sld [smem:[#allocation7_spill]] (!%p618_p2)  ;;  %s3861_s21 = smov (!%p618_p2), 80  }
   0xe   : > { %s3874_s4 = sld [smem:[#allocation6_spill]] (!%p618_p2)  ;;  %s3853_s28 = smov (!%p618_p2), 48  }
   0xf   : > { %s3875_s22 = sld [smem:[#allocation3_spill]] (!%p618_p2)  ;;  %s3857_s30 = smov (!%p618_p2), 16  }
  0x10   : > { %s3876_s2 = sld [smem:[#allocation4_spill]] (!%p618_p2)  ;;  %s3882_s18 = smov (!%p618_p2), 16  }
  0x11   : > { %s3885_s25 = smov (!%p729_p3, %s2922_s25), 1  ;;  %vm841_vm0 = vcmask 1043456   ;;  %vm834_vm1 = vcmask 162816   ;;  %vm931_vm2 = vcmask 261120   ;;  %v3382_v16 = vmov 0  }
  0x12   : > { %s3307_s26 = smul.u32 24, %s3885_s25  ;;  %s3852_s27 = sshll.u32 %s3885_s25, 4  ;;  %3324 = vset.pattern.permute.xlu1 %v3382_v16  ;;  %3325 = vset.pattern.permute.xlu0 %v3382_v16  ;;  %vm1019_vm3 = vcmask 130048   ;;  %v3384_v29 = vmov -1e+09   ;;  %vm1678_vm6 = vcmask 523264  }
  0x13   : > { %s733_s1 = scalar_lea.vmem %s3872_s19, %s3852_s27  ;;  %s3501_s20 = sshll.u32 %s3885_s25, 6 }
  0x14   : > { %s738_s0 = scalar_lea.vmem %s3871_s3, %s3307_s26  ;;  %v822_v2 = vld [vmem:[%s733_s1] sm:$0xff]  ;;  %s3507_s23 = scalar_lea.vmem %s3873_s5, %s3501_s20  ;;  %v823_v4 = vld [vmem:[%s733_s1 + $0x8] sm:$0xff] }
  0x15   : > { %v826_v0 = vld [vmem:[%s738_s0 + $0x10] sm:$0xf]  ;;  %v825_v1 = vld [vmem:[%s738_s0 + $0x8] sm:$0xff]  ;;  %v824_v3 = vld [vmem:[%s738_s0] sm:$0xff]  ;;  %3144 = vmatprep.mubr.msk.f32.mxu1 %vm834_vm1, %v822_v2  ;;  %s741_s29 = scalar_lea.vmem %s3874_s4, %s3885_s25  ;;  %s3528_s0 = sshll.u32 %s3885_s25, 1 }
  0x16   : > { %3138 = vmatprep.subr.msk.mxu1 %vm841_vm0, %v826_v0  ;;  %v923_v5 = vld [vmem:[%s3507_s23 + $0x18] sm:$0xff]  ;;  %v922_v6 = vld [vmem:[%s3507_s23 + $0x10] sm:$0xff]  ;;  %v921_v7 = vld [vmem:[%s3507_s23 + $0x8] sm:$0xff]  ;;  %s3534_s19 = scalar_lea.vmem %s3839_s6, %s3528_s0  ;;  %s3855_s1 = smov 64  }
  0x17   : > { %3139 = vmatpush3.msk.msra.mxu1 %vm841_vm0, %v826_v0  ;;  %v920_v8 = vld [vmem:[%s3507_s23] sm:$0xff]  ;;  %v800_v19 = vld [vmem:[%s3875_s22 + $0x8] sm:$0xff]  ;;  %s3859_s26 = smov 112   ;;  %s3612_s27 = scalar_lea.vmem %s3840_s7, %s3501_s20 }
  0x18   : > { %3140 = vmatprep.subr.mxu1 %v825_v1  ;;  %v2949_v10 = vld [vmem:[%s741_s29] ss:$0 sm:$0xff]  ;;  %s3863_s29 = smov 96   ;;  %s3692_s4 = scalar_lea.vmem %s3847_s14, %s3528_s0 }
  0x19   : > { %3141 = vmatpush3.msra.mxu1 %v825_v1  ;;  %v2953_v14 = vld [vmem:[%s3534_s19] ss:$0 sm:$0xff]  ;;  %s3714_s5 = scalar_lea.vmem %s3849_s16, %s3528_s0  ;;  %s3878_s3 = smov 80  }
  0x1a   : > { %3142 = vmatprep.subr.mxu1 %v824_v3  ;;  %v799_v15 = vld [vmem:[%s3875_s22] sm:$0xff] }
  0x1b   : > { %3143 = vmatpush3.msra.mxu1 %v824_v3  ;;  %804 = vperm.xlu1 %3324, %v799_v15   ;;  %v2948_v25 = vld [vmem:[%s3876_s2] ss:$0 sm:$0xff]  ;;  %s3669_s2 = scalar_lea.vmem %s3843_s10, %s3528_s0 }
  0x1c   : > { %3145 = vmatmul.mubr.msk.f32.vlgmr.msra.gmra.mxu1 %vm834_vm1, %v823_v4  ;;  %3147 = vmatprep.subr.mxu1 %v923_v5 }
  0x1d   : > { %3148 = vmatpush3.msra.mxu1 %v923_v5 }
  0x1e   : > { %3149 = vmatprep.subr.mxu1 %v922_v6 }
  0x1f   : > { %3150 = vmatpush3.msra.mxu1 %v922_v6  ;;  %809 = vperm.xlu1 %3324, %v800_v19  }
  0x20   : > { %3151 = vmatprep.subr.mxu1 %v921_v7 }
  0x21   : > { %3152 = vmatpush3.msra.mxu1 %v921_v7 }
  0x22   : > { %3153 = vmatprep.subr.mxu1 %v920_v8 }
  0x23   : > { %3154 = vmatpush3.msra.mxu1 %v920_v8 }
  0x96   : > { %v805_v24 = vpop.permute.xlu1 %804 }
  0x97   : > { %vm818_vm5 = vcmp.eq.f32.partialorder %v805_v24, %v2948_v25 }
  0x98   : > { %v3565_v34 = vsel %vm818_vm5, 0.0, %v3384_v29 }
  0x9a   : > { %v810_v26 = vpop.permute.xlu1 %809 }
  0x9b   : > { %vm819_vm4 = vcmp.eq.f32.partialorder %v810_v26, %v2948_v25 }
  0x9c   : > { %v3562_v30 = vsel %vm819_vm4, 0.0, %v3384_v29  ;;  %v1430_v29 = vld [vmem:[%s3612_s27] sm:$0xff] }
  0xdc   : > { %v3146_v9 = vpop.f32.mrf.mxu1 }
  0xdd   : > { %v3521_v13 = vadd.f32 %v3146_v9, %v2949_v10 }
  0xde   : > { %v911_v11 = vpop.f32.mrf.mxu1 }
  0xdf   : > { %v3519_v12 = vadd.f32 %v2949_v10, %v911_v11 }
  0xe1   : > { %3155 = vmatprep.mubr.msk.f32.mxu1 %vm931_vm2, %v3519_v12 }
  0xe2   : > { %3156 = vmatmul.mubr.msk.f32.vlgmr.msra.gmra.mxu1 %vm931_vm2, %v3521_v13 }
 0x1a2   : > { %v3157_v17 = vpop.f32.mrf.mxu1 }
 0x1a3   : > { %v3540_v18 = vadd.f32 %v3157_v17, %v2953_v14 }
 0x1a4   : > { %v1004_v20 = vpop.f32.mrf.mxu1 }
 0x1a5   : > { %v3545_v21 = vadd.f32 %v2953_v14, %v1004_v20  ;;  %1017 = vrot.lane.b32.xlu0 %v3540_v18, %s3863_s29 }
 0x1a7   : > { %3162 = vmatprep.mubr.msk.f32.mxu0 %vm1019_vm3, %v3545_v21 }
 0x1a9   : > { %1015 = vrot.lane.b32.xlu0 %v3545_v21, %s3863_s29  ;;  %s3707_s29 = scalar_lea.vmem %s3848_s15, %s3528_s0 }
 0x217   : > { %v1018_v22 = vpop.permute.xlu0 %1017 }
 0x218   : > { %3158 = vmatprep.subr.msk.mxu0 %vm1019_vm3, %v1018_v22 }
 0x219   : > { %3159 = vmatpush3.xpose.msk.msra.mxu0 %vm1019_vm3, %v1018_v22 }
 0x21b   : > { %v1016_v23 = vpop.permute.xlu0 %1015 }
 0x21c   : > { %3160 = vmatprep.subr.msk.mxu0 %vm1019_vm3, %v1016_v23 }
 0x21d   : > { %3161 = vmatpush3.xpose.msk.msra.mxu0 %vm1019_vm3, %v1016_v23 }
 0x220   : > { %3163 = vmatmul.mubr.msk.f32.vlgmr.msra.gmra.mxu0 %vm1019_vm3, %v3540_v18 }
 0x2e0   : > { %v3164_v27 = vpop.f32.mrf.mxu0 }
 0x2e1   : > { %v1104_v28 = vmul.f32 0.25, %v3164_v27  ;;  %v1432_v27 = vld [vmem:[%s3612_s27 + $0x10] sm:$0xff] }
 0x2e2   : > { %v1094_v31 = vpop.f32.mrf.mxu0 }
 0x2e3   : > { %v1103_v32 = vmul.f32 0.25, %v1094_v31  ;;  %v1106_v33 = vadd.f32 %v1104_v28, %v3562_v30  ;;  %v1431_v28 = vld [vmem:[%s3612_s27 + $0x8] sm:$0xff] }
 0x2e5   : > { %v1110_v35 = vsel %vm1019_vm3, %v1106_v33, -inf  ;;  %v1105_v36 = vadd.f32 %v1103_v32, %v3565_v34 }
 0x2e6   : > { %1111 = vmax.xlane.f32.xlu1 %v1110_v35 }
 0x2e7   : > { %v1107_v37 = vsel %vm1019_vm3, %v1105_v36, -inf }
 0x2e8   : > { %1108 = vmax.xlane.f32.xlu0 %v1107_v37 }
 0x2f7   : > { %1131 = vrot.lane.b32.xlu1 %v3540_v18, %s3855_s1 }
 0x2fb   : > { %1222 = vrot.lane.b32.xlu1 %v3540_v18, %s3861_s21 }
 0x2ff   : > { %1220 = vrot.lane.b32.xlu1 %v3545_v21, %s3861_s21  ;;  %s3663_s21 = scalar_lea.vmem %s3842_s9, %s3528_s0 }
 0x303   : > { %1218 = vrot.lane.b32.xlu1 %v3540_v18, %s3859_s26 }
 0x36f   : > { %v1112_v38 = vpop.xlane.xlu1 %1111 }
 0x370   : > { %v1114_v39 = vsub.f32 %v1106_v33, %v1112_v38 }
 0x371   : > { %v1109_v40 = vpop.xlane.xlu0 %1108 }
 0x372   : > { %v1117_v41 = vmul.f32 1.442695, %v1114_v39  ;;  %v1113_v42 = vsub.f32 %v1105_v36, %v1109_v40 }
 0x373   : > { %v1132_v43 = vpop.permute.xlu1 %1131 }
 0x374   : > { %3326 = vpow2.f32 %v1117_v41  ;;  %v1115_v44 = vmul.f32 1.442695, %v1113_v42  ;;  %3165 = vmatprep.subr.mxu1 %v1132_v43 }
 0x375   : > { %3166 = vmatpush3.msra.mxu1 %v1132_v43 }
 0x376   : > { %3328 = vpow2.f32 %v1115_v44 }
 0x377   : > { %v1223_v52 = vpop.permute.xlu1 %1222 }
 0x37b   : > { %v1221_v58 = vpop.permute.xlu1 %1220 }
 0x37f   : > { %v1219_v59 = vpop.permute.xlu1 %1218 }
 0x381   : > { %v3327_v45 = vpop.eup %3326 }
 0x382   : > { %v1122_v46 = vsel %vm1019_vm3, %v3327_v45, 0.0 }
 0x383   : > { %v3329_v47 = vpop.eup %3328  ;;  %1123 = vadd.xlane.f32.xlu0 %v1122_v46 }
 0x384   : > { %v1119_v48 = vsel %vm1019_vm3, %v3329_v47, 0.0 }
 0x387   : > { %1120 = vadd.xlane.f32.xlu0 %v1119_v48 }
 0x39d   : > { %1129 = vrot.lane.b32.xlu0 %v3545_v21, %s3855_s1  ;;  %s3630_s1 = scalar_lea.vmem %s3841_s8, %s3528_s0 }
 0x39e   : > { %v2968_v38 = vld [vmem:[%s3630_s1] ss:$0 sm:$0xff] }
 0x3a1   : > { %1216 = vrot.lane.b32.xlu0 %v3545_v21, %s3859_s26  ;;  %s3043_s26 = sshll.u32 %s3885_s25, 7 }
 0x40c   : > { %v1124_v49 = vpop.xlane.xlu0 %1123 }
 0x40d   : > { %3330 = vrcp.f32 %v1124_v49 }
 0x410   : > { %v1121_v50 = vpop.xlane.xlu0 %1120 }
 0x411   : > { %3332 = vrcp.f32 %v1121_v50 }
 0x414   : > { %v1130_v51 = vpop.permute.xlu0 %1129 }
 0x415   : > { %3167 = vmatprep.subr.mxu1 %v1130_v51 }
 0x416   : > { %3168 = vmatpush3.msra.mxu1 %v1130_v51 }
 0x417   : > { %3172 = vmatprep.subr.msk.mxu1 %vm1019_vm3, %v1223_v52 }
 0x418   : > { %v1217_v57 = vpop.permute.xlu0 %1216 }
 0x41a   : > { %v3331_v53 = vpop.eup %3330 }
 0x41b   : > { %v1128_v56 = vmul.f32 %v3331_v53, %v3327_v45 }
 0x41e   : > { %v3333_v54 = vpop.eup %3332 }
 0x41f   : > { %v1127_v55 = vmul.f32 %v3333_v54, %v3329_v47 }
 0x421   : > { %3169 = vmatprep.mubr.msk.f32.mxu1 %vm1019_vm3, %v1127_v55 }
 0x422   : > { %3170 = vmatmul.mubr.msk.f32.vlgmr.msra.gmra.mxu1 %vm1019_vm3, %v1128_v56 }
 0x423   : > { %3173 = vmatpush3.xpose.msk.msra.mxu1 %vm1019_vm3, %v1223_v52  ;;  %3176 = vmatprep.mubr.msk.f32.mxu1 %vm1019_vm3, %v1217_v57 }
 0x424   : > { %3174 = vmatprep.subr.msk.mxu1 %vm1019_vm3, %v1221_v58 }
 0x427   : > { %3175 = vmatpush3.xpose.msk.msra.mxu1 %vm1019_vm3, %v1221_v58 }
 0x42a   : > { %3177 = vmatmul.mubr.msk.f32.vlgmr.msra.gmra.mxu1 %vm1019_vm3, %v1219_v59 }
 0x4e2   : > { %v3592_v60 = vpop.f32.mrf.mxu1 }
 0x4e4   : > { %v3594_v61 = vpop.f32.mrf.mxu1 }
 0x4ea   : > { %v3178_v62 = vpop.f32.mrf.mxu1 }
 0x4eb   : > { %v1308_v63 = vmul.f32 0.25, %v3178_v62 }
 0x4ec   : > { %v1298_v0 = vpop.f32.mrf.mxu1 }
 0x4ed   : > { %v1307_v1 = vmul.f32 0.25, %v1298_v0  ;;  %v1310_v2 = vadd.f32 %v1308_v63, %v3562_v30 }
 0x4ef   : > { %v1314_v3 = vsel %vm1019_vm3, %v1310_v2, -inf  ;;  %v1309_v4 = vadd.f32 %v1307_v1, %v3565_v34 }
 0x4f0   : > { %1315 = vmax.xlane.f32.xlu1 %v1314_v3 }
 0x4f1   : > { %v1311_v5 = vsel %vm1019_vm3, %v1309_v4, -inf }
 0x4f2   : > { %1312 = vmax.xlane.f32.xlu0 %v1311_v5 }
 0x501   : > { %1335 = vrot.lane.b32.xlu1 %v3540_v18, %s3853_s28 }
 0x579   : > { %v1316_v6 = vpop.xlane.xlu1 %1315 }
 0x57a   : > { %v1318_v7 = vsub.f32 %v1310_v2, %v1316_v6  ;;  %v2971_v6 = vld [vmem:[%s3663_s21] ss:$0 sm:$0xff] }
 0x57b   : > { %v1313_v8 = vpop.xlane.xlu0 %1312 }
 0x57c   : > { %v1321_v9 = vmul.f32 1.442695, %v1318_v7  ;;  %v1317_v10 = vsub.f32 %v1309_v4, %v1313_v8  ;;  %v2972_v8 = vld [vmem:[%s3669_s2] ss:$0 sm:$0xff] }
 0x57d   : > { %v1336_v11 = vpop.permute.xlu1 %1335 }
 0x57e   : > { %3334 = vpow2.f32 %v1321_v9  ;;  %v1319_v14 = vmul.f32 1.442695, %v1317_v10  ;;  %3179 = vmatprep.subr.mxu0 %v1336_v11 }
 0x57f   : > { %3180 = vmatpush3.msra.mxu0 %v1336_v11 }
 0x580   : > { %3336 = vpow2.f32 %v1319_v14 }
 0x58b   : > { %v3335_v15 = vpop.eup %3334 }
 0x58c   : > { %v1326_v16 = vsel %vm1019_vm3, %v3335_v15, 0.0 }
 0x58d   : > { %v3337_v17 = vpop.eup %3336  ;;  %1327 = vadd.xlane.f32.xlu0 %v1326_v16 }
 0x58e   : > { %v1323_v19 = vsel %vm1019_vm3, %v3337_v17, 0.0 }
 0x591   : > { %1324 = vadd.xlane.f32.xlu0 %v1323_v19 }
 0x5a7   : > { %1333 = vrot.lane.b32.xlu0 %v3545_v21, %s3853_s28  ;;  %v1433_v21 = vld [vmem:[%s3612_s27 + $0x18] sm:$0xff]  ;;  %s3652_s28 = scalar_lea.vmem %s3846_s13, %s3043_s26  ;;  %s3683_s26 = scalar_lea.vmem %s3845_s12, %s3528_s0 }
 0x5a8   : > { %v1670_v59 = vld [vmem:[%s3652_s28 + $0x38] sm:$0xff]  ;;  %v1667_v62 = vld [vmem:[%s3652_s28 + $0x20] sm:$0xff]  ;;  %v1665_v19 = vld [vmem:[%s3652_s28 + $0x10] sm:$0xff]  ;;  %s3877_s0 = smov 96  }
 0x616   : > { %v1328_v18 = vpop.xlane.xlu0 %1327 }
 0x617   : > { %3338 = vrcp.f32 %v1328_v18  ;;  %v1664_v18 = vld [vmem:[%s3652_s28 + $0x8] sm:$0xff] }
 0x61a   : > { %v1325_v20 = vpop.xlane.xlu0 %1324 }
 0x61b   : > { %3340 = vrcp.f32 %v1325_v20  ;;  %v1663_v20 = vld [vmem:[%s3652_s28] sm:$0xff] }
 0x61e   : > { %v1334_v22 = vpop.permute.xlu0 %1333 }
 0x61f   : > { %3181 = vmatprep.subr.mxu0 %v1334_v22 }
 0x620   : > { %3182 = vmatpush3.msra.mxu0 %v1334_v22  ;;  %v2973_v22 = vld [vmem:[%s3683_s26] ss:$0 sm:$0xff] }
 0x621   : > { %3186 = vmatprep.subr.mxu0 %v1433_v21 }
 0x624   : > { %v3339_v23 = vpop.eup %3338 }
 0x625   : > { %v1332_v26 = vmul.f32 %v3339_v23, %v3335_v15 }
 0x628   : > { %v3341_v24 = vpop.eup %3340 }
 0x629   : > { %v1331_v25 = vmul.f32 %v3341_v24, %v3337_v17  ;;  %v1666_v17 = vld [vmem:[%s3652_s28 + $0x18] sm:$0xff] }
 0x62b   : > { %3183 = vmatprep.mubr.msk.f32.mxu0 %vm1019_vm3, %v1331_v25 }
 0x62c   : > { %3184 = vmatmul.mubr.msk.f32.vlgmr.msra.gmra.mxu0 %vm1019_vm3, %v1332_v26 }
 0x62d   : > { %3187 = vmatpush3.msra.mxu0 %v1433_v21 }
 0x62e   : > { %3188 = vmatprep.subr.mxu0 %v1432_v27 }
 0x62f   : > { %3189 = vmatpush3.msra.mxu0 %v1432_v27 }
 0x630   : > { %3190 = vmatprep.subr.mxu0 %v1431_v28 }
 0x631   : > { %3191 = vmatpush3.msra.mxu0 %v1431_v28  ;;  %v2976_v28 = vld [vmem:[%s3692_s4] ss:$0 sm:$0xff] }
 0x632   : > { %3192 = vmatprep.subr.mxu0 %v1430_v29 }
 0x633   : > { %3193 = vmatpush3.msra.mxu0 %v1430_v29 }
 0x634   : > { %3208 = vmatprep.subr.mxu0 %v1670_v59 }
 0x6ec   : > { %v3185_v31 = vpop.f32.mrf.mxu0 }
 0x6ee   : > { %v1411_v32 = vpop.f32.mrf.mxu0 }
 0x6ef   : > { %1422 = vrot.lane.b32.xlu1 %v1411_v32, %s3857_s30 }
 0x6f3   : > { %1424 = vrot.lane.b32.xlu1 %v3185_v31, %s3857_s30  ;;  %s3643_s30 = scalar_lea.vmem %s3844_s11, %s3501_s20  ;;  %s3879_s20 = smov 112  }
 0x6f4   : > { %v1571_v56 = vld [vmem:[%s3643_s30 + $0x10] sm:$0xff]  ;;  %v1570_v57 = vld [vmem:[%s3643_s30 + $0x8] sm:$0xff]  ;;  %v1569_v58 = vld [vmem:[%s3643_s30] sm:$0xff] }
 0x761   : > { %v1423_v33 = vpop.permute.xlu1 %1422 }
 0x762   : > { %v1428_v35 = vsel %vm1019_vm3, %v3594_v61, %v1423_v33  ;;  %v1668_v61 = vld [vmem:[%s3652_s28 + $0x28] sm:$0xff] }
 0x763   : > { %3194 = vmatprep.mubr.msk.f32.mxu0 %vm931_vm2, %v1428_v35 }
 0x765   : > { %v1425_v36 = vpop.permute.xlu1 %1424 }
 0x766   : > { %v1429_v37 = vsel %vm1019_vm3, %v3592_v60, %v1425_v36  ;;  %v1669_v60 = vld [vmem:[%s3652_s28 + $0x30] sm:$0xff] }
 0x767   : > { %3195 = vmatmul.mubr.msk.f32.vlgmr.msra.gmra.mxu0 %vm931_vm2, %v1429_v37 }
 0x768   : > { %3209 = vmatpush3.msra.mxu0 %v1670_v59 }
 0x769   : > { %3210 = vmatprep.subr.mxu0 %v1669_v60 }
 0x76a   : > { %3211 = vmatpush3.msra.mxu0 %v1669_v60 }
 0x76b   : > { %3212 = vmatprep.subr.mxu0 %v1668_v61 }
 0x76c   : > { %3213 = vmatpush3.msra.mxu0 %v1668_v61 }
 0x76d   : > { %3214 = vmatprep.subr.mxu0 %v1667_v62 }
 0x76e   : > { %3215 = vmatpush3.msra.mxu0 %v1667_v62 }
 0x76f   : > { %3216 = vmatprep.subr.mxu0 %v1666_v17 }
 0x770   : > { %3217 = vmatpush3.msra.mxu0 %v1666_v17 }
 0x771   : > { %3218 = vmatprep.subr.mxu0 %v1665_v19 }
 0x772   : > { %3219 = vmatpush3.msra.mxu0 %v1665_v19 }
 0x773   : > { %3220 = vmatprep.subr.mxu0 %v1664_v18 }
 0x774   : > { %3221 = vmatpush3.msra.mxu0 %v1664_v18 }
 0x775   : > { %3222 = vmatprep.subr.mxu0 %v1663_v20 }
 0x776   : > { %3223 = vmatpush3.msra.mxu0 %v1663_v20 }
 0x827   : > { %v3196_v39 = vpop.f32.mrf.mxu0 }
 0x828   : > { %v1519_v40 = vadd.f32 %v3196_v39, %v2968_v38 }
 0x829   : > { %v1513_v41 = vpop.f32.mrf.mxu0 }
 0x82a   : > { %v1514_v42 = vadd.f32 %v2968_v38, %v1513_v41  ;;  %v1523_v43 = vadd.f32 %v1519_v40, %v3521_v13 }
 0x82c   : > { %v1529_v44 = vsel %vm931_vm2, %v1523_v43, 0.0  ;;  %v1522_v45 = vadd.f32 %v1514_v42, %v3519_v12  ;;  %v1572_v12 = vld [vmem:[%s3643_s30 + $0x18] sm:$0xff] }
 0x82d   : > { %1530 = vadd.xlane.f32.xlu1 %v1529_v44  ;;  %3197 = vmatprep.subr.mxu1 %v1572_v12 }
 0x82e   : > { %v1526_v46 = vsel %vm931_vm2, %v1522_v45, 0.0  ;;  %3198 = vmatpush3.msra.mxu1 %v1572_v12 }
 0x82f   : > { %1527 = vadd.xlane.f32.xlu0 %v1526_v46  ;;  %3199 = vmatprep.subr.mxu1 %v1571_v56 }
 0x830   : > { %3200 = vmatpush3.msra.mxu1 %v1571_v56 }
 0x831   : > { %3201 = vmatprep.subr.mxu1 %v1570_v57 }
 0x832   : > { %3202 = vmatpush3.msra.mxu1 %v1570_v57 }
 0x833   : > { %3203 = vmatprep.subr.mxu1 %v1569_v58 }
 0x834   : > { %3204 = vmatpush3.msra.mxu1 %v1569_v58  ;;  %v2979_v58 = vld [vmem:[%s3707_s29] ss:$0 sm:$0xff] }
 0x8b6   : > { %v1531_v47 = vpop.xlane.xlu1 %1530 }
 0x8b7   : > { %v1534_v48 = vmul.f32 0.03125, %v1531_v47 }
 0x8b8   : > { %v1528_v49 = vpop.xlane.xlu0 %1527 }
 0x8b9   : > { %v1533_v50 = vmul.f32 0.03125, %v1528_v49  ;;  %v1536_v51 = vsub.f32 %v1523_v43, %v1534_v48  ;;  %v2984_v49 = vld [vmem:[%s3507_s23 + $0x38] sm:$0xff] }
 0x8ba   : > { %3227 = vmatprep.subr.mxu1 %v2984_v49 }
 0x8bb   : > { %v1535_v52 = vsub.f32 %v1522_v45, %v1533_v50  ;;  %v1538_v13 = vmul.f32 %v1536_v51, %v1536_v51  ;;  %v2983_v50 = vld [vmem:[%s3507_s23 + $0x30] sm:$0xff] }
 0x8bd   : > { %v1537_v53 = vmul.f32 %v1535_v52, %v1535_v52  ;;  %v1542_v55 = vsel %vm931_vm2, %v1538_v13, 0.0 }
 0x8bf   : > { %v1539_v54 = vsel %vm931_vm2, %v1537_v53, 0.0 }
 0x8c0   : > { %1540 = vadd.xlane.f32.xlu0 %v1539_v54 }
 0x8c4   : > { %1543 = vadd.xlane.f32.xlu0 %v1542_v55 }
 0x949   : > { %v1541_v63 = vpop.xlane.xlu0 %1540 }
 0x94a   : > { %v1545_v0 = vmul.f32 0.03125, %v1541_v63  ;;  %v2980_v63 = vld [vmem:[%s3714_s5] ss:$0 sm:$0xff] }
 0x94c   : > { %v1547_v1 = vadd.f32 1e-05, %v1545_v0 }
 0x94d   : > { %v1544_v2 = vpop.xlane.xlu0 %1543 }
 0x94e   : > { %3342 = vrsqrt.f32 %v1547_v1  ;;  %v1546_v3 = vmul.f32 0.03125, %v1544_v2 }
 0x950   : > { %v1548_v4 = vadd.f32 1e-05, %v1546_v3  ;;  %v2986_v3 = vld [vmem:[%s3534_s19 + $0x1] ss:$0 sm:$0xff]  ;;  %s3880_s19 = smov 64  }
 0x952   : > { %3344 = vrsqrt.f32 %v1548_v4 }
 0x95b   : > { %v3343_v5 = vpop.eup %3342 }
 0x95c   : > { %v1551_v7 = vmul.f32 %v3343_v5, %v1535_v52  ;;  %v2981_v52 = vld [vmem:[%s3507_s23 + $0x20] sm:$0xff] }
 0x95e   : > { %v1559_v9 = vmul.f32 %v2971_v6, %v1551_v7 }
 0x95f   : > { %v3345_v10 = vpop.eup %3344 }
 0x960   : > { %v1552_v11 = vmul.f32 %v3345_v10, %v1536_v51  ;;  %v1567_v14 = vadd.f32 %v2972_v8, %v1559_v9  ;;  %v2982_v51 = vld [vmem:[%s3507_s23 + $0x28] sm:$0xff]  ;;  %s3881_s23 = smov 48  }
 0x962   : > { %v1560_v15 = vmul.f32 %v2971_v6, %v1552_v11  ;;  %3205 = vmatprep.mubr.msk.f32.mxu1 %vm931_vm2, %v1567_v14 }
 0x964   : > { %v1568_v16 = vadd.f32 %v2972_v8, %v1560_v15 }
 0x966   : > { %3206 = vmatmul.mubr.msk.f32.vlgmr.msra.gmra.mxu1 %vm931_vm2, %v1568_v16 }
 0x967   : > { %3228 = vmatpush3.msra.mxu1 %v2984_v49 }
 0x968   : > { %3229 = vmatprep.subr.mxu1 %v2983_v50 }
 0x969   : > { %3230 = vmatpush3.msra.mxu1 %v2983_v50 }
 0x96a   : > { %3231 = vmatprep.subr.mxu1 %v2982_v51 }
 0x96b   : > { %3232 = vmatpush3.msra.mxu1 %v2982_v51 }
 0x96c   : > { %3233 = vmatprep.subr.mxu1 %v2981_v52 }
 0x96d   : > { %3234 = vmatpush3.msra.mxu1 %v2981_v52 }
 0xa26   : > { %v3207_v23 = vpop.f32.mrf.mxu1 }
 0xa27   : > { %v1658_v24 = vadd.f32 %v3207_v23, %v2973_v22 }
 0xa28   : > { %v1652_v25 = vpop.f32.mrf.mxu1 }
 0xa29   : > { %v1653_v26 = vadd.f32 %v2973_v22, %v1652_v25  ;;  %v1662_v27 = vmax.f32 %v1658_v24, 0.0 }
 0xa2b   : > { %v1661_v21 = vmax.f32 %v1653_v26, 0.0 }
 0xa2d   : > { %3224 = vmatprep.mubr.msk.f32.mxu0 %vm1678_vm6, %v1661_v21 }
 0xa2e   : > { %3225 = vmatmul.mubr.msk.f32.vlgmr.msra.gmra.mxu0 %vm1678_vm6, %v1662_v27 }
 0xaee   : > { %v3226_v29 = vpop.f32.mrf.mxu0 }
 0xaef   : > { %v1757_v31 = vadd.f32 %v3226_v29, %v2976_v28 }
 0xaf0   : > { %v1751_v32 = vpop.f32.mrf.mxu0 }
 0xaf1   : > { %v1752_v33 = vadd.f32 %v2976_v28, %v1751_v32  ;;  %v1761_v35 = vadd.f32 %v1757_v31, %v1568_v16 }
 0xaf3   : > { %v1767_v36 = vsel %vm931_vm2, %v1761_v35, 0.0  ;;  %v1760_v37 = vadd.f32 %v1752_v33, %v1567_v14 }
 0xaf4   : > { %1768 = vadd.xlane.f32.xlu0 %v1767_v36 }
 0xaf5   : > { %v1764_v38 = vsel %vm931_vm2, %v1760_v37, 0.0 }
 0xaf6   : > { %1765 = vadd.xlane.f32.xlu1 %v1764_v38 }
 0xb7d   : > { %v1769_v39 = vpop.xlane.xlu0 %1768 }
 0xb7e   : > { %v1771_v40 = vmul.f32 0.03125, %v1769_v39 }
 0xb7f   : > { %v1766_v41 = vpop.xlane.xlu1 %1765 }
 0xb80   : > { %v1773_v42 = vsub.f32 %v1761_v35, %v1771_v40  ;;  %v1770_v43 = vmul.f32 0.03125, %v1766_v41 }
 0xb82   : > { %v1772_v44 = vsub.f32 %v1760_v37, %v1770_v43  ;;  %v1775_v45 = vmul.f32 %v1773_v42, %v1773_v42 }
 0xb84   : > { %v1779_v46 = vsel %vm931_vm2, %v1775_v45, 0.0  ;;  %v1774_v47 = vmul.f32 %v1772_v44, %v1772_v44 }
 0xb85   : > { %1780 = vadd.xlane.f32.xlu0 %v1779_v46 }
 0xb86   : > { %v1776_v48 = vsel %vm931_vm2, %v1774_v47, 0.0 }
 0xb87   : > { %1777 = vadd.xlane.f32.xlu1 %v1776_v48 }
 0xc0e   : > { %v1781_v53 = vpop.xlane.xlu0 %1780 }
 0xc0f   : > { %v1783_v54 = vmul.f32 0.03125, %v1781_v53 }
 0xc10   : > { %v1778_v13 = vpop.xlane.xlu1 %1777 }
 0xc11   : > { %v1785_v55 = vadd.f32 1e-05, %v1783_v54  ;;  %v1782_v12 = vmul.f32 0.03125, %v1778_v13 }
 0xc13   : > { %3346 = vrsqrt.f32 %v1785_v55  ;;  %v1784_v56 = vadd.f32 1e-05, %v1782_v12 }
 0xc15   : > { %3348 = vrsqrt.f32 %v1784_v56 }
 0xc20   : > { %v3347_v57 = vpop.eup %3346 }
 0xc21   : > { %v1789_v59 = vmul.f32 %v3347_v57, %v1773_v42 }
 0xc22   : > { %v3349_v60 = vpop.eup %3348 }
 0xc23   : > { %v1788_v61 = vmul.f32 %v3349_v60, %v1772_v44  ;;  %v1797_v62 = vmul.f32 %v2979_v58, %v1789_v59 }
 0xc25   : > { %v1796_v0 = vmul.f32 %v2979_v58, %v1788_v61  ;;  %v3719_v2 = vadd.f32 %v2980_v63, %v1797_v62 }
 0xc27   : > { %v3717_v1 = vadd.f32 %v2980_v63, %v1796_v0 }
 0xc29   : > { %3235 = vmatprep.mubr.msk.f32.mxu1 %vm931_vm2, %v3717_v1 }
 0xc2a   : > { %3236 = vmatmul.mubr.msk.f32.vlgmr.msra.gmra.mxu1 %vm931_vm2, %v3719_v2 }
 0xcea   : > { %v3237_v4 = vpop.f32.mrf.mxu1 }
 0xceb   : > { %v3726_v5 = vadd.f32 %v3237_v4, %v2986_v3  ;;  %v3004_v4 = vld [vmem:[%s3612_s27 + $0x38] sm:$0xff] }
 0xcec   : > { %v1891_v6 = vpop.f32.mrf.mxu1 }
 0xced   : > { %v3728_v7 = vadd.f32 %v2986_v3, %v1891_v6  ;;  %1904 = vrot.lane.b32.xlu1 %v3726_v5, %s3877_s0  ;;  %v3002_v6 = vld [vmem:[%s3612_s27 + $0x28] sm:$0xff] }
 0xcef   : > { %1902 = vrot.lane.b32.xlu0 %v3728_v7, %s3877_s0  ;;  %3242 = vmatprep.mubr.msk.f32.mxu1 %vm1019_vm3, %v3728_v7 }
 0xcf1   : > { %2108 = vrot.lane.b32.xlu1 %v3726_v5, %s3878_s3 }
 0xcf3   : > { %2102 = vrot.lane.b32.xlu0 %v3728_v7, %s3879_s20 }
 0xcf5   : > { %2106 = vrot.lane.b32.xlu1 %v3728_v7, %s3878_s3 }
 0xcf9   : > { %2104 = vrot.lane.b32.xlu1 %v3726_v5, %s3879_s20 }
 0xd5f   : > { %v1905_v8 = vpop.permute.xlu1 %1904 }
 0xd60   : > { %3238 = vmatprep.subr.msk.mxu1 %vm1019_vm3, %v1905_v8 }
 0xd61   : > { %3239 = vmatpush3.xpose.msk.msra.mxu1 %vm1019_vm3, %v1905_v8  ;;  %v1903_v9 = vpop.permute.xlu0 %1902 }
 0xd62   : > { %3240 = vmatprep.subr.msk.mxu1 %vm1019_vm3, %v1903_v9 }
 0xd63   : > { %v2109_v10 = vpop.permute.xlu1 %2108 }
 0xd65   : > { %3241 = vmatpush3.xpose.msk.msra.mxu1 %vm1019_vm3, %v1903_v9  ;;  %v2103_v11 = vpop.permute.xlu0 %2102 }
 0xd66   : > { %3252 = vmatprep.subr.msk.mxu1 %vm1019_vm3, %v2109_v10 }
 0xd67   : > { %v2107_v14 = vpop.permute.xlu1 %2106 }
 0xd68   : > { %3243 = vmatmul.mubr.msk.f32.vlgmr.msra.gmra.mxu1 %vm1019_vm3, %v3726_v5 }
 0xd69   : > { %3253 = vmatpush3.xpose.msk.msra.mxu1 %vm1019_vm3, %v2109_v10  ;;  %3256 = vmatprep.mubr.msk.f32.mxu1 %vm1019_vm3, %v2103_v11 }
 0xd6a   : > { %3254 = vmatprep.subr.msk.mxu1 %vm1019_vm3, %v2107_v14 }
 0xd6b   : > { %v2105_v15 = vpop.permute.xlu1 %2104 }
 0xd6d   : > { %3255 = vmatpush3.xpose.msk.msra.mxu1 %vm1019_vm3, %v2107_v14 }
 0xd70   : > { %3257 = vmatmul.mubr.msk.f32.vlgmr.msra.gmra.mxu1 %vm1019_vm3, %v2105_v15 }
 0xe28   : > { %v3244_v16 = vpop.f32.mrf.mxu1 }
 0xe29   : > { %v1990_v17 = vmul.f32 0.25, %v3244_v16 }
 0xe2a   : > { %v1980_v19 = vpop.f32.mrf.mxu1 }
 0xe2b   : > { %v1989_v18 = vmul.f32 0.25, %v1980_v19  ;;  %v1992_v20 = vadd.f32 %v1990_v17, %v3562_v30  ;;  %v3006_v19 = vld [vmem:[%s3630_s1 + $0x1] ss:$0 sm:$0xff] }
 0xe2d   : > { %v1996_v22 = vsel %vm1019_vm3, %v1992_v20, -inf  ;;  %v1991_v23 = vadd.f32 %v1989_v18, %v3565_v34 }
 0xe2e   : > { %1997 = vmax.xlane.f32.xlu1 %v1996_v22 }
 0xe2f   : > { %v1993_v24 = vsel %vm1019_vm3, %v1991_v23, -inf }
 0xe30   : > { %v3258_v25 = vpop.f32.mrf.mxu1  ;;  %1994 = vmax.xlane.f32.xlu0 %v1993_v24 }
 0xe31   : > { %v2194_v21 = vmul.f32 0.25, %v3258_v25 }
 0xe32   : > { %v2184_v26 = vpop.f32.mrf.mxu1 }
 0xe33   : > { %v2193_v27 = vmul.f32 0.25, %v2184_v26  ;;  %v2196_v31 = vadd.f32 %v2194_v21, %v3562_v30 }
 0xe35   : > { %v2195_v28 = vadd.f32 %v2193_v27, %v3565_v34  ;;  %v2200_v32 = vsel %vm1019_vm3, %v2196_v31, -inf }
 0xe37   : > { %v2197_v29 = vsel %vm1019_vm3, %v2195_v28, -inf }
 0xe38   : > { %2198 = vmax.xlane.f32.xlu0 %v2197_v29 }
 0xe3c   : > { %2201 = vmax.xlane.f32.xlu0 %v2200_v32 }
 0xe3f   : > { %2017 = vrot.lane.b32.xlu1 %v3726_v5, %s3880_s19 }
 0xeb7   : > { %v1998_v33 = vpop.xlane.xlu1 %1997 }
 0xeb8   : > { %v2000_v35 = vsub.f32 %v1992_v20, %v1998_v33 }
 0xeb9   : > { %v1995_v36 = vpop.xlane.xlu0 %1994 }
 0xeba   : > { %v2003_v37 = vmul.f32 1.442695, %v2000_v35  ;;  %v1999_v38 = vsub.f32 %v1991_v23, %v1995_v36 }
 0xebb   : > { %v2018_v39 = vpop.permute.xlu1 %2017 }
 0xebc   : > { %3350 = vpow2.f32 %v2003_v37  ;;  %v2001_v40 = vmul.f32 1.442695, %v1999_v38  ;;  %3245 = vmatprep.subr.mxu0 %v2018_v39  ;;  %v3016_v37 = vld [vmem:[%s3643_s30 + $0x38] sm:$0xff]  ;;  %v3015_v38 = vld [vmem:[%s3643_s30 + $0x30] sm:$0xff] }
 0xebd   : > { %3246 = vmatpush3.msra.mxu0 %v2018_v39  ;;  %3277 = vmatprep.subr.mxu1 %v3016_v37  ;;  %v3014_v39 = vld [vmem:[%s3643_s30 + $0x28] sm:$0xff] }
 0xebe   : > { %3352 = vpow2.f32 %v2001_v40  ;;  %3278 = vmatpush3.msra.mxu1 %v3016_v37  ;;  %v3013_v40 = vld [vmem:[%s3643_s30 + $0x20] sm:$0xff] }
 0xebf   : > { %3279 = vmatprep.subr.mxu1 %v3015_v38  ;;  %v3036_v37 = vld [vmem:[%s3714_s5 + $0x1] ss:$0 sm:$0xff] }
 0xec0   : > { %3280 = vmatpush3.msra.mxu1 %v3015_v38 }
 0xec1   : > { %v2199_v34 = vpop.xlane.xlu0 %2198  ;;  %3281 = vmatprep.subr.mxu1 %v3014_v39 }
 0xec2   : > { %v2203_v49 = vsub.f32 %v2195_v28, %v2199_v34  ;;  %3282 = vmatpush3.msra.mxu1 %v3014_v39  ;;  %v3028_v34 = vld [vmem:[%s3652_s28 + $0x78] sm:$0xff] }
 0xec3   : > { %3283 = vmatprep.subr.mxu1 %v3013_v40 }
 0xec4   : > { %v2205_v50 = vmul.f32 1.442695, %v2203_v49  ;;  %3284 = vmatpush3.msra.mxu1 %v3013_v40 }
 0xec5   : > { %v2202_v30 = vpop.xlane.xlu0 %2201 }
 0xec6   : > { %v2204_v41 = vsub.f32 %v2196_v31, %v2202_v30  ;;  %v3027_v30 = vld [vmem:[%s3652_s28 + $0x70] sm:$0xff] }
 0xec8   : > { %v2207_v42 = vmul.f32 1.442695, %v2204_v41  ;;  %v3026_v41 = vld [vmem:[%s3652_s28 + $0x68] sm:$0xff] }
 0xec9   : > { %v3351_v43 = vpop.eup %3350 }
 0xeca   : > { %3354 = vpow2.f32 %v2207_v42  ;;  %v2008_v44 = vsel %vm1019_vm3, %v3351_v43, 0.0  ;;  %v3025_v42 = vld [vmem:[%s3652_s28 + $0x60] sm:$0xff] }
 0xecb   : > { %v3353_v45 = vpop.eup %3352  ;;  %2009 = vadd.xlane.f32.xlu0 %v2008_v44  ;;  %3356 = vpow2.f32 %v2205_v50  ;;  %v3011_v50 = vld [vmem:[%s3663_s21 + $0x1] ss:$0 sm:$0xff] }
 0xecc   : > { %v2005_v46 = vsel %vm1019_vm3, %v3353_v45, 0.0 }
 0xecd   : > { %2006 = vadd.xlane.f32.xlu1 %v2005_v46 }
 0xed7   : > { %v3355_v47 = vpop.eup %3354 }
 0xed8   : > { %v2212_v48 = vsel %vm1019_vm3, %v3355_v47, 0.0  ;;  %v3357_v51 = vpop.eup %3356 }
 0xed9   : > { %2213 = vadd.xlane.f32.xlu0 %v2212_v48  ;;  %v2209_v52 = vsel %vm1019_vm3, %v3357_v51, 0.0 }
 0xede   : > { %2221 = vrot.lane.b32.xlu1 %v3726_v5, %s3881_s23  ;;  %v3003_v5 = vld [vmem:[%s3612_s27 + $0x30] sm:$0xff] }
 0xeef   : > { %2015 = vrot.lane.b32.xlu0 %v3728_v7, %s3880_s19 }
 0xf02   : > { %2210 = vadd.xlane.f32.xlu1 %v2209_v52  ;;  %v3012_v52 = vld [vmem:[%s3669_s2 + $0x1] ss:$0 sm:$0xff]  ;;  %s3883_s2 = sshll.u32 %s3885_s25, 4 }
 0xf03   : > { %s798_s1 = scalar_lea.vmem %s3850_s17, %s3883_s2 }
 0xf13   : > { %2219 = vrot.lane.b32.xlu1 %v3728_v7, %s3881_s23  ;;  %v3001_v7 = vld [vmem:[%s3612_s27 + $0x20] sm:$0xff] }
 0xf54   : > { %v2010_v53 = vpop.xlane.xlu0 %2009 }
 0xf55   : > { %3358 = vrcp.f32 %v2010_v53 }
 0xf56   : > { %v2007_v54 = vpop.xlane.xlu1 %2006 }
 0xf57   : > { %3360 = vrcp.f32 %v2007_v54 }
 0xf5a   : > { %v2222_v59 = vpop.permute.xlu1 %2221 }
 0xf62   : > { %v2214_v13 = vpop.xlane.xlu0 %2213  ;;  %v3359_v55 = vpop.eup %3358 }
 0xf63   : > { %v2014_v58 = vmul.f32 %v3359_v55, %v3351_v43  ;;  %3362 = vrcp.f32 %v2214_v13 }
 0xf64   : > { %v3361_v12 = vpop.eup %3360 }
 0xf65   : > { %v2013_v56 = vmul.f32 %v3361_v12, %v3353_v45 }
 0xf66   : > { %v2016_v57 = vpop.permute.xlu0 %2015 }
 0xf67   : > { %3247 = vmatprep.subr.mxu0 %v2016_v57  ;;  %3249 = vmatprep.mubr.msk.f32.mxu0 %vm1019_vm3, %v2013_v56 }
 0xf68   : > { %3248 = vmatpush3.msra.mxu0 %v2016_v57  ;;  %v3024_v57 = vld [vmem:[%s3652_s28 + $0x58] sm:$0xff] }
 0xf69   : > { %3250 = vmatmul.mubr.msk.f32.vlgmr.msra.gmra.mxu0 %vm1019_vm3, %v2014_v58  ;;  %3259 = vmatprep.subr.mxu0 %v2222_v59  ;;  %v3023_v58 = vld [vmem:[%s3652_s28 + $0x50] sm:$0xff] }
 0xf6a   : > { %3260 = vmatpush3.msra.mxu0 %v2222_v59  ;;  %v3022_v59 = vld [vmem:[%s3652_s28 + $0x48] sm:$0xff] }
 0xf70   : > { %v3363_v62 = vpop.eup %3362 }
 0xf71   : > { %v2218_v3 = vmul.f32 %v3363_v62, %v3355_v47 }
 0xf8b   : > { %v2211_v60 = vpop.xlane.xlu1 %2210 }
 0xf8c   : > { %3364 = vrcp.f32 %v2211_v60  ;;  %v3021_v60 = vld [vmem:[%s3652_s28 + $0x40] sm:$0xff] }
 0xf8f   : > { %v2220_v61 = vpop.permute.xlu1 %2219 }
 0xf90   : > { %3261 = vmatprep.subr.mxu0 %v2220_v61 }
 0xf91   : > { %3262 = vmatpush3.msra.mxu0 %v2220_v61  ;;  %v3018_v61 = vld [vmem:[%s3683_s26 + $0x1] ss:$0 sm:$0xff] }
 0xf92   : > { %3266 = vmatprep.subr.mxu0 %v3004_v4 }
 0xf99   : > { %v3365_v63 = vpop.eup %3364 }
 0xf9a   : > { %v2217_v0 = vmul.f32 %v3365_v63, %v3357_v51 }
 0xf9c   : > { %3263 = vmatprep.mubr.msk.f32.mxu0 %vm1019_vm3, %v2217_v0 }
 0xf9d   : > { %3264 = vmatmul.mubr.msk.f32.vlgmr.msra.gmra.mxu0 %vm1019_vm3, %v2218_v3 }
 0xf9e   : > { %3267 = vmatpush3.msra.mxu0 %v3004_v4 }
 0xf9f   : > { %3268 = vmatprep.subr.mxu0 %v3003_v5 }
 0xfa0   : > { %3269 = vmatpush3.msra.mxu0 %v3003_v5 }
 0xfa1   : > { %3270 = vmatprep.subr.mxu0 %v3002_v6 }
 0xfa2   : > { %3271 = vmatpush3.msra.mxu0 %v3002_v6  ;;  %v3030_v6 = vld [vmem:[%s3692_s4 + $0x1] ss:$0 sm:$0xff] }
 0xfa3   : > { %3272 = vmatprep.subr.mxu0 %v3001_v7 }
 0xfa4   : > { %3273 = vmatpush3.msra.mxu0 %v3001_v7 }
 0xfa5   : > { %3288 = vmatprep.subr.mxu0 %v3028_v34 }
0x1029   : > { %v3251_v8 = vpop.f32.mrf.mxu0 }
0x102b   : > { %v2093_v9 = vpop.f32.mrf.mxu0 }
0x105d   : > { %v3265_v10 = vpop.f32.mrf.mxu0 }
0x105e   : > { %2310 = vrot.lane.b32.xlu1 %v3265_v10, %s3882_s18 }
0x105f   : > { %v2297_v11 = vpop.f32.mrf.mxu0 }
0x1060   : > { %2308 = vrot.lane.b32.xlu0 %v2297_v11, %s3882_s18 }
0x10d0   : > { %v2311_v14 = vpop.permute.xlu1 %2310 }
0x10d1   : > { %v2315_v17 = vsel %vm1019_vm3, %v3251_v8, %v2311_v14 }
0x10d2   : > { %v2309_v15 = vpop.permute.xlu0 %2308 }
0x10d3   : > { %v2314_v16 = vsel %vm1019_vm3, %v2093_v9, %v2309_v15 }
0x10d4   : > { %3274 = vmatprep.mubr.msk.f32.mxu0 %vm931_vm2, %v2314_v16 }
0x10d5   : > { %3275 = vmatmul.mubr.msk.f32.vlgmr.msra.gmra.mxu0 %vm931_vm2, %v2315_v17 }
0x10d6   : > { %3289 = vmatpush3.msra.mxu0 %v3028_v34 }
0x10d7   : > { %3290 = vmatprep.subr.mxu0 %v3027_v30 }
0x10d8   : > { %3291 = vmatpush3.msra.mxu0 %v3027_v30 }
0x10d9   : > { %3292 = vmatprep.subr.mxu0 %v3026_v41 }
0x10da   : > { %3293 = vmatpush3.msra.mxu0 %v3026_v41 }
0x10db   : > { %3294 = vmatprep.subr.mxu0 %v3025_v42 }
0x10dc   : > { %3295 = vmatpush3.msra.mxu0 %v3025_v42 }
0x10dd   : > { %3296 = vmatprep.subr.mxu0 %v3024_v57 }
0x10de   : > { %3297 = vmatpush3.msra.mxu0 %v3024_v57 }
0x10df   : > { %3298 = vmatprep.subr.mxu0 %v3023_v58 }
0x10e0   : > { %3299 = vmatpush3.msra.mxu0 %v3023_v58 }
0x10e1   : > { %3300 = vmatprep.subr.mxu0 %v3022_v59 }
0x10e2   : > { %3301 = vmatpush3.msra.mxu0 %v3022_v59 }
0x10e3   : > { %3302 = vmatprep.subr.mxu0 %v3021_v60 }
0x10e4   : > { %3303 = vmatpush3.msra.mxu0 %v3021_v60 }
0x1195   : > { %v3276_v18 = vpop.f32.mrf.mxu0 }
0x1196   : > { %v2407_v20 = vadd.f32 %v3276_v18, %v3006_v19 }
0x1197   : > { %v2401_v22 = vpop.f32.mrf.mxu0 }
0x1198   : > { %v2402_v23 = vadd.f32 %v3006_v19, %v2401_v22  ;;  %v2411_v24 = vadd.f32 %v2407_v20, %v3719_v2 }
0x119a   : > { %v2419_v25 = vsel %vm931_vm2, %v2411_v24, 0.0  ;;  %v2410_v26 = vadd.f32 %v2402_v23, %v3717_v1 }
0x119b   : > { %2420 = vadd.xlane.f32.xlu1 %v2419_v25 }
0x119c   : > { %v2416_v21 = vsel %vm931_vm2, %v2410_v26, 0.0 }
0x119d   : > { %2417 = vadd.xlane.f32.xlu0 %v2416_v21 }
0x1224   : > { %v2421_v27 = vpop.xlane.xlu1 %2420 }
0x1225   : > { %v2423_v28 = vmul.f32 0.03125, %v2421_v27 }
0x1226   : > { %v2418_v29 = vpop.xlane.xlu0 %2417 }
0x1227   : > { %v2422_v31 = vmul.f32 0.03125, %v2418_v29  ;;  %v2425_v32 = vsub.f32 %v2411_v24, %v2423_v28 }
0x1229   : > { %v2424_v33 = vsub.f32 %v2410_v26, %v2422_v31  ;;  %v2427_v36 = vmul.f32 %v2425_v32, %v2425_v32 }
0x122b   : > { %v2426_v35 = vmul.f32 %v2424_v33, %v2424_v33  ;;  %v2431_v1 = vsel %vm931_vm2, %v2427_v36, 0.0 }
0x122d   : > { %v2428_v2 = vsel %vm931_vm2, %v2426_v35, 0.0 }
0x122e   : > { %2429 = vadd.xlane.f32.xlu0 %v2428_v2  ;;  %v3035_v2 = vld [vmem:[%s3707_s29 + $0x1] ss:$0 sm:$0xff] }
0x1232   : > { %2432 = vadd.xlane.f32.xlu0 %v2431_v1 }
0x12b7   : > { %v2430_v43 = vpop.xlane.xlu0 %2429 }
0x12b8   : > { %v2434_v44 = vmul.f32 0.03125, %v2430_v43 }
0x12ba   : > { %v2436_v45 = vadd.f32 1e-05, %v2434_v44 }
0x12bb   : > { %v2433_v46 = vpop.xlane.xlu0 %2432 }
0x12bc   : > { %3366 = vrsqrt.f32 %v2436_v45  ;;  %v2435_v47 = vmul.f32 0.03125, %v2433_v46 }
0x12be   : > { %v2437_v48 = vadd.f32 1e-05, %v2435_v47 }
0x12c0   : > { %3368 = vrsqrt.f32 %v2437_v48 }
0x12c9   : > { %v3367_v49 = vpop.eup %3366 }
0x12ca   : > { %v2440_v51 = vmul.f32 %v3367_v49, %v2424_v33 }
0x12cc   : > { %v2448_v53 = vmul.f32 %v3011_v50, %v2440_v51 }
0x12cd   : > { %v3369_v54 = vpop.eup %3368 }
0x12ce   : > { %v2441_v13 = vmul.f32 %v3369_v54, %v2425_v32  ;;  %v2456_v55 = vadd.f32 %v3012_v52, %v2448_v53 }
0x12d0   : > { %v2449_v12 = vmul.f32 %v3011_v50, %v2441_v13  ;;  %3285 = vmatprep.mubr.msk.f32.mxu1 %vm931_vm2, %v2456_v55 }
0x12d2   : > { %v2457_v56 = vadd.f32 %v3012_v52, %v2449_v12 }
0x12d4   : > { %3286 = vmatmul.mubr.msk.f32.vlgmr.msra.gmra.mxu1 %vm931_vm2, %v2457_v56 }
0x1394   : > { %v3287_v62 = vpop.f32.mrf.mxu1 }
0x1395   : > { %v2549_v63 = vadd.f32 %v3287_v62, %v3018_v61 }
0x1396   : > { %v2543_v0 = vpop.f32.mrf.mxu1 }
0x1397   : > { %v2544_v3 = vadd.f32 %v3018_v61, %v2543_v0  ;;  %v2553_v5 = vmax.f32 %v2549_v63, 0.0 }
0x1399   : > { %v2552_v4 = vmax.f32 %v2544_v3, 0.0 }
0x139b   : > { %3304 = vmatprep.mubr.msk.f32.mxu0 %vm1678_vm6, %v2552_v4 }
0x139c   : > { %3305 = vmatmul.mubr.msk.f32.vlgmr.msra.gmra.mxu0 %vm1678_vm6, %v2553_v5 }
0x145c   : > { %v3306_v7 = vpop.f32.mrf.mxu0 }
0x145d   : > { %v2649_v8 = vadd.f32 %v3306_v7, %v3030_v6 }
0x145e   : > { %v2643_v9 = vpop.f32.mrf.mxu0 }
0x145f   : > { %v2644_v10 = vadd.f32 %v3030_v6, %v2643_v9  ;;  %v2653_v11 = vadd.f32 %v2649_v8, %v2457_v56 }
0x1461   : > { %v2661_v14 = vsel %vm931_vm2, %v2653_v11, 0.0  ;;  %v2652_v15 = vadd.f32 %v2644_v10, %v2456_v55 }
0x1462   : > { %2662 = vadd.xlane.f32.xlu0 %v2661_v14 }
0x1463   : > { %v2658_v16 = vsel %vm931_vm2, %v2652_v15, 0.0 }
0x1464   : > { %2659 = vadd.xlane.f32.xlu1 %v2658_v16 }
0x14eb   : > { %v2663_v17 = vpop.xlane.xlu0 %2662 }
0x14ec   : > { %v2665_v19 = vmul.f32 0.03125, %v2663_v17 }
0x14ed   : > { %v2660_v18 = vpop.xlane.xlu1 %2659 }
0x14ee   : > { %v2667_v20 = vsub.f32 %v2653_v11, %v2665_v19  ;;  %v2664_v22 = vmul.f32 0.03125, %v2660_v18 }
0x14f0   : > { %v2666_v23 = vsub.f32 %v2652_v15, %v2664_v22  ;;  %v2669_v24 = vmul.f32 %v2667_v20, %v2667_v20 }
0x14f2   : > { %v2673_v25 = vsel %vm931_vm2, %v2669_v24, 0.0  ;;  %v2668_v26 = vmul.f32 %v2666_v23, %v2666_v23 }
0x14f3   : > { %2674 = vadd.xlane.f32.xlu0 %v2673_v25 }
0x14f4   : > { %v2670_v21 = vsel %vm931_vm2, %v2668_v26, 0.0 }
0x14f5   : > { %2671 = vadd.xlane.f32.xlu1 %v2670_v21 }
0x157c   : > { %v2675_v27 = vpop.xlane.xlu0 %2674 }
0x157d   : > { %v2677_v28 = vmul.f32 0.03125, %v2675_v27 }
0x157e   : > { %v2672_v29 = vpop.xlane.xlu1 %2671 }
0x157f   : > { %v2679_v31 = vadd.f32 1e-05, %v2677_v28  ;;  %v2676_v32 = vmul.f32 0.03125, %v2672_v29 }
0x1581   : > { %3370 = vrsqrt.f32 %v2679_v31  ;;  %v2678_v33 = vadd.f32 1e-05, %v2676_v32 }
0x1583   : > { %3372 = vrsqrt.f32 %v2678_v33 }
0x158e   : > { %v3371_v35 = vpop.eup %3370 }
0x158f   : > { %v2683_v36 = vmul.f32 %v3371_v35, %v2667_v20 }
0x1590   : > { %v3373_v1 = vpop.eup %3372 }
0x1591   : > { %v2691_v38 = vmul.f32 %v3035_v2, %v2683_v36  ;;  %v2682_v39 = vmul.f32 %v3373_v1, %v2666_v23 }
0x1593   : > { %v2699_v40 = vadd.f32 %v3036_v37, %v2691_v38  ;;  %v2690_v34 = vmul.f32 %v3035_v2, %v2682_v39 }
0x1595   : > { %2701 = vst.msk [vmem:[%s798_s1 + $0x8] sm:$0xff] %vm931_vm2, %v2699_v40  ;;  %v2698_v30 = vadd.f32 %v3036_v37, %v2690_v34 }
0x1597   : > { %2700 = vst.msk [vmem:[%s798_s1] sm:$0xff] %vm931_vm2, %v2698_v30 }
0x1598 PF: > { %s27_s24 = sadd.s32 1, %s3380_s24  }
0x1599   : > { %p24_p4 = scmp.ge.s32.totalorder %s27_s24, 4  }
0x159b   :  { %26 = sbr.rel (!%p24_p4) target bundleno = 7 (0x7), region = 172 }

// kernel: acformer_forward.3
= control target key start
LH: loop header
LB: loop body
LE: loop exit
PB: predicated region body
PF: predicated region fallthrough
CT: control target
= control target key end

     0   :  { %s4831_s6 = smov 1   ;;  %s4832_s10 = smov 2   ;;  %s5781_s0 = inlined_call_operand.smem [shape: u32[40], index: -1, kind: input, shape index: {}] }
   0x1   :  { %s4889_s5 = sld [smem:[%s5781_s0]]   ;;  %s4833_s14 = smov 3  }
   0x2   :  { %s4894_s9 = sld [smem:[%s5781_s0 + %s4831_s6]]   ;;  %s4834_s18 = smov 4  }
   0x3   :  { %s4899_s13 = sld [smem:[%s5781_s0 + %s4832_s10]]   ;;  %s4835_s22 = smov 5  }
   0x4   :  { %s4904_s17 = sld [smem:[%s5781_s0 + %s4833_s14]]   ;;  %s4836_s26 = smov 6  }
   0x5   :  { %s4909_s21 = sld [smem:[%s5781_s0 + %s4834_s18]]   ;;  %s4837_s30 = smov 7  }
   0x6   :  { %s4914_s25 = sld [smem:[%s5781_s0 + %s4835_s22]]   ;;  %s4838_s4 = smov 8  }
   0x7   :  { %s4919_s29 = sld [smem:[%s5781_s0 + %s4836_s26]]   ;;  %s4839_s10 = smov 9  }
   0x8   :  { %5794 = sst [smem:[#allocation6_spill]] %s4894_s9  ;;  %s4840_s15 = smov 10  }
   0x9   :  { %s4924_s3 = sld [smem:[%s5781_s0 + %s4837_s30]]   ;;  %s4841_s20 = smov 11  }
   0xa   :  { %s4929_s8 = sld [smem:[%s5781_s0 + %s4838_s4]]   ;;  %s4842_s26 = smov 12  }
   0xb   :  { %s4934_s14 = sld [smem:[%s5781_s0 + %s4839_s10]]   ;;  %s4843_s1 = smov 13  }
   0xc   :  { %5795 = sst [smem:[#allocation7_spill]] %s4914_s25  ;;  %s4844_s7 = smov 14  }
   0xd   :  { %5796 = sst [smem:[#allocation8_spill]] %s4919_s29  ;;  %s4846_s22 = smov 16  }
   0xe   :  { %s4939_s19 = sld [smem:[%s5781_s0 + %s4840_s15]]   ;;  %s4845_s15 = smov 15  }
   0xf   :  { %5797 = sst [smem:[#allocation9_spill]] %s4924_s3  ;;  %s4847_s28 = smov 17  }
  0x10   :  { %5798 = sst [smem:[#allocation10_spill]] %s4929_s8 }
  0x11   :  { %s4944_s24 = sld [smem:[%s5781_s0 + %s4841_s20]]  }
  0x12   :  { %s4949_s30 = sld [smem:[%s5781_s0 + %s4842_s26]]  }
  0x13   :  { %s4954_s6 = sld [smem:[%s5781_s0 + %s4843_s1]]  }
  0x14   :  { %s4959_s12 = sld [smem:[%s5781_s0 + %s4844_s7]]   ;;  %s4848_s7 = smov 18  }
  0x15   :  { %s4964_s20 = sld [smem:[%s5781_s0 + %s4845_s15]]   ;;  %s4849_s15 = smov 19  }
  0x16   :  { %s4969_s27 = sld [smem:[%s5781_s0 + %s4846_s22]]   ;;  %s4850_s22 = smov 20  }
  0x17   :  { %s4974_s4 = sld [smem:[%s5781_s0 + %s4847_s28]]   ;;  %s4851_s28 = smov 21  }
  0x18   :  { %s4979_s8 = sld [smem:[%s5781_s0 + %s4848_s7]]   ;;  %s4852_s7 = smov 22  }
  0x19   :  { %s4984_s3 = sld [smem:[%s5781_s0 + %s4849_s15]]   ;;  %s4853_s15 = smov 23  }
  0x1a   :  { %s4989_s29 = sld [smem:[%s5781_s0 + %s4850_s22]]   ;;  %s4854_s22 = smov 24  }
  0x1b   :  { %s4994_s25 = sld [smem:[%s5781_s0 + %s4851_s28]]   ;;  %s4855_s28 = smov 25  }
  0x1c   :  { %s4999_s9 = sld [smem:[%s5781_s0 + %s4852_s7]]   ;;  %s4856_s7 = smov 26  }
  0x1e   :  { %5799 = sst [smem:[#allocation11_spill]] %s4979_s8 }
  0x1f   :  { %s5004_s8 = sld [smem:[%s5781_s0 + %s4853_s15]]   ;;  %s4857_s15 = smov 27  }
  0x20   :  { %5800 = sst [smem:[#allocation12_spill]] %s4989_s29 }
  0x21   :  { %5801 = sst [smem:[#allocation13_spill]] %s4994_s25 }
  0x22   :  { %5802 = sst [smem:[#allocation14_spill]] %s4999_s9 }
  0x23   :  { %s5009_s29 = sld [smem:[%s5781_s0 + %s4854_s22]]   ;;  %s4858_s22 = smov 28  }
  0x24   :  { %s5014_s25 = sld [smem:[%s5781_s0 + %s4855_s28]]   ;;  %s4859_s28 = smov 29  }
  0x25   :  { %5803 = sst [smem:[#allocation15_spill]] %s5004_s8 }
  0x26   :  { %s5019_s9 = sld [smem:[%s5781_s0 + %s4856_s7]]   ;;  %s4860_s7 = smov 30  }
  0x27   :  { %s5024_s8 = sld [smem:[%s5781_s0 + %s4857_s15]]   ;;  %s4861_s15 = smov 31  }
  0x29   :  { %5804 = sst [smem:[#allocation16_spill]] %s5009_s29 }
  0x2a   :  { %5805 = sst [smem:[#allocation17_spill]] %s5014_s25 }
  0x2b   :  { %s5029_s29 = sld [smem:[%s5781_s0 + %s4858_s22]]   ;;  %s4862_s22 = smov 32  }
  0x2c   :  { %5806 = sst [smem:[#allocation18_spill]] %s5019_s9 }
  0x2d   :  { %5807 = sst [smem:[#allocation19_spill]] %s5024_s8 }
  0x2e   :  { %s5034_s25 = sld [smem:[%s5781_s0 + %s4859_s28]]   ;;  %s4863_s28 = smov 33  }
  0x2f   :  { %s5039_s9 = sld [smem:[%s5781_s0 + %s4860_s7]]   ;;  %s4864_s7 = smov 34  }
  0x30   :  { %s5044_s8 = sld [smem:[%s5781_s0 + %s4861_s15]]   ;;  %s4865_s15 = smov 35  }
  0x31   :  { %5808 = sst [smem:[#allocation20_spill]] %s5029_s29 }
  0x32   :  { %s5049_s29 = sld [smem:[%s5781_s0 + %s4862_s22]]   ;;  %s4866_s22 = smov 36  }
  0x34   :  { %5809 = sst [smem:[#allocation21_spill]] %s5034_s25 }
  0x35   :  { %5810 = sst [smem:[#allocation22_spill]] %s5039_s9 }
  0x36   :  { %5811 = sst [smem:[#allocation23_spill]] %s5044_s8 }
  0x37   :  { %s5054_s25 = sld [smem:[%s5781_s0 + %s4863_s28]]   ;;  %s4867_s28 = smov 37  }
  0x38   :  { %5812 = sst [smem:[#allocation24_spill]] %s5049_s29 }
  0x39   :  { %s5059_s9 = sld [smem:[%s5781_s0 + %s4864_s7]]   ;;  %s4868_s7 = smov 38  }
  0x3a   :  { %s5064_s8 = sld [smem:[%s5781_s0 + %s4865_s15]]   ;;  %s4869_s15 = smov 39  }
  0x3b   :  { %s5069_s29 = sld [smem:[%s5781_s0 + %s4866_s22]]  }
  0x3d   :  { %5813 = sst [smem:[#allocation25_spill]] %s5054_s25 }
  0x3e   :  { %s5074_s25 = sld [smem:[%s5781_s0 + %s4867_s28]]  }
  0x3f   :  { %5814 = sst [smem:[#allocation26_spill]] %s5059_s9 }
  0x40   :  { %5815 = sst [smem:[#allocation27_spill]] %s5064_s8 }
  0x41   :  { %s5079_s9 = sld [smem:[%s5781_s0 + %s4868_s7]]  }
  0x42   :  { %s5084_s8 = sld [smem:[%s5781_s0 + %s4869_s15]]  }
  0x43   :  { %v195_v0 = vld [vmem:[%s4889_s5] sm:$0xff]  ;;  %vm199_vm0 = vcmask 261120   ;;  %v196_v1 = vld [vmem:[%s4889_s5 + $0x8] sm:$0xff] }
  0x44   :  { %84 = vsyncpa [#allocation4], 0  ;;  %v200_v2 = vsel %vm199_vm0, %v195_v0, 0.0  ;;  %v203_v3 = vsel %vm199_vm0, %v196_v1, 0.0  ;;  %v246_v14 = vld [vmem:[%s4944_s24 + $0x18] sm:$0xff]  ;;  %v245_v15 = vld [vmem:[%s4944_s24 + $0x10] sm:$0xff] }
  0x45   :  { %201 = vadd.xlane.f32.xlu0 %v200_v2  ;;  %4264 = vmatprep.subr.mxu0 %v246_v14  ;;  %v244_v16 = vld [vmem:[%s4944_s24 + $0x8] sm:$0xff]  ;;  %v243_v17 = vld [vmem:[%s4944_s24] sm:$0xff]  ;;  %vm341_vm1 = vcmask 130048   ;;  %s4870_s0 = smov 96   ;;  %s4871_s5 = smov 112   ;;  %v4872_v39 = vmov 0  }
  0x46   :  { %4265 = vmatpush3.msra.mxu0 %v246_v14  ;;  %v3907_v25 = vld [vmem:[%s4934_s14] ss:$0 sm:$0xff]  ;;  %4672 = vset.pattern.permute.xlu1 %v4872_v39  ;;  %s4873_s14 = smov 80   ;;  %v164_v41 = vld [vmem:[%s4899_s13 + $0x8] sm:$0xff]  ;;  %v4874_v52 = vmov -1e+09  }
  0x47   :  { %4266 = vmatprep.subr.mxu0 %v245_v15  ;;  %v3908_v27 = vld [vmem:[%s4939_s19] ss:$0 sm:$0xff]  ;;  %4671 = vset.pattern.permute.xlu0 %v4872_v39  ;;  %s5816_s19 = sld [smem:[#allocation11_spill]]  ;;  %vm1015_vm4 = vcmask 523264   ;;  %vm2425_vm7 = vcmask 392192   ;;  %vm4879_vm12 = vmmov 0  }
  0x48   :  { %4267 = vmatpush3.msra.mxu0 %v245_v15  ;;  %v3909_v34 = vld [vmem:[%s4949_s30] ss:$0 sm:$0xff]  ;;  %s5817_s22 = sld [smem:[#allocation12_spill]]  ;;  %vm3850_vm13 = vcmask 17408  }
  0x49   :  { %204 = vadd.xlane.f32.xlu0 %v203_v3  ;;  %4268 = vmatprep.subr.mxu0 %v244_v16  ;;  %v163_v40 = vld [vmem:[%s4899_s13] sm:$0xff]  ;;  %s4875_s13 = smov 64   ;;  %s5818_s23 = sld [smem:[#allocation13_spill]] }
  0x4a   :  { %4269 = vmatpush3.msra.mxu0 %v244_v16  ;;  %v3905_v48 = vld [vmem:[%s4904_s17] ss:$0 sm:$0xff]  ;;  %s4876_s17 = smov 48   ;;  %s5819_s26 = sld [smem:[#allocation14_spill]] }
  0x4b   :  { %4270 = vmatprep.subr.mxu0 %v243_v17  ;;  %v3906_v51 = vld [vmem:[%s4909_s21] ss:$0 sm:$0xff]  ;;  %s4877_s21 = smov 16   ;;  %s5828_s28 = sld [smem:[#allocation21_spill]] }
  0x4c   :  { %4271 = vmatpush3.msra.mxu0 %v243_v17  ;;  %s5829_s1 = sld [smem:[#allocation23_spill]] }
  0x4d   :  { %s5830_s2 = sld [smem:[#allocation19_spill]] }
  0x4e   :  { %s5831_s7 = sld [smem:[#allocation20_spill]] }
  0x4f   :  { %s5832_s10 = sld [smem:[#allocation22_spill]] }
  0x50   :  { %s5833_s11 = sld [smem:[#allocation24_spill]] }
  0x51   :  { %s5834_s15 = sld [smem:[#allocation25_spill]] }
  0x52   :  { %s5835_s16 = sld [smem:[#allocation26_spill]] }
  0x53   :  { %s5836_s18 = sld [smem:[#allocation10_spill]] }
  0xce   :  { %v202_v4 = vpop.xlane.xlu0 %201 }
  0xcf   :  { %v207_v5 = vmul.f32 0.03125, %v202_v4 }
  0xd1   :  { %v209_v6 = vsub.f32 %v195_v0, %v207_v5 }
  0xd2   :  { %v205_v7 = vpop.xlane.xlu0 %204 }
  0xd3   :  { %v208_v8 = vmul.f32 0.03125, %v205_v7  ;;  %v211_v9 = vmul.f32 %v209_v6, %v209_v6 }
  0xd5   :  { %v210_v10 = vsub.f32 %v196_v1, %v208_v8  ;;  %v213_v11 = vsel %vm199_vm0, %v211_v9, 0.0 }
  0xd6   :  { %214 = vadd.xlane.f32.xlu1 %v213_v11 }
  0xd7   :  { %v212_v12 = vmul.f32 %v210_v10, %v210_v10 }
  0xd9   :  { %v216_v13 = vsel %vm199_vm0, %v212_v12, 0.0 }
  0xda   :  { %217 = vadd.xlane.f32.xlu1 %v216_v13 }
 0x15f   :  { %v215_v18 = vpop.xlane.xlu1 %214 }
 0x160   :  { %v219_v19 = vmul.f32 0.03125, %v215_v18 }
 0x162   :  { %v221_v20 = vadd.f32 1e-12, %v219_v19 }
 0x163   :  { %v218_v21 = vpop.xlane.xlu1 %217 }
 0x164   :  { %4673 = vrsqrt.f32 %v221_v20  ;;  %v220_v22 = vmul.f32 0.03125, %v218_v21 }
 0x166   :  { %v222_v23 = vadd.f32 1e-12, %v220_v22 }
 0x168   :  { %4675 = vrsqrt.f32 %v222_v23 }
 0x171   :  { %v4674_v24 = vpop.eup %4673 }
 0x172   :  { %v225_v26 = vmul.f32 %v4674_v24, %v209_v6 }
 0x174   :  { %v233_v28 = vmul.f32 %v3907_v25, %v225_v26 }
 0x175   :  { %v4676_v29 = vpop.eup %4675 }
 0x176   :  { %v226_v30 = vmul.f32 %v4676_v29, %v210_v10  ;;  %v5098_v31 = vadd.f32 %v3908_v27, %v233_v28 }
 0x178   :  { %v234_v32 = vmul.f32 %v3907_v25, %v226_v30  ;;  %4272 = vmatprep.mubr.msk.f32.mxu0 %vm199_vm0, %v5098_v31 }
 0x17a   :  { %v5102_v33 = vadd.f32 %v3908_v27, %v234_v32 }
 0x17c   :  { %4273 = vmatmul.mubr.msk.f32.vlgmr.msra.gmra.mxu0 %vm199_vm0, %v5102_v33 }
 0x23c   :  { %v4274_v35 = vpop.f32.mrf.mxu0 }
 0x23d   :  { %v5107_v36 = vadd.f32 %v4274_v35, %v3909_v34 }
 0x23e   :  { %v326_v37 = vpop.f32.mrf.mxu0 }
 0x23f   :  { %v5109_v38 = vadd.f32 %v3909_v34, %v326_v37  ;;  %339 = vrot.lane.b32.xlu0 %v5107_v36, %s4870_s0 }
 0x241   :  { %337 = vrot.lane.b32.xlu1 %v5109_v38, %s4870_s0  ;;  %4279 = vmatprep.mubr.msk.f32.mxu1 %vm341_vm1, %v5109_v38 }
 0x243   :  { %538 = vrot.lane.b32.xlu0 %v5109_v38, %s4871_s5 }
 0x245   :  { %544 = vrot.lane.b32.xlu1 %v5107_v36, %s4873_s14 }
 0x247   :  { %168 = vperm.xlu0 %4671, %v163_v40  }
 0x249   :  { %542 = vrot.lane.b32.xlu1 %v5109_v38, %s4873_s14 }
 0x24d   :  { %540 = vrot.lane.b32.xlu1 %v5107_v36, %s4871_s5 }
 0x251   :  { %173 = vperm.xlu1 %4672, %v164_v41  }
 0x2b1   :  { %v340_v42 = vpop.permute.xlu0 %339 }
 0x2b2   :  { %4275 = vmatprep.subr.msk.mxu1 %vm341_vm1, %v340_v42 }
 0x2b3   :  { %4276 = vmatpush3.xpose.msk.msra.mxu1 %vm341_vm1, %v340_v42  ;;  %v338_v43 = vpop.permute.xlu1 %337 }
 0x2b4   :  { %4277 = vmatprep.subr.msk.mxu1 %vm341_vm1, %v338_v43 }
 0x2b5   :  { %v539_v45 = vpop.permute.xlu0 %538 }
 0x2b7   :  { %4278 = vmatpush3.xpose.msk.msra.mxu1 %vm341_vm1, %v338_v43  ;;  %v545_v44 = vpop.permute.xlu1 %544 }
 0x2b8   :  { %4289 = vmatprep.subr.msk.mxu1 %vm341_vm1, %v545_v44 }
 0x2ba   :  { %4280 = vmatmul.mubr.msk.f32.vlgmr.msra.gmra.mxu1 %vm341_vm1, %v5107_v36 }
 0x2bb   :  { %v543_v46 = vpop.permute.xlu1 %542  ;;  %4290 = vmatpush3.xpose.msk.msra.mxu1 %vm341_vm1, %v545_v44  ;;  %4293 = vmatprep.mubr.msk.f32.mxu1 %vm341_vm1, %v539_v45 }
 0x2bc   :  { %4291 = vmatprep.subr.msk.mxu1 %vm341_vm1, %v543_v46 }
 0x2bf   :  { %4292 = vmatpush3.xpose.msk.msra.mxu1 %vm341_vm1, %v543_v46  ;;  %v541_v47 = vpop.permute.xlu1 %540 }
 0x2c2   :  { %4294 = vmatmul.mubr.msk.f32.vlgmr.msra.gmra.mxu1 %vm341_vm1, %v541_v47  ;;  %v169_v50 = vpop.permute.xlu0 %168  ;;  %v755_v47 = vld [vmem:[%s4954_s6 + $0x18] sm:$0xff] }
 0x2c3   :  { %vm182_vm3 = vcmp.eq.f32.partialorder %v169_v50, %v3905_v48  ;;  %v752_v50 = vld [vmem:[%s4954_s6] sm:$0xff] }
 0x2c4   :  { %v184_v54 = vsel %vm182_vm3, 0.0, %v4874_v52 }
 0x2c5   :  { %v5145_v58 = vadd.f32 %v3906_v51, %v184_v54 }
 0x2cc   :  { %v174_v49 = vpop.permute.xlu1 %173 }
 0x2cd   :  { %vm183_vm2 = vcmp.eq.f32.partialorder %v174_v49, %v3905_v48  ;;  %v754_v48 = vld [vmem:[%s4954_s6 + $0x10] sm:$0xff]  ;;  %v753_v49 = vld [vmem:[%s4954_s6 + $0x8] sm:$0xff] }
 0x2ce   :  { %v185_v53 = vsel %vm183_vm2, 0.0, %v4874_v52 }
 0x2cf   :  { %v5143_v55 = vadd.f32 %v3906_v51, %v185_v53 }
 0x37a   :  { %v4281_v56 = vpop.f32.mrf.mxu1 }
 0x37b   :  { %v426_v57 = vmul.f32 0.25, %v4281_v56 }
 0x37c   :  { %v416_v59 = vpop.f32.mrf.mxu1 }
 0x37d   :  { %v425_v60 = vmul.f32 0.25, %v416_v59  ;;  %v428_v61 = vadd.f32 %v426_v57, %v5143_v55 }
 0x37f   :  { %v432_v62 = vsel %vm341_vm1, %v428_v61, -inf  ;;  %v427_v63 = vadd.f32 %v425_v60, %v5145_v58 }
 0x380   :  { %433 = vmax.xlane.f32.xlu0 %v432_v62  ;;  %v3924_v62 = vld [vmem:[%s4959_s12] ss:$0 sm:$0xff] }
 0x381   :  { %v429_v0 = vsel %vm341_vm1, %v427_v63, -inf }
 0x382   :  { %v4295_v1 = vpop.f32.mrf.mxu1  ;;  %430 = vmax.xlane.f32.xlu1 %v429_v0 }
 0x383   :  { %v630_v3 = vmul.f32 0.25, %v4295_v1 }
 0x384   :  { %v620_v2 = vpop.f32.mrf.mxu1 }
 0x385   :  { %v629_v4 = vmul.f32 0.25, %v620_v2  ;;  %v632_v7 = vadd.f32 %v630_v3, %v5143_v55 }
 0x387   :  { %v631_v5 = vadd.f32 %v629_v4, %v5145_v58  ;;  %v636_v8 = vsel %vm341_vm1, %v632_v7, -inf }
 0x389   :  { %v633_v6 = vsel %vm341_vm1, %v631_v5, -inf }
 0x38a   :  { %634 = vmax.xlane.f32.xlu0 %v633_v6 }
 0x38e   :  { %637 = vmax.xlane.f32.xlu0 %v636_v8 }
 0x393   :  { %453 = vrot.lane.b32.xlu1 %v5107_v36, %s4875_s13 }
 0x409   :  { %v434_v9 = vpop.xlane.xlu0 %433 }
 0x40a   :  { %v436_v10 = vsub.f32 %v428_v61, %v434_v9 }
 0x40b   :  { %v431_v11 = vpop.xlane.xlu1 %430 }
 0x40c   :  { %v439_v12 = vmul.f32 1.442695, %v436_v10  ;;  %v435_v13 = vsub.f32 %v427_v63, %v431_v11 }
 0x40e   :  { %4677 = vpow2.f32 %v439_v12  ;;  %v437_v14 = vmul.f32 1.442695, %v435_v13 }
 0x40f   :  { %v454_v15 = vpop.permute.xlu1 %453 }
 0x410   :  { %4679 = vpow2.f32 %v437_v14  ;;  %4282 = vmatprep.subr.mxu0 %v454_v15 }
 0x411   :  { %4283 = vmatpush3.msra.mxu0 %v454_v15  ;;  %v893_v15 = vld [vmem:[%s4974_s4 + $0x18] sm:$0xff] }
 0x412   :  { %4314 = vmatprep.subr.mxu1 %v893_v15 }
 0x413   :  { %v635_v16 = vpop.xlane.xlu0 %634  ;;  %4315 = vmatpush3.msra.mxu1 %v893_v15 }
 0x414   :  { %v639_v26 = vsub.f32 %v631_v5, %v635_v16  ;;  %v892_v16 = vld [vmem:[%s4974_s4 + $0x10] sm:$0xff] }
 0x415   :  { %4316 = vmatprep.subr.mxu1 %v892_v16 }
 0x416   :  { %v641_v27 = vmul.f32 1.442695, %v639_v26  ;;  %4317 = vmatpush3.msra.mxu1 %v892_v16  ;;  %v3927_v26 = vld [vmem:[%s4964_s20] ss:$0 sm:$0xff] }
 0x417   :  { %v638_v17 = vpop.xlane.xlu0 %637 }
 0x418   :  { %v640_v18 = vsub.f32 %v632_v7, %v638_v17  ;;  %v891_v17 = vld [vmem:[%s4974_s4 + $0x8] sm:$0xff] }
 0x419   :  { %4318 = vmatprep.subr.mxu1 %v891_v17 }
 0x41a   :  { %v643_v19 = vmul.f32 1.442695, %v640_v18  ;;  %4319 = vmatpush3.msra.mxu1 %v891_v17  ;;  %v890_v18 = vld [vmem:[%s4974_s4] sm:$0xff] }
 0x41b   :  { %v4678_v20 = vpop.eup %4677  ;;  %4320 = vmatprep.subr.mxu1 %v890_v18 }
 0x41c   :  { %4681 = vpow2.f32 %v643_v19  ;;  %v444_v21 = vsel %vm341_vm1, %v4678_v20, 0.0  ;;  %4321 = vmatpush3.msra.mxu1 %v890_v18 }
 0x41d   :  { %v4680_v22 = vpop.eup %4679  ;;  %445 = vadd.xlane.f32.xlu0 %v444_v21  ;;  %4683 = vpow2.f32 %v641_v27 }
 0x41e   :  { %v441_v23 = vsel %vm341_vm1, %v4680_v22, 0.0 }
 0x41f   :  { %442 = vadd.xlane.f32.xlu1 %v441_v23 }
 0x429   :  { %v4682_v24 = vpop.eup %4681 }
 0x42a   :  { %v648_v25 = vsel %vm341_vm1, %v4682_v24, 0.0  ;;  %v4684_v28 = vpop.eup %4683 }
 0x42b   :  { %649 = vadd.xlane.f32.xlu0 %v648_v25  ;;  %v645_v29 = vsel %vm341_vm1, %v4684_v28, 0.0 }
 0x430   :  { %657 = vrot.lane.b32.xlu1 %v5107_v36, %s4876_s17 }
 0x441   :  { %451 = vrot.lane.b32.xlu0 %v5109_v38, %s4875_s13 }
 0x454   :  { %646 = vadd.xlane.f32.xlu1 %v645_v29 }
 0x465   :  { %655 = vrot.lane.b32.xlu1 %v5109_v38, %s4876_s17 }
 0x4a6   :  { %v446_v30 = vpop.xlane.xlu0 %445 }
 0x4a7   :  { %4685 = vrcp.f32 %v446_v30 }
 0x4a8   :  { %v443_v32 = vpop.xlane.xlu1 %442 }
 0x4a9   :  { %4687 = vrcp.f32 %v443_v32 }
 0x4ac   :  { %v658_v41 = vpop.permute.xlu1 %657 }
 0x4b4   :  { %v650_v34 = vpop.xlane.xlu0 %649  ;;  %v4686_v35 = vpop.eup %4685 }
 0x4b5   :  { %v450_v40 = vmul.f32 %v4686_v35, %v4678_v20  ;;  %4689 = vrcp.f32 %v650_v34 }
 0x4b6   :  { %v4688_v36 = vpop.eup %4687 }
 0x4b7   :  { %v449_v37 = vmul.f32 %v4688_v36, %v4680_v22 }
 0x4b8   :  { %v452_v39 = vpop.permute.xlu0 %451 }
 0x4b9   :  { %4284 = vmatprep.subr.mxu0 %v452_v39  ;;  %4286 = vmatprep.mubr.msk.f32.mxu0 %vm341_vm1, %v449_v37  ;;  %v1007_v37 = vld [vmem:[%s4984_s3 + $0x38] sm:$0xff] }
 0x4ba   :  { %4285 = vmatpush3.msra.mxu0 %v452_v39  ;;  %v1006_v39 = vld [vmem:[%s4984_s3 + $0x30] sm:$0xff] }
 0x4bb   :  { %4287 = vmatmul.mubr.msk.f32.vlgmr.msra.gmra.mxu0 %vm341_vm1, %v450_v40  ;;  %4296 = vmatprep.subr.mxu0 %v658_v41  ;;  %v1005_v40 = vld [vmem:[%s4984_s3 + $0x28] sm:$0xff] }
 0x4bc   :  { %4297 = vmatpush3.msra.mxu0 %v658_v41  ;;  %v1004_v41 = vld [vmem:[%s4984_s3 + $0x20] sm:$0xff] }
 0x4c2   :  { %v4690_v43 = vpop.eup %4689 }
 0x4c3   :  { %v654_v46 = vmul.f32 %v4690_v43, %v4682_v24  ;;  %v1001_v43 = vld [vmem:[%s4984_s3 + $0x8] sm:$0xff] }
 0x4dd   :  { %v647_v38 = vpop.xlane.xlu1 %646 }
 0x4de   :  { %4691 = vrcp.f32 %v647_v38  ;;  %v1003_v38 = vld [vmem:[%s4984_s3 + $0x18] sm:$0xff] }
 0x4e1   :  { %v656_v42 = vpop.permute.xlu1 %655 }
 0x4e2   :  { %4298 = vmatprep.subr.mxu0 %v656_v42 }
 0x4e3   :  { %4299 = vmatpush3.msra.mxu0 %v656_v42  ;;  %v1002_v42 = vld [vmem:[%s4984_s3 + $0x10] sm:$0xff] }
 0x4e4   :  { %4303 = vmatprep.subr.mxu0 %v755_v47 }
 0x4eb   :  { %v4692_v44 = vpop.eup %4691 }
 0x4ec   :  { %v653_v45 = vmul.f32 %v4692_v44, %v4684_v28  ;;  %v3928_v28 = vld [vmem:[%s4969_s27] ss:$0 sm:$0xff] }
 0x4ed   :  { %v1000_v44 = vld [vmem:[%s4984_s3] sm:$0xff] }
 0x4ee   :  { %4300 = vmatprep.mubr.msk.f32.mxu0 %vm341_vm1, %v653_v45  ;;  %v3929_v45 = vld [vmem:[%s5816_s19] ss:$0 sm:$0xff] }
 0x4ef   :  { %4301 = vmatmul.mubr.msk.f32.vlgmr.msra.gmra.mxu0 %vm341_vm1, %v654_v46 }
 0x4f0   :  { %4304 = vmatpush3.msra.mxu0 %v755_v47 }
 0x4f1   :  { %4305 = vmatprep.subr.mxu0 %v754_v48 }
 0x4f2   :  { %4306 = vmatpush3.msra.mxu0 %v754_v48 }
 0x4f3   :  { %4307 = vmatprep.subr.mxu0 %v753_v49 }
 0x4f4   :  { %4308 = vmatpush3.msra.mxu0 %v753_v49 }
 0x4f5   :  { %4309 = vmatprep.subr.mxu0 %v752_v50 }
 0x4f6   :  { %4310 = vmatpush3.msra.mxu0 %v752_v50 }
 0x4f7   :  { %4325 = vmatprep.subr.mxu0 %v1007_v37 }
 0x57b   :  { %v4288_v51 = vpop.f32.mrf.mxu0 }
 0x57d   :  { %v529_v53 = vpop.f32.mrf.mxu0 }
 0x5af   :  { %v4302_v54 = vpop.f32.mrf.mxu0 }
 0x5b0   :  { %746 = vrot.lane.b32.xlu0 %v4302_v54, %s4877_s21 }
 0x5b1   :  { %v733_v56 = vpop.f32.mrf.mxu0 }
 0x5b2   :  { %744 = vrot.lane.b32.xlu1 %v733_v56, %s4877_s21 }
 0x622   :  { %v747_v57 = vpop.permute.xlu0 %746 }
 0x623   :  { %v751_v61 = vsel %vm341_vm1, %v4288_v51, %v747_v57 }
 0x624   :  { %v745_v59 = vpop.permute.xlu1 %744 }
 0x625   :  { %v750_v60 = vsel %vm341_vm1, %v529_v53, %v745_v59 }
 0x626   :  { %4311 = vmatprep.mubr.msk.f32.mxu0 %vm199_vm0, %v750_v60 }
 0x627   :  { %4312 = vmatmul.mubr.msk.f32.vlgmr.msra.gmra.mxu0 %vm199_vm0, %v751_v61 }
 0x628   :  { %4326 = vmatpush3.msra.mxu0 %v1007_v37  ;;  %v3935_v37 = vld [vmem:[%s5818_s23] ss:$0 sm:$0xff] }
 0x629   :  { %4327 = vmatprep.subr.mxu0 %v1006_v39 }
 0x62a   :  { %4328 = vmatpush3.msra.mxu0 %v1006_v39 }
 0x62b   :  { %4329 = vmatprep.subr.mxu0 %v1005_v40 }
 0x62c   :  { %4330 = vmatpush3.msra.mxu0 %v1005_v40 }
 0x62d   :  { %4331 = vmatprep.subr.mxu0 %v1004_v41 }
 0x62e   :  { %4332 = vmatpush3.msra.mxu0 %v1004_v41 }
 0x62f   :  { %4333 = vmatprep.subr.mxu0 %v1003_v38 }
 0x630   :  { %4334 = vmatpush3.msra.mxu0 %v1003_v38 }
 0x631   :  { %4335 = vmatprep.subr.mxu0 %v1002_v42 }
 0x632   :  { %4336 = vmatpush3.msra.mxu0 %v1002_v42  ;;  %v3936_v42 = vld [vmem:[%s5819_s26] ss:$0 sm:$0xff] }
 0x633   :  { %4337 = vmatprep.subr.mxu0 %v1001_v43 }
 0x634   :  { %4338 = vmatpush3.msra.mxu0 %v1001_v43 }
 0x635   :  { %4339 = vmatprep.subr.mxu0 %v1000_v44 }
 0x636   :  { %4340 = vmatpush3.msra.mxu0 %v1000_v44 }
 0x6e7   :  { %v4313_v63 = vpop.f32.mrf.mxu0 }
 0x6e8   :  { %v841_v0 = vadd.f32 %v4313_v63, %v3924_v62 }
 0x6e9   :  { %v835_v1 = vpop.f32.mrf.mxu0 }
 0x6ea   :  { %v836_v2 = vadd.f32 %v3924_v62, %v835_v1  ;;  %v845_v3 = vadd.f32 %v841_v0, %v5102_v33 }
 0x6ec   :  { %v851_v4 = vsel %vm199_vm0, %v845_v3, 0.0  ;;  %v844_v5 = vadd.f32 %v836_v2, %v5098_v31 }
 0x6ed   :  { %852 = vadd.xlane.f32.xlu0 %v851_v4 }
 0x6ee   :  { %v848_v6 = vsel %vm199_vm0, %v844_v5, 0.0 }
 0x6ef   :  { %849 = vadd.xlane.f32.xlu1 %v848_v6 }
 0x776   :  { %v853_v7 = vpop.xlane.xlu0 %852 }
 0x777   :  { %v855_v8 = vmul.f32 0.03125, %v853_v7  ;;  %v3932_v7 = vld [vmem:[%s5817_s22] ss:$0 sm:$0xff] }
 0x778   :  { %v850_v9 = vpop.xlane.xlu1 %849 }
 0x779   :  { %v854_v10 = vmul.f32 0.03125, %v850_v9  ;;  %v857_v11 = vsub.f32 %v845_v3, %v855_v8 }
 0x77b   :  { %v856_v12 = vsub.f32 %v844_v5, %v854_v10  ;;  %v859_v14 = vmul.f32 %v857_v11, %v857_v11 }
 0x77d   :  { %v858_v13 = vmul.f32 %v856_v12, %v856_v12  ;;  %v863_v31 = vsel %vm199_vm0, %v859_v14, 0.0 }
 0x77f   :  { %v860_v33 = vsel %vm199_vm0, %v858_v13, 0.0 }
 0x780   :  { %861 = vadd.xlane.f32.xlu0 %v860_v33 }
 0x784   :  { %864 = vadd.xlane.f32.xlu0 %v863_v31 }
 0x809   :  { %v862_v19 = vpop.xlane.xlu0 %861 }
 0x80a   :  { %v866_v20 = vmul.f32 0.03125, %v862_v19 }
 0x80c   :  { %v868_v21 = vadd.f32 1e-12, %v866_v20 }
 0x80d   :  { %v865_v22 = vpop.xlane.xlu0 %864 }
 0x80e   :  { %4693 = vrsqrt.f32 %v868_v21  ;;  %v867_v23 = vmul.f32 0.03125, %v865_v22 }
 0x810   :  { %v869_v24 = vadd.f32 1e-12, %v867_v23 }
 0x812   :  { %4695 = vrsqrt.f32 %v869_v24  ;;  %v3940_v24 = vld [vmem:[%s4944_s24 + $0x38] sm:$0xff] }
 0x813   :  { %4344 = vmatprep.subr.mxu1 %v3940_v24 }
 0x81b   :  { %v4694_v25 = vpop.eup %4693 }
 0x81c   :  { %v872_v27 = vmul.f32 %v4694_v25, %v856_v12  ;;  %v3939_v25 = vld [vmem:[%s4944_s24 + $0x30] sm:$0xff] }
 0x81e   :  { %v880_v29 = vmul.f32 %v3927_v26, %v872_v27  ;;  %v3937_v27 = vld [vmem:[%s4944_s24 + $0x20] sm:$0xff] }
 0x81f   :  { %v4696_v30 = vpop.eup %4695 }
 0x820   :  { %v873_v32 = vmul.f32 %v4696_v30, %v857_v11  ;;  %v5194_v34 = vadd.f32 %v3928_v28, %v880_v29 }
 0x822   :  { %v881_v35 = vmul.f32 %v3927_v26, %v873_v32  ;;  %4322 = vmatprep.mubr.msk.f32.mxu1 %vm199_vm0, %v5194_v34  ;;  %v3938_v26 = vld [vmem:[%s4944_s24 + $0x28] sm:$0xff]  ;;  %s5820_s24 = sld [smem:[#allocation15_spill]] }
 0x824   :  { %v889_v36 = vadd.f32 %v3928_v28, %v881_v35 }
 0x826   :  { %4323 = vmatmul.mubr.msk.f32.vlgmr.msra.gmra.mxu1 %vm199_vm0, %v889_v36 }
 0x827   :  { %4345 = vmatpush3.msra.mxu1 %v3940_v24 }
 0x828   :  { %4346 = vmatprep.subr.mxu1 %v3939_v25 }
 0x829   :  { %4347 = vmatpush3.msra.mxu1 %v3939_v25 }
 0x82a   :  { %4348 = vmatprep.subr.mxu1 %v3938_v26 }
 0x82b   :  { %4349 = vmatpush3.msra.mxu1 %v3938_v26 }
 0x82c   :  { %4350 = vmatprep.subr.mxu1 %v3937_v27 }
 0x82d   :  { %4351 = vmatpush3.msra.mxu1 %v3937_v27 }
 0x8e6   :  { %v4324_v46 = vpop.f32.mrf.mxu1 }
 0x8e7   :  { %v979_v47 = vadd.f32 %v4324_v46, %v3929_v45  ;;  %v3942_v46 = vld [vmem:[%s4949_s30 + $0x1] ss:$0 sm:$0xff]  ;;  %s5822_s30 = sld [smem:[#allocation7_spill]] }
 0x8e8   :  { %v973_v48 = vpop.f32.mrf.mxu1 }
 0x8e9   :  { %v983_v49 = vmul.f32 %v979_v47, %v979_v47  ;;  %v974_v50 = vadd.f32 %v3929_v45, %v973_v48 }
 0x8eb   :  { %v985_v51 = vmul.f32 %v983_v49, %v979_v47  ;;  %v982_v53 = vmul.f32 %v974_v50, %v974_v50 }
 0x8ed   :  { %v987_v54 = vmul.f32 0.044715, %v985_v51  ;;  %v984_v56 = vmul.f32 %v982_v53, %v974_v50 }
 0x8ef   :  { %v989_v57 = vadd.f32 %v987_v54, %v979_v47  ;;  %v986_v59 = vmul.f32 0.044715, %v984_v56 }
 0x8f1   :  { %v991_v60 = vmul.f32 0.7978846, %v989_v57  ;;  %v988_v61 = vadd.f32 %v986_v59, %v974_v50 }
 0x8f3   :  { %4697 = vtanh.f32 %v991_v60  ;;  %v990_v62 = vmul.f32 0.7978846, %v988_v61 }
 0x8f5   :  { %4699 = vtanh.f32 %v990_v62 }
 0x900   :  { %v4698_v63 = vpop.eup %4697 }
 0x901   :  { %v995_v0 = vadd.f32 1.0, %v4698_v63 }
 0x902   :  { %v4700_v1 = vpop.eup %4699 }
 0x903   :  { %v994_v2 = vadd.f32 1.0, %v4700_v1  ;;  %v997_v3 = vmul.f32 0.5, %v995_v0 }
 0x905   :  { %v996_v4 = vmul.f32 0.5, %v994_v2  ;;  %v999_v6 = vmul.f32 %v997_v3, %v979_v47 }
 0x907   :  { %v998_v5 = vmul.f32 %v996_v4, %v974_v50 }
 0x909   :  { %4341 = vmatprep.mubr.msk.f32.mxu0 %vm1015_vm4, %v998_v5 }
 0x90a   :  { %4342 = vmatmul.mubr.msk.f32.vlgmr.msra.gmra.mxu0 %vm1015_vm4, %v999_v6 }
 0x9ca   :  { %v4343_v8 = vpop.f32.mrf.mxu0 }
 0x9cb   :  { %v1094_v9 = vadd.f32 %v4343_v8, %v3932_v7 }
 0x9cc   :  { %v1088_v10 = vpop.f32.mrf.mxu0 }
 0x9cd   :  { %v1089_v11 = vadd.f32 %v3932_v7, %v1088_v10  ;;  %v1098_v12 = vadd.f32 %v1094_v9, %v889_v36 }
 0x9cf   :  { %v1104_v13 = vsel %vm199_vm0, %v1098_v12, 0.0  ;;  %v1097_v33 = vadd.f32 %v1089_v11, %v5194_v34 }
 0x9d0   :  { %1105 = vadd.xlane.f32.xlu0 %v1104_v13 }
 0x9d1   :  { %v1101_v14 = vsel %vm199_vm0, %v1097_v33, 0.0 }
 0x9d2   :  { %1102 = vadd.xlane.f32.xlu1 %v1101_v14 }
 0xa59   :  { %v1106_v31 = vpop.xlane.xlu0 %1105 }
 0xa5a   :  { %v1108_v15 = vmul.f32 0.03125, %v1106_v31 }
 0xa5b   :  { %v1103_v16 = vpop.xlane.xlu1 %1102 }
 0xa5c   :  { %v1110_v17 = vsub.f32 %v1098_v12, %v1108_v15  ;;  %v1107_v18 = vmul.f32 0.03125, %v1103_v16 }
 0xa5e   :  { %v1109_v19 = vsub.f32 %v1097_v33, %v1107_v18  ;;  %v1112_v20 = vmul.f32 %v1110_v17, %v1110_v17 }
 0xa60   :  { %v1116_v21 = vsel %vm199_vm0, %v1112_v20, 0.0  ;;  %v1111_v22 = vmul.f32 %v1109_v19, %v1109_v19 }
 0xa61   :  { %1117 = vadd.xlane.f32.xlu0 %v1116_v21 }
 0xa62   :  { %v1113_v23 = vsel %vm199_vm0, %v1111_v22, 0.0 }
 0xa63   :  { %1114 = vadd.xlane.f32.xlu1 %v1113_v23 }
 0xaea   :  { %v1118_v28 = vpop.xlane.xlu0 %1117 }
 0xaeb   :  { %v1120_v29 = vmul.f32 0.03125, %v1118_v28 }
 0xaec   :  { %v1115_v30 = vpop.xlane.xlu1 %1114 }
 0xaed   :  { %v1122_v32 = vadd.f32 1e-12, %v1120_v29  ;;  %v1119_v34 = vmul.f32 0.03125, %v1115_v30 }
 0xaef   :  { %4701 = vrsqrt.f32 %v1122_v32  ;;  %v1121_v35 = vadd.f32 1e-12, %v1119_v34 }
 0xaf1   :  { %4703 = vrsqrt.f32 %v1121_v35 }
 0xafc   :  { %v4702_v36 = vpop.eup %4701 }
 0xafd   :  { %v1126_v39 = vmul.f32 %v4702_v36, %v1110_v17 }
 0xafe   :  { %v4704_v40 = vpop.eup %4703 }
 0xaff   :  { %v1125_v41 = vmul.f32 %v4704_v40, %v1109_v19  ;;  %v1134_v38 = vmul.f32 %v3935_v37, %v1126_v39 }
 0xb01   :  { %v1133_v43 = vmul.f32 %v3935_v37, %v1125_v41  ;;  %v5224_v45 = vadd.f32 %v3936_v42, %v1134_v38 }
 0xb03   :  { %v5222_v44 = vadd.f32 %v3936_v42, %v1133_v43 }
 0xb05   :  { %4352 = vmatprep.mubr.msk.f32.mxu1 %vm199_vm0, %v5222_v44 }
 0xb06   :  { %4353 = vmatmul.mubr.msk.f32.vlgmr.msra.gmra.mxu1 %vm199_vm0, %v5224_v45 }
 0xbc6   :  { %v4354_v47 = vpop.f32.mrf.mxu1 }
 0xbc7   :  { %v5231_v48 = vadd.f32 %v4354_v47, %v3942_v46 }
 0xbc8   :  { %v1228_v49 = vpop.f32.mrf.mxu1 }
 0xbc9   :  { %v5233_v50 = vadd.f32 %v3942_v46, %v1228_v49  ;;  %1241 = vrot.lane.b32.xlu1 %v5231_v48, %s4870_s0  ;;  %v3959_v49 = vld [vmem:[%s4954_s6 + $0x30] sm:$0xff] }
 0xbcb   :  { %1239 = vrot.lane.b32.xlu0 %v5233_v50, %s4870_s0  ;;  %4359 = vmatprep.mubr.msk.f32.mxu1 %vm341_vm1, %v5233_v50 }
 0xbcd   :  { %1445 = vrot.lane.b32.xlu1 %v5231_v48, %s4873_s14 }
 0xbcf   :  { %1441 = vrot.lane.b32.xlu0 %v5231_v48, %s4871_s5 }
 0xbd1   :  { %1443 = vrot.lane.b32.xlu1 %v5233_v50, %s4873_s14 }
 0xbd5   :  { %1439 = vrot.lane.b32.xlu1 %v5233_v50, %s4871_s5 }
 0xc3b   :  { %v1242_v51 = vpop.permute.xlu1 %1241 }
 0xc3c   :  { %4355 = vmatprep.subr.msk.mxu1 %vm341_vm1, %v1242_v51 }
 0xc3d   :  { %4356 = vmatpush3.xpose.msk.msra.mxu1 %vm341_vm1, %v1242_v51  ;;  %v1240_v53 = vpop.permute.xlu0 %1239  ;;  %v3957_v51 = vld [vmem:[%s4954_s6 + $0x20] sm:$0xff] }
 0xc3e   :  { %4357 = vmatprep.subr.msk.mxu1 %vm341_vm1, %v1240_v53 }
 0xc3f   :  { %v1446_v54 = vpop.permute.xlu1 %1445 }
 0xc41   :  { %4358 = vmatpush3.xpose.msk.msra.mxu1 %vm341_vm1, %v1240_v53  ;;  %v1442_v59 = vpop.permute.xlu0 %1441 }
 0xc42   :  { %4369 = vmatprep.subr.msk.mxu1 %vm341_vm1, %v1446_v54 }
 0xc43   :  { %v1444_v56 = vpop.permute.xlu1 %1443 }
 0xc44   :  { %4360 = vmatmul.mubr.msk.f32.vlgmr.msra.gmra.mxu1 %vm341_vm1, %v5231_v48 }
 0xc45   :  { %4370 = vmatpush3.xpose.msk.msra.mxu1 %vm341_vm1, %v1446_v54 }
 0xc46   :  { %4371 = vmatprep.subr.msk.mxu1 %vm341_vm1, %v1444_v56 }
 0xc47   :  { %v1440_v57 = vpop.permute.xlu1 %1439 }
 0xc48   :  { %4373 = vmatprep.mubr.msk.f32.mxu1 %vm341_vm1, %v1440_v57 }
 0xc49   :  { %4372 = vmatpush3.xpose.msk.msra.mxu1 %vm341_vm1, %v1444_v56 }
 0xc4c   :  { %4374 = vmatmul.mubr.msk.f32.vlgmr.msra.gmra.mxu1 %vm341_vm1, %v1442_v59 }
 0xd04   :  { %v4361_v60 = vpop.f32.mrf.mxu1 }
 0xd05   :  { %v1327_v61 = vmul.f32 0.25, %v4361_v60 }
 0xd06   :  { %v1317_v62 = vpop.f32.mrf.mxu1 }
 0xd07   :  { %v1326_v63 = vmul.f32 0.25, %v1317_v62  ;;  %v1329_v0 = vadd.f32 %v1327_v61, %v5143_v55 }
 0xd09   :  { %v1333_v1 = vsel %vm341_vm1, %v1329_v0, -inf  ;;  %v1328_v2 = vadd.f32 %v1326_v63, %v5145_v58  ;;  %v3962_v63 = vld [vmem:[%s4959_s12 + $0x1] ss:$0 sm:$0xff]  ;;  %s5824_s12 = sld [smem:[#allocation8_spill]] }
 0xd0a   :  { %1334 = vmax.xlane.f32.xlu0 %v1333_v1 }
 0xd0b   :  { %v1330_v3 = vsel %vm341_vm1, %v1328_v2, -inf }
 0xd0c   :  { %v4375_v4 = vpop.f32.mrf.mxu1  ;;  %1331 = vmax.xlane.f32.xlu1 %v1330_v3 }
 0xd0d   :  { %v1531_v6 = vmul.f32 0.25, %v4375_v4 }
 0xd0e   :  { %v1521_v5 = vpop.f32.mrf.mxu1 }
 0xd0f   :  { %v1530_v7 = vmul.f32 0.25, %v1521_v5  ;;  %v1533_v10 = vadd.f32 %v1531_v6, %v5143_v55 }
 0xd11   :  { %v1532_v8 = vadd.f32 %v1530_v7, %v5145_v58  ;;  %v1537_v11 = vsel %vm341_vm1, %v1533_v10, -inf }
 0xd13   :  { %v1534_v9 = vsel %vm341_vm1, %v1532_v8, -inf }
 0xd14   :  { %1535 = vmax.xlane.f32.xlu0 %v1534_v9 }
 0xd18   :  { %1538 = vmax.xlane.f32.xlu0 %v1537_v11 }
 0xd1d   :  { %1354 = vrot.lane.b32.xlu1 %v5231_v48, %s4875_s13 }
 0xd93   :  { %v1335_v12 = vpop.xlane.xlu0 %1334 }
 0xd94   :  { %v1337_v13 = vsub.f32 %v1329_v0, %v1335_v12 }
 0xd95   :  { %v1332_v33 = vpop.xlane.xlu1 %1331 }
 0xd96   :  { %v1340_v14 = vmul.f32 1.442695, %v1337_v13  ;;  %v1336_v31 = vsub.f32 %v1328_v2, %v1332_v33 }
 0xd98   :  { %4705 = vpow2.f32 %v1340_v14  ;;  %v1338_v15 = vmul.f32 1.442695, %v1336_v31  ;;  %v3972_v31 = vld [vmem:[%s4974_s4 + $0x38] sm:$0xff] }
 0xd99   :  { %v1355_v16 = vpop.permute.xlu1 %1354  ;;  %4394 = vmatprep.subr.mxu1 %v3972_v31 }
 0xd9a   :  { %4707 = vpow2.f32 %v1338_v15  ;;  %4362 = vmatprep.subr.mxu0 %v1355_v16  ;;  %v3971_v15 = vld [vmem:[%s4974_s4 + $0x30] sm:$0xff]  ;;  %4395 = vmatpush3.msra.mxu1 %v3972_v31 }
 0xd9b   :  { %4363 = vmatpush3.msra.mxu0 %v1355_v16  ;;  %v3970_v16 = vld [vmem:[%s4974_s4 + $0x28] sm:$0xff]  ;;  %4396 = vmatprep.subr.mxu1 %v3971_v15 }
 0xd9c   :  { %4397 = vmatpush3.msra.mxu1 %v3971_v15 }
 0xd9d   :  { %v1536_v58 = vpop.xlane.xlu0 %1535  ;;  %4398 = vmatprep.subr.mxu1 %v3970_v16 }
 0xd9e   :  { %v1540_v25 = vsub.f32 %v1532_v8, %v1536_v58  ;;  %4399 = vmatpush3.msra.mxu1 %v3970_v16  ;;  %v3969_v58 = vld [vmem:[%s4974_s4 + $0x20] sm:$0xff]  ;;  %s5827_s4 = sld [smem:[#allocation18_spill]] }
 0xd9f   :  { %4400 = vmatprep.subr.mxu1 %v3969_v58 }
 0xda0   :  { %v1542_v26 = vmul.f32 1.442695, %v1540_v25  ;;  %4401 = vmatpush3.msra.mxu1 %v3969_v58  ;;  %v3968_v25 = vld [vmem:[%s4969_s27 + $0x1] ss:$0 sm:$0xff]  ;;  %s5826_s27 = sld [smem:[#allocation17_spill]] }
 0xda1   :  { %v1539_v55 = vpop.xlane.xlu0 %1538 }
 0xda2   :  { %v1541_v17 = vsub.f32 %v1533_v10, %v1539_v55 }
 0xda4   :  { %v1544_v18 = vmul.f32 1.442695, %v1541_v17 }
 0xda5   :  { %v4706_v19 = vpop.eup %4705 }
 0xda6   :  { %4709 = vpow2.f32 %v1544_v18  ;;  %v1345_v20 = vsel %vm341_vm1, %v4706_v19, 0.0 }
 0xda7   :  { %v4708_v21 = vpop.eup %4707  ;;  %1346 = vadd.xlane.f32.xlu0 %v1345_v20  ;;  %4711 = vpow2.f32 %v1542_v26 }
 0xda8   :  { %v1342_v22 = vsel %vm341_vm1, %v4708_v21, 0.0 }
 0xda9   :  { %1343 = vadd.xlane.f32.xlu1 %v1342_v22 }
 0xdb3   :  { %v4710_v23 = vpop.eup %4709 }
 0xdb4   :  { %v1549_v24 = vsel %vm341_vm1, %v4710_v23, 0.0  ;;  %v4712_v27 = vpop.eup %4711 }
 0xdb5   :  { %1550 = vadd.xlane.f32.xlu0 %v1549_v24  ;;  %v1546_v28 = vsel %vm341_vm1, %v4712_v27, 0.0 }
 0xdba   :  { %1558 = vrot.lane.b32.xlu1 %v5231_v48, %s4876_s17  ;;  %v3960_v48 = vld [vmem:[%s4954_s6 + $0x38] sm:$0xff] }
 0xdcb   :  { %1352 = vrot.lane.b32.xlu0 %v5233_v50, %s4875_s13 }
 0xdde   :  { %1547 = vadd.xlane.f32.xlu1 %v1546_v28 }
 0xdef   :  { %1556 = vrot.lane.b32.xlu1 %v5233_v50, %s4876_s17  ;;  %v3958_v50 = vld [vmem:[%s4954_s6 + $0x28] sm:$0xff]  ;;  %s5823_s6 = sld [smem:[#allocation16_spill]] }
 0xe30   :  { %v1347_v29 = vpop.xlane.xlu0 %1346 }
 0xe31   :  { %4713 = vrcp.f32 %v1347_v29 }
 0xe32   :  { %v1344_v30 = vpop.xlane.xlu1 %1343 }
 0xe33   :  { %4715 = vrcp.f32 %v1344_v30 }
 0xe36   :  { %v1559_v40 = vpop.permute.xlu1 %1558 }
 0xe3e   :  { %v1551_v32 = vpop.xlane.xlu0 %1550  ;;  %v4714_v34 = vpop.eup %4713 }
 0xe3f   :  { %v1351_v39 = vmul.f32 %v4714_v34, %v4706_v19  ;;  %4717 = vrcp.f32 %v1551_v32  ;;  %v3984_v34 = vld [vmem:[%s4984_s3 + $0x78] sm:$0xff] }
 0xe40   :  { %v4716_v35 = vpop.eup %4715 }
 0xe41   :  { %v1350_v36 = vmul.f32 %v4716_v35, %v4708_v21  ;;  %v3983_v35 = vld [vmem:[%s4984_s3 + $0x70] sm:$0xff] }
 0xe42   :  { %v1353_v37 = vpop.permute.xlu0 %1352 }
 0xe43   :  { %4364 = vmatprep.subr.mxu0 %v1353_v37  ;;  %4366 = vmatprep.mubr.msk.f32.mxu0 %vm341_vm1, %v1350_v36  ;;  %v3982_v36 = vld [vmem:[%s4984_s3 + $0x68] sm:$0xff] }
 0xe44   :  { %4365 = vmatpush3.msra.mxu0 %v1353_v37  ;;  %v3981_v37 = vld [vmem:[%s4984_s3 + $0x60] sm:$0xff] }
 0xe45   :  { %4367 = vmatmul.mubr.msk.f32.vlgmr.msra.gmra.mxu0 %vm341_vm1, %v1351_v39  ;;  %4376 = vmatprep.subr.mxu0 %v1559_v40  ;;  %v3980_v39 = vld [vmem:[%s4984_s3 + $0x58] sm:$0xff] }
 0xe46   :  { %4377 = vmatpush3.msra.mxu0 %v1559_v40  ;;  %v3979_v40 = vld [vmem:[%s4984_s3 + $0x50] sm:$0xff] }
 0xe4c   :  { %v4718_v42 = vpop.eup %4717 }
 0xe4d   :  { %v1555_v47 = vmul.f32 %v4718_v42, %v4710_v23  ;;  %v3967_v23 = vld [vmem:[%s4964_s20 + $0x1] ss:$0 sm:$0xff]  ;;  %s5825_s20 = sld [smem:[#allocation9_spill]] }
 0xe4e   :  { %v3974_v42 = vld [vmem:[%s5816_s19 + $0x1] ss:$0 sm:$0xff] }
 0xe67   :  { %v1548_v41 = vpop.xlane.xlu1 %1547 }
 0xe68   :  { %4719 = vrcp.f32 %v1548_v41  ;;  %v3978_v41 = vld [vmem:[%s4984_s3 + $0x48] sm:$0xff] }
 0xe6b   :  { %v1557_v38 = vpop.permute.xlu1 %1556 }
 0xe6c   :  { %4378 = vmatprep.subr.mxu0 %v1557_v38 }
 0xe6d   :  { %4379 = vmatpush3.msra.mxu0 %v1557_v38  ;;  %v3977_v38 = vld [vmem:[%s4984_s3 + $0x40] sm:$0xff]  ;;  %s5821_s3 = sld [smem:[#allocation6_spill]] }
 0xe6e   :  { %4383 = vmatprep.subr.mxu0 %v3960_v48 }
 0xe75   :  { %v4720_v43 = vpop.eup %4719 }
 0xe76   :  { %v1554_v46 = vmul.f32 %v4720_v43, %v4712_v27 }
 0xe78   :  { %4380 = vmatprep.mubr.msk.f32.mxu0 %vm341_vm1, %v1554_v46 }
 0xe79   :  { %4381 = vmatmul.mubr.msk.f32.vlgmr.msra.gmra.mxu0 %vm341_vm1, %v1555_v47 }
 0xe7a   :  { %4384 = vmatpush3.msra.mxu0 %v3960_v48 }
 0xe7b   :  { %4385 = vmatprep.subr.mxu0 %v3959_v49 }
 0xe7c   :  { %4386 = vmatpush3.msra.mxu0 %v3959_v49 }
 0xe7d   :  { %4387 = vmatprep.subr.mxu0 %v3958_v50 }
 0xe7e   :  { %4388 = vmatpush3.msra.mxu0 %v3958_v50 }
 0xe7f   :  { %4389 = vmatprep.subr.mxu0 %v3957_v51 }
 0xe80   :  { %4390 = vmatpush3.msra.mxu0 %v3957_v51 }
 0xe81   :  { %4405 = vmatprep.subr.mxu0 %v3984_v34 }
 0xf05   :  { %v4368_v53 = vpop.f32.mrf.mxu0 }
 0xf07   :  { %v1430_v54 = vpop.f32.mrf.mxu0 }
 0xf39   :  { %v4382_v56 = vpop.f32.mrf.mxu0 }
 0xf3a   :  { %1647 = vrot.lane.b32.xlu0 %v4382_v56, %s4877_s21 }
 0xf3b   :  { %v1634_v57 = vpop.f32.mrf.mxu0 }
 0xf3c   :  { %1645 = vrot.lane.b32.xlu1 %v1634_v57, %s4877_s21 }
 0xfac   :  { %v1648_v59 = vpop.permute.xlu0 %1647 }
 0xfad   :  { %v1652_v62 = vsel %vm341_vm1, %v4368_v53, %v1648_v59 }
 0xfae   :  { %v1646_v60 = vpop.permute.xlu1 %1645 }
 0xfaf   :  { %v1651_v61 = vsel %vm341_vm1, %v1430_v54, %v1646_v60 }
 0xfb0   :  { %4391 = vmatprep.mubr.msk.f32.mxu0 %vm199_vm0, %v1651_v61 }
 0xfb1   :  { %4392 = vmatmul.mubr.msk.f32.vlgmr.msra.gmra.mxu0 %vm199_vm0, %v1652_v62 }
 0xfb2   :  { %4406 = vmatpush3.msra.mxu0 %v3984_v34 }
 0xfb3   :  { %4407 = vmatprep.subr.mxu0 %v3983_v35 }
 0xfb4   :  { %4408 = vmatpush3.msra.mxu0 %v3983_v35 }
 0xfb5   :  { %4409 = vmatprep.subr.mxu0 %v3982_v36 }
 0xfb6   :  { %4410 = vmatpush3.msra.mxu0 %v3982_v36 }
 0xfb7   :  { %4411 = vmatprep.subr.mxu0 %v3981_v37 }
 0xfb8   :  { %4412 = vmatpush3.msra.mxu0 %v3981_v37 }
 0xfb9   :  { %4413 = vmatprep.subr.mxu0 %v3980_v39 }
 0xfba   :  { %4414 = vmatpush3.msra.mxu0 %v3980_v39 }
 0xfbb   :  { %4415 = vmatprep.subr.mxu0 %v3979_v40 }
 0xfbc   :  { %4416 = vmatpush3.msra.mxu0 %v3979_v40 }
 0xfbd   :  { %4417 = vmatprep.subr.mxu0 %v3978_v41 }
 0xfbe   :  { %4418 = vmatpush3.msra.mxu0 %v3978_v41  ;;  %v3991_v41 = vld [vmem:[%s5818_s23 + $0x1] ss:$0 sm:$0xff] }
 0xfbf   :  { %4419 = vmatprep.subr.mxu0 %v3977_v38 }
 0xfc0   :  { %4420 = vmatpush3.msra.mxu0 %v3977_v38 }
0x1071   :  { %v4393_v0 = vpop.f32.mrf.mxu0 }
0x1072   :  { %v1744_v1 = vadd.f32 %v4393_v0, %v3962_v63 }
0x1073   :  { %v1738_v2 = vpop.f32.mrf.mxu0 }
0x1074   :  { %v1739_v3 = vadd.f32 %v3962_v63, %v1738_v2  ;;  %v1748_v4 = vadd.f32 %v1744_v1, %v5224_v45 }
0x1076   :  { %v1756_v5 = vsel %vm199_vm0, %v1748_v4, 0.0  ;;  %v1747_v6 = vadd.f32 %v1739_v3, %v5222_v44 }
0x1077   :  { %1757 = vadd.xlane.f32.xlu0 %v1756_v5 }
0x1078   :  { %v1753_v7 = vsel %vm199_vm0, %v1747_v6, 0.0 }
0x1079   :  { %1754 = vadd.xlane.f32.xlu1 %v1753_v7  ;;  %v2154_v7 = vld [vmem:[%s5820_s24 + $0x10] sm:$0xff] }
0x1100   :  { %v1758_v8 = vpop.xlane.xlu0 %1757 }
0x1101   :  { %v1760_v9 = vmul.f32 0.03125, %v1758_v8  ;;  %v2081_v8 = vld [vmem:[%s5821_s3] sm:$0xff] }
0x1102   :  { %v1755_v10 = vpop.xlane.xlu1 %1754  ;;  %2085 = vst.msk [vmem:[#allocation2] sm:$0xff] %vm199_vm0, %v2081_v8 }
0x1103   :  { %v1759_v11 = vmul.f32 0.03125, %v1755_v10  ;;  %v1762_v12 = vsub.f32 %v1748_v4, %v1760_v9  ;;  %v2082_v9 = vld [vmem:[%s5821_s3 + $0x8] sm:$0xff] }
0x1104   :  { %v2153_v10 = vld [vmem:[%s5820_s24 + $0x8] sm:$0xff]  ;;  %2086 = vst.msk [vmem:[#allocation2 + $0x8] sm:$0xff] %vm199_vm0, %v2082_v9 }
0x1105   :  { %v1761_v13 = vsub.f32 %v1747_v6, %v1759_v11  ;;  %v1764_v14 = vmul.f32 %v1762_v12, %v1762_v12  ;;  %v2155_v6 = vld [vmem:[%s5820_s24 + $0x18] sm:$0xff]  ;;  %v2152_v11 = vld [vmem:[%s5820_s24] sm:$0xff] }
0x1106   :  { %4424 = vmatprep.subr.mxu1 %v2155_v6 }
0x1107   :  { %v1763_v33 = vmul.f32 %v1761_v13, %v1761_v13  ;;  %v1768_v44 = vsel %vm199_vm0, %v1764_v14, 0.0 }
0x1109   :  { %v1765_v45 = vsel %vm199_vm0, %v1763_v33, 0.0  ;;  %v3986_v33 = vld [vmem:[%s5817_s22 + $0x1] ss:$0 sm:$0xff] }
0x110a   :  { %1766 = vadd.xlane.f32.xlu0 %v1765_v45 }
0x110e   :  { %1769 = vadd.xlane.f32.xlu0 %v1768_v44 }
0x1193   :  { %v1767_v55 = vpop.xlane.xlu0 %1766 }
0x1194   :  { %v1771_v17 = vmul.f32 0.03125, %v1767_v55 }
0x1196   :  { %v1773_v18 = vadd.f32 1e-12, %v1771_v17  ;;  %v2083_v17 = vld [vmem:[%s5821_s3 + $0x10] sm:$0xff] }
0x1197   :  { %v1770_v19 = vpop.xlane.xlu0 %1769  ;;  %2087 = vst.msk [vmem:[#allocation2 + $0x10] sm:$0xff] %vm199_vm0, %v2083_v17 }
0x1198   :  { %4721 = vrsqrt.f32 %v1773_v18  ;;  %v1772_v20 = vmul.f32 0.03125, %v1770_v19  ;;  %v2084_v18 = vld [vmem:[%s5821_s3 + $0x18] sm:$0xff] }
0x1199   :  { %2088 = vst.msk [vmem:[#allocation2 + $0x18] sm:$0xff] %vm199_vm0, %v2084_v18 }
0x119a   :  { %v1774_v21 = vadd.f32 1e-12, %v1772_v20 }
0x119c   :  { %4723 = vrsqrt.f32 %v1774_v21 }
0x119e   :  { %v5352_v19 = vld [vmem:[#allocation2 + $0x10] sm:$0xff] }
0x11a0   :  { %v5356_v20 = vld [vmem:[#allocation2 + $0x18] sm:$0xff] }
0x11a5   :  { %v4722_v22 = vpop.eup %4721 }
0x11a6   :  { %v1777_v24 = vmul.f32 %v4722_v22, %v1761_v13  ;;  %v5337_v13 = vld [vmem:[#allocation2 + $0x8] sm:$0xff] }
0x11a8   :  { %v1785_v26 = vmul.f32 %v3967_v23, %v1777_v24 }
0x11a9   :  { %v4724_v27 = vpop.eup %4723 }
0x11aa   :  { %v1778_v28 = vmul.f32 %v4724_v27, %v1762_v12  ;;  %v5308_v29 = vadd.f32 %v3968_v25, %v1785_v26  ;;  %v5335_v12 = vld [vmem:[#allocation2] sm:$0xff] }
0x11ac   :  { %v1786_v30 = vmul.f32 %v3967_v23, %v1778_v28  ;;  %4402 = vmatprep.mubr.msk.f32.mxu1 %vm199_vm0, %v5308_v29 }
0x11ae   :  { %v5312_v32 = vadd.f32 %v3968_v25, %v1786_v30 }
0x11b0   :  { %4403 = vmatmul.mubr.msk.f32.vlgmr.msra.gmra.mxu1 %vm199_vm0, %v5312_v32 }
0x11b1   :  { %4425 = vmatpush3.msra.mxu1 %v2155_v6  ;;  %4432 = vmatprep.mubr.msk.f32.mxu1 %vm199_vm0, %v5335_v12 }
0x11b2   :  { %4426 = vmatprep.subr.mxu1 %v2154_v7 }
0x11b3   :  { %4427 = vmatpush3.msra.mxu1 %v2154_v7 }
0x11b4   :  { %4428 = vmatprep.subr.mxu1 %v2153_v10 }
0x11b5   :  { %4429 = vmatpush3.msra.mxu1 %v2153_v10 }
0x11b6   :  { %4430 = vmatprep.subr.mxu1 %v2152_v11 }
0x11b7   :  { %4431 = vmatpush3.msra.mxu1 %v2152_v11 }
0x11b8   :  { %4433 = vmatmul.mubr.msk.f32.vlgmr.msra.gmra.mxu1 %vm199_vm0, %v5337_v13 }
0x11b9   :  { %4435 = vmatprep.mubr.msk.f32.mxu1 %vm199_vm0, %v5352_v19 }
0x11bc   :  { %4436 = vmatmul.mubr.msk.f32.gmra.mxu1 %vm199_vm0, %v5356_v20 }
0x1270   :  { %v4404_v43 = vpop.f32.mrf.mxu1 }
0x1271   :  { %v1886_v46 = vadd.f32 %v4404_v43, %v3974_v42  ;;  %v3992_v43 = vld [vmem:[%s5819_s26 + $0x1] ss:$0 sm:$0xff] }
0x1272   :  { %v1880_v47 = vpop.f32.mrf.mxu1 }
0x1273   :  { %v1890_v48 = vmul.f32 %v1886_v46, %v1886_v46  ;;  %v1881_v49 = vadd.f32 %v3974_v42, %v1880_v47 }
0x1275   :  { %v1892_v50 = vmul.f32 %v1890_v48, %v1886_v46  ;;  %v1889_v51 = vmul.f32 %v1881_v49, %v1881_v49 }
0x1277   :  { %v1894_v53 = vmul.f32 0.044715, %v1892_v50  ;;  %v1891_v54 = vmul.f32 %v1889_v51, %v1881_v49 }
0x1279   :  { %v1896_v56 = vadd.f32 %v1894_v53, %v1886_v46  ;;  %v1893_v57 = vmul.f32 0.044715, %v1891_v54 }
0x127b   :  { %v1898_v59 = vmul.f32 0.7978846, %v1896_v56  ;;  %v1895_v60 = vadd.f32 %v1893_v57, %v1881_v49  ;;  %v4434_v57 = vpop.f32.mrf.mxu1 }
0x127d   :  { %4725 = vtanh.f32 %v1898_v59  ;;  %v1897_v61 = vmul.f32 0.7978846, %v1895_v60  ;;  %v2247_v59 = vpop.f32.mrf.mxu1 }
0x127f   :  { %4727 = vtanh.f32 %v1897_v61  ;;  %v4437_v60 = vpop.f32.mrf.mxu1  ;;  %v2067_v61 = vld [vmem:[%s5822_s30] sm:$0xff] }
0x128a   :  { %v4726_v62 = vpop.eup %4725 }
0x128b   :  { %v1902_v63 = vadd.f32 1.0, %v4726_v62  ;;  %v3994_v62 = vld [vmem:[%s5823_s6] ss:$0 sm:$0xff] }
0x128c   :  { %v4728_v0 = vpop.eup %4727 }
0x128d   :  { %v1901_v1 = vadd.f32 1.0, %v4728_v0  ;;  %v1904_v2 = vmul.f32 0.5, %v1902_v63  ;;  %v2068_v63 = vld [vmem:[%s5822_s30 + $0x8] sm:$0xff]  ;;  %v2257_v0 = vpop.f32.mrf.mxu1 }
0x128f   :  { %v1903_v3 = vmul.f32 0.5, %v1901_v1  ;;  %v1906_v5 = vmul.f32 %v1904_v2, %v1886_v46  ;;  %v5369_v1 = vadd.f32 %v3994_v62, %v2257_v0  ;;  %v5371_v2 = vadd.f32 %v3994_v62, %v2247_v59 }
0x1291   :  { %v1905_v4 = vmul.f32 %v1903_v3, %v1881_v49  ;;  %v2098_v3 = vld [vmem:[%s5824_s12 + $0x8] sm:$0xff] }
0x1293   :  { %4421 = vmatprep.mubr.msk.f32.mxu0 %vm1015_vm4, %v1905_v4  ;;  %v2100_v4 = vld [vmem:[%s5824_s12 + $0x18] sm:$0xff] }
0x1294   :  { %4422 = vmatmul.mubr.msk.f32.vlgmr.msra.gmra.mxu0 %vm1015_vm4, %v1906_v5  ;;  %v2102_v5 = vld [vmem:[%s5824_s12 + $0x28] sm:$0xff] }
0x1354   :  { %v4423_v45 = vpop.f32.mrf.mxu0 }
0x1355   :  { %v2002_v14 = vadd.f32 %v4423_v45, %v3986_v33 }
0x1356   :  { %v1996_v44 = vpop.f32.mrf.mxu0 }
0x1357   :  { %v1997_v31 = vadd.f32 %v3986_v33, %v1996_v44  ;;  %v2006_v15 = vadd.f32 %v2002_v14, %v5312_v32 }
0x1359   :  { %v2014_v16 = vsel %vm199_vm0, %v2006_v15, 0.0  ;;  %v2005_v58 = vadd.f32 %v1997_v31, %v5308_v29 }
0x135a   :  { %2015 = vadd.xlane.f32.xlu0 %v2014_v16 }
0x135b   :  { %v2011_v55 = vsel %vm199_vm0, %v2005_v58, 0.0 }
0x135c   :  { %2012 = vadd.xlane.f32.xlu1 %v2011_v55 }
0x13e3   :  { %v2016_v21 = vpop.xlane.xlu0 %2015 }
0x13e4   :  { %v2018_v22 = vmul.f32 0.03125, %v2016_v21 }
0x13e5   :  { %v2013_v23 = vpop.xlane.xlu1 %2012 }
0x13e6   :  { %v2020_v24 = vsub.f32 %v2006_v15, %v2018_v22  ;;  %v2017_v25 = vmul.f32 0.03125, %v2013_v23  ;;  %v5404_v22 = vadd.f32 %v4437_v60, %v3994_v62  ;;  %v5408_v23 = vadd.f32 %v4434_v57, %v3994_v62 }
0x13e8   :  { %v2019_v26 = vsub.f32 %v2005_v58, %v2017_v25  ;;  %v2022_v27 = vmul.f32 %v2020_v24, %v2020_v24  ;;  %v2099_v25 = vld [vmem:[%s5824_s12 + $0x10] sm:$0xff] }
0x13ea   :  { %v2026_v28 = vsel %vm199_vm0, %v2022_v27, 0.0  ;;  %v2021_v29 = vmul.f32 %v2019_v26, %v2019_v26 }
0x13eb   :  { %2027 = vadd.xlane.f32.xlu0 %v2026_v28 }
0x13ec   :  { %v2023_v30 = vsel %vm199_vm0, %v2021_v29, 0.0 }
0x13ed   :  { %2024 = vadd.xlane.f32.xlu1 %v2023_v30 }
0x1474   :  { %v2028_v32 = vpop.xlane.xlu0 %2027 }
0x1475   :  { %v2030_v34 = vmul.f32 0.03125, %v2028_v32 }
0x1476   :  { %v2025_v35 = vpop.xlane.xlu1 %2024 }
0x1477   :  { %v2032_v36 = vadd.f32 1e-12, %v2030_v34  ;;  %v2029_v37 = vmul.f32 0.03125, %v2025_v35 }
0x1479   :  { %4729 = vrsqrt.f32 %v2032_v36  ;;  %v2031_v39 = vadd.f32 1e-12, %v2029_v37 }
0x147b   :  { %4731 = vrsqrt.f32 %v2031_v39 }
0x1486   :  { %v4730_v40 = vpop.eup %4729 }
0x1487   :  { %v2036_v38 = vmul.f32 %v4730_v40, %v2020_v24  ;;  %v2097_v24 = vld [vmem:[%s5824_s12] sm:$0xff] }
0x1488   :  { %v4732_v42 = vpop.eup %4731 }
0x1489   :  { %v2044_v46 = vmul.f32 %v3991_v41, %v2036_v38  ;;  %v2035_v47 = vmul.f32 %v4732_v42, %v2019_v26  ;;  %v2101_v26 = vld [vmem:[%s5824_s12 + $0x20] sm:$0xff] }
0x148b   :  { %v2052_v48 = vadd.f32 %v3992_v43, %v2044_v46  ;;  %v2043_v49 = vmul.f32 %v3991_v41, %v2035_v47 }
0x148d   :  { %v2054_v50 = vmul.f32 %v2052_v48, %v2052_v48  ;;  %v2051_v51 = vadd.f32 %v3992_v43, %v2043_v49 }
0x148f   :  { %v2058_v53 = vsel %vm199_vm0, %v2054_v50, 0.0  ;;  %v2053_v54 = vmul.f32 %v2051_v51, %v2051_v51  ;;  %v3993_v50 = vld [vmem:[%s5825_s20] ss:$0 sm:$0xff] }
0x1490   :  { %2059 = vadd.xlane.f32.xlu0 %v2058_v53 }
0x1491   :  { %v2055_v56 = vsel %vm199_vm0, %v2053_v54, 0.0 }
0x1492   :  { %2056 = vadd.xlane.f32.xlu1 %v2055_v56 }
0x14a3   :  { %2071 = vperm.xlu1 %4672, %v2067_v61  }
0x14a6   :  { %2076 = vperm.xlu0 %4671, %v2068_v63  }
0x14aa   :  { %2286 = vrot.lane.b32.xlu0 %v5369_v1, %s4870_s0 }
0x14ae   :  { %2282 = vrot.lane.b32.xlu0 %v5371_v2, %s4870_s0 }
0x14b2   :  { %2111 = vperm.xlu0 %4671, %v2098_v3  }
0x14b6   :  { %2121 = vperm.xlu0 %4671, %v2100_v4  }
0x14ba   :  { %2131 = vperm.xlu0 %4671, %v2102_v5  }
0x14be   :  { %2496 = vrot.lane.b32.xlu0 %v5369_v1, %s4875_s13 }
0x1519   :  { %v2060_v6 = vpop.xlane.xlu0 %2059 }
0x151a   :  { %v2062_v7 = vmax.f32 %v2060_v6, 1e-24 }
0x151b   :  { %v2057_v8 = vpop.xlane.xlu1 %2056 }
0x151c   :  { %4733 = vrsqrt.f32 %v2062_v7  ;;  %v2061_v9 = vmax.f32 %v2057_v8, 1e-24 }
0x151e   :  { %4735 = vrsqrt.f32 %v2061_v9 }
0x151f   :  { %v2072_v31 = vpop.permute.xlu1 %2071 }
0x1521   :  { %v2077_v45 = vpop.permute.xlu0 %2076 }
0x1525   :  { %v2287_v29 = vpop.permute.xlu0 %2286 }
0x1529   :  { %v4734_v10 = vpop.eup %4733  ;;  %v2283_v32 = vpop.permute.xlu0 %2282 }
0x152a   :  { %v2066_v11 = vmul.f32 %v4734_v10, %v2052_v48 }
0x152b   :  { %v4736_v33 = vpop.eup %4735 }
0x152c   :  { %v2065_v14 = vmul.f32 %v4736_v33, %v2051_v51  ;;  %v2080_v44 = vmul.f32 %v2077_v45, %v2066_v11 }
0x152d   :  { %v2112_v35 = vpop.permute.xlu0 %2111 }
0x152e   :  { %v2079_v15 = vmul.f32 %v2072_v31, %v2065_v14  ;;  %2090 = vst.msk [vmem:[#allocation2 + $0x28] sm:$0xff] %vm199_vm0, %v2080_v44  ;;  %vm2141_vm5 = vcmp.eq.f32.partialorder %v2112_v35, %v3993_v50 }
0x152f   :  { %v5455_v54 = vsel %vm2141_vm5, 0.0, %v4874_v52 }
0x1530   :  { %2089 = vst.msk [vmem:[#allocation2 + $0x20] sm:$0xff] %vm199_vm0, %v2079_v15 }
0x1531   :  { %v2122_v36 = vpop.permute.xlu0 %2121 }
0x1532   :  { %vm2143_vm8 = vcmp.eq.f32.partialorder %v2122_v36, %v3993_v50 }
0x1533   :  { %v5464_v3 = vsel %vm2143_vm8, 0.0, %v4874_v52 }
0x1535   :  { %v5388_v58 = vld [vmem:[#allocation2 + $0x28] sm:$0xff]  ;;  %v2132_v40 = vpop.permute.xlu0 %2131 }
0x1536   :  { %vm2145_vm10 = vcmp.eq.f32.partialorder %v2132_v40, %v3993_v50 }
0x1537   :  { %v5384_v16 = vld [vmem:[#allocation2 + $0x20] sm:$0xff]  ;;  %v5474_v45 = vsel %vm2145_vm10, 0.0, %v4874_v52 }
0x1538   :  { %4438 = vmatprep.mubr.msk.f32.mxu1 %vm199_vm0, %v5384_v16 }
0x1539   :  { %4439 = vmatmul.mubr.msk.f32.gmra.mxu1 %vm199_vm0, %v5388_v58  ;;  %v2497_v38 = vpop.permute.xlu0 %2496 }
0x153a   :  { %4453 = vmatprep.mubr.msk.f32.mxu1 %vm341_vm1, %v5371_v2 }
0x15f9   :  { %v4440_v55 = vpop.f32.mrf.mxu1 }
0x15fa   :  { %v5394_v17 = vadd.f32 %v4440_v55, %v3994_v62 }
0x15fb   :  { %v2267_v18 = vpop.f32.mrf.mxu1 }
0x15fc   :  { %v5396_v21 = vadd.f32 %v3994_v62, %v2267_v18  ;;  %2292 = vrot.lane.b32.xlu1 %v5394_v17, %s4870_s0 }
0x15fe   :  { %2500 = vrot.lane.b32.xlu0 %v5396_v21, %s4875_s13 }
0x1600   :  { %2290 = vrot.lane.b32.xlu1 %v5396_v21, %s4870_s0 }
0x1604   :  { %2288 = vrot.lane.b32.xlu1 %v5404_v22, %s4870_s0 }
0x1608   :  { %2284 = vrot.lane.b32.xlu1 %v5408_v23, %s4870_s0  ;;  %s5837_s0 = sld [smem:[#allocation27_spill]] }
0x160c   :  { %2106 = vperm.xlu1 %4672, %v2097_v24  }
0x1610   :  { %2116 = vperm.xlu1 %4672, %v2099_v25  }
0x1614   :  { %2126 = vperm.xlu1 %4672, %v2101_v26  }
0x1618   :  { %2502 = vrot.lane.b32.xlu1 %v5394_v17, %s4875_s13 }
0x161c   :  { %2498 = vrot.lane.b32.xlu1 %v5404_v22, %s4875_s13 }
0x1620   :  { %2494 = vrot.lane.b32.xlu1 %v5408_v23, %s4875_s13 }
0x1624   :  { %2492 = vrot.lane.b32.xlu1 %v5371_v2, %s4875_s13 }
0x1628   :  { %2645 = vrot.lane.b32.xlu1 %v5394_v17, %s4873_s14 }
0x166e   :  { %v2293_v27 = vpop.permute.xlu1 %2292 }
0x166f   :  { %4441 = vmatprep.subr.msk.mxu1 %vm341_vm1, %v2293_v27 }
0x1670   :  { %4442 = vmatpush3.xpose.msk.msra.mxu1 %vm341_vm1, %v2293_v27  ;;  %v2501_v43 = vpop.permute.xlu0 %2500 }
0x1672   :  { %v2291_v28 = vpop.permute.xlu1 %2290 }
0x1673   :  { %4443 = vmatprep.subr.msk.mxu1 %vm341_vm1, %v2291_v28 }
0x1674   :  { %4444 = vmatpush3.xpose.msk.msra.mxu1 %vm341_vm1, %v2291_v28 }
0x1676   :  { %v2289_v30 = vpop.permute.xlu1 %2288 }
0x1677   :  { %4445 = vmatprep.subr.msk.mxu1 %vm341_vm1, %v2289_v30 }
0x1678   :  { %4446 = vmatpush3.xpose.msk.msra.mxu1 %vm341_vm1, %v2289_v30 }
0x1679   :  { %4447 = vmatprep.subr.msk.mxu1 %vm341_vm1, %v2287_v29 }
0x167a   :  { %v2285_v34 = vpop.permute.xlu1 %2284 }
0x167c   :  { %4448 = vmatpush3.xpose.msk.msra.mxu1 %vm341_vm1, %v2287_v29 }
0x167d   :  { %4449 = vmatprep.subr.msk.mxu1 %vm341_vm1, %v2285_v34 }
0x1680   :  { %4450 = vmatpush3.xpose.msk.msra.mxu1 %vm341_vm1, %v2285_v34 }
0x1681   :  { %4451 = vmatprep.subr.msk.mxu1 %vm341_vm1, %v2283_v32 }
0x1684   :  { %4452 = vmatpush3.xpose.msk.msra.mxu1 %vm341_vm1, %v2283_v32 }
0x1687   :  { %4454 = vmatmul.mubr.msk.f32.vlgmr.msra.gmra.mxu1 %vm341_vm1, %v5408_v23  ;;  %v2107_v37 = vpop.permute.xlu1 %2106 }
0x1688   :  { %4456 = vmatprep.mubr.msk.f32.mxu1 %vm341_vm1, %v5369_v1  ;;  %vm2140_vm6 = vcmp.eq.f32.partialorder %v2107_v37, %v3993_v50 }
0x1689   :  { %v5459_v60 = vsel %vm2140_vm6, 0.0, %v4874_v52 }
0x168b   :  { %4457 = vmatmul.mubr.msk.f32.gmra.mxu1 %vm341_vm1, %v5404_v22  ;;  %v2117_v39 = vpop.permute.xlu1 %2116 }
0x168c   :  { %4459 = vmatprep.mubr.msk.f32.mxu1 %vm341_vm1, %v5396_v21  ;;  %vm2142_vm9 = vcmp.eq.f32.partialorder %v2117_v39, %v3993_v50 }
0x168d   :  { %v5469_v8 = vsel %vm2142_vm9, 0.0, %v4874_v52 }
0x168f   :  { %4460 = vmatmul.mubr.msk.f32.gmra.mxu1 %vm341_vm1, %v5394_v17  ;;  %v5447_v41 = vpop.permute.xlu1 %2126 }
0x1690   :  { %vm2144_vm11 = vcmp.eq.f32.partialorder %v5447_v41, %v3993_v50 }
0x1691   :  { %v5485_v18 = vsel %vm2144_vm11, 0.0, %v4874_v52 }
0x1693   :  { %v2503_v42 = vpop.permute.xlu1 %2502 }
0x1694   :  { %4462 = vmatprep.subr.mxu0 %v2503_v42 }
0x1695   :  { %4463 = vmatpush3.msra.mxu0 %v2503_v42 }
0x1696   :  { %4464 = vmatprep.subr.mxu0 %v2501_v43 }
0x1697   :  { %4465 = vmatpush3.msra.mxu0 %v2501_v43  ;;  %v2499_v46 = vpop.permute.xlu1 %2498 }
0x1698   :  { %4466 = vmatprep.subr.mxu0 %v2499_v46 }
0x1699   :  { %4467 = vmatpush3.msra.mxu0 %v2499_v46 }
0x169a   :  { %4468 = vmatprep.subr.mxu0 %v2497_v38 }
0x169b   :  { %4469 = vmatpush3.msra.mxu0 %v2497_v38  ;;  %v2495_v47 = vpop.permute.xlu1 %2494 }
0x169c   :  { %4470 = vmatprep.subr.mxu0 %v2495_v47 }
0x169d   :  { %4471 = vmatpush3.msra.mxu0 %v2495_v47 }
0x169f   :  { %v2493_v48 = vpop.permute.xlu1 %2492 }
0x16a0   :  { %4472 = vmatprep.subr.mxu0 %v2493_v48 }
0x16a1   :  { %4473 = vmatpush3.msra.mxu0 %v2493_v48 }
0x16a3   :  { %v5449_v49 = vpop.permute.xlu1 %2645 }
0x16a4   :  { %4483 = vmatprep.subr.msk.mxu0 %vm341_vm1, %v5449_v49 }
0x1747   :  { %v4455_v51 = vpop.f32.mrf.mxu1 }
0x1748   :  { %v2414_v53 = vmul.f32 0.25, %v4455_v51 }
0x1749   :  { %v2384_v56 = vpop.f32.mrf.mxu1 }
0x174a   :  { %v2413_v57 = vmul.f32 0.25, %v2384_v56  ;;  %v2420_v59 = vadd.f32 %v2414_v53, %v5455_v54 }
0x174b   :  { %v4458_v61 = vpop.f32.mrf.mxu1 }
0x174c   :  { %v2416_v62 = vmul.f32 0.25, %v4458_v61  ;;  %v2429_v63 = vsel %vm2425_vm7, %v2420_v59, -inf  ;;  %v2419_v0 = vadd.f32 %v2413_v57, %v5459_v60 }
0x174d   :  { %2430 = vmax.xlane.f32.xlu0 %v2429_v63  ;;  %v2394_v4 = vpop.f32.mrf.mxu1 }
0x174e   :  { %v2415_v5 = vmul.f32 0.25, %v2394_v4  ;;  %v2426_v6 = vsel %vm2425_vm7, %v2419_v0, -inf  ;;  %v2422_v7 = vadd.f32 %v2416_v62, %v5464_v3 }
0x174f   :  { %v4461_v9 = vpop.f32.mrf.mxu1  ;;  %2427 = vmax.xlane.f32.xlu1 %v2426_v6 }
0x1750   :  { %v2418_v10 = vmul.f32 0.25, %v4461_v9  ;;  %v2435_v11 = vsel %vm2425_vm7, %v2422_v7, -inf  ;;  %v2421_v33 = vadd.f32 %v2415_v5, %v5469_v8 }
0x1751   :  { %2436 = vmax.xlane.f32.xlu0 %v2435_v11  ;;  %v2404_v15 = vpop.f32.mrf.mxu1 }
0x1752   :  { %v2432_v14 = vsel %vm2425_vm7, %v2421_v33, -inf  ;;  %v2424_v44 = vadd.f32 %v2418_v10, %v5474_v45  ;;  %v2417_v55 = vmul.f32 0.25, %v2404_v15 }
0x1754   :  { %v2441_v31 = vsel %vm2425_vm7, %v2424_v44, -inf  ;;  %v2423_v24 = vadd.f32 %v2417_v55, %v5485_v18 }
0x1755   :  { %2433 = vmax.xlane.f32.xlu0 %v2432_v14 }
0x1756   :  { %v2438_v25 = vsel %vm2425_vm7, %v2423_v24, -inf }
0x1759   :  { %2442 = vmax.xlane.f32.xlu0 %v2441_v31 }
0x1760   :  { %2641 = vrot.lane.b32.xlu1 %v5404_v22, %s4873_s14 }
0x176f   :  { %2643 = vrot.lane.b32.xlu0 %v5396_v21, %s4873_s14 }
0x1784   :  { %2439 = vmax.xlane.f32.xlu1 %v2438_v25 }
0x1795   :  { %2637 = vrot.lane.b32.xlu1 %v5408_v23, %s4873_s14 }
0x17d6   :  { %v2431_v26 = vpop.xlane.xlu0 %2430 }
0x17d7   :  { %v2445_v27 = vsub.f32 %v2420_v59, %v2431_v26 }
0x17d8   :  { %v2428_v28 = vpop.xlane.xlu1 %2427 }
0x17d9   :  { %v2452_v29 = vmul.f32 1.442695, %v2445_v27  ;;  %v2444_v30 = vsub.f32 %v2419_v0, %v2428_v28 }
0x17da   :  { %v2437_v32 = vpop.xlane.xlu0 %2436 }
0x17db   :  { %4737 = vpow2.f32 %v2452_v29  ;;  %v2450_v34 = vmul.f32 1.442695, %v2444_v30  ;;  %v2447_v43 = vsub.f32 %v2422_v7, %v2437_v32 }
0x17dc   :  { %v2642_v47 = vpop.permute.xlu1 %2641 }
0x17dd   :  { %4739 = vpow2.f32 %v2450_v34  ;;  %v2456_v48 = vmul.f32 1.442695, %v2447_v43 }
0x17de   :  { %v2434_v35 = vpop.xlane.xlu0 %2433 }
0x17df   :  { %v2446_v52 = vsub.f32 %v2421_v33, %v2434_v35 }
0x17e1   :  { %v2454_v36 = vmul.f32 1.442695, %v2446_v52 }
0x17e2   :  { %v2443_v46 = vpop.xlane.xlu0 %2442 }
0x17e3   :  { %4741 = vpow2.f32 %v2454_v36  ;;  %v2449_v50 = vsub.f32 %v2424_v44, %v2443_v46 }
0x17e4   :  { %4743 = vpow2.f32 %v2456_v48 }
0x17e5   :  { %v2460_v53 = vmul.f32 1.442695, %v2449_v50 }
0x17e6   :  { %v2644_v5 = vpop.permute.xlu0 %2643 }
0x17e7   :  { %4745 = vpow2.f32 %v2460_v53 }
0x17e8   :  { %v4738_v37 = vpop.eup %4737 }
0x17e9   :  { %v2465_v39 = vsel %vm2425_vm7, %v4738_v37, 0.0 }
0x17ea   :  { %v4740_v40 = vpop.eup %4739  ;;  %2466 = vadd.xlane.f32.xlu0 %v2465_v39 }
0x17eb   :  { %v2462_v41 = vsel %vm2425_vm7, %v4740_v40, 0.0 }
0x17ec   :  { %2463 = vadd.xlane.f32.xlu1 %v2462_v41 }
0x17f0   :  { %v4742_v38 = vpop.eup %4741 }
0x17f1   :  { %v2468_v42 = vsel %vm2425_vm7, %v4742_v38, 0.0  ;;  %v4744_v59 = vpop.eup %4743 }
0x17f2   :  { %2469 = vadd.xlane.f32.xlu1 %v2468_v42  ;;  %v2471_v61 = vsel %vm2425_vm7, %v4744_v59, 0.0 }
0x17f4   :  { %v4746_v62 = vpop.eup %4745 }
0x17f5   :  { %v2477_v63 = vsel %vm2425_vm7, %v4746_v62, 0.0 }
0x1800   :  { %2639 = vrot.lane.b32.xlu0 %v5369_v1, %s4873_s14 }
0x1803   :  { %2623 = vrot.lane.b32.xlu1 %v5371_v2, %s4871_s5 }
0x180d   :  { %v2440_v51 = vpop.xlane.xlu1 %2439 }
0x180e   :  { %v2448_v56 = vsub.f32 %v2423_v24, %v2440_v51 }
0x1810   :  { %v2458_v57 = vmul.f32 1.442695, %v2448_v56 }
0x1811   :  { %v2638_v6 = vpop.permute.xlu1 %2637 }
0x1812   :  { %4747 = vpow2.f32 %v2458_v57 }
0x181f   :  { %2472 = vadd.xlane.f32.xlu0 %v2471_v61  ;;  %v4748_v0 = vpop.eup %4747 }
0x1820   :  { %v2474_v4 = vsel %vm2425_vm7, %v4748_v0, 0.0 }
0x1823   :  { %2478 = vadd.xlane.f32.xlu0 %v2477_v63 }
0x1827   :  { %2475 = vadd.xlane.f32.xlu1 %v2474_v4 }
0x1838   :  { %2627 = vrot.lane.b32.xlu1 %v5369_v1, %s4871_s5 }
0x1839   :  { %2635 = vrot.lane.b32.xlu0 %v5371_v2, %s4873_s14 }
0x183c   :  { %2631 = vrot.lane.b32.xlu1 %v5396_v21, %s4871_s5 }
0x183d   :  { %2625 = vrot.lane.b32.xlu0 %v5408_v23, %s4871_s5 }
0x1841   :  { %2629 = vrot.lane.b32.xlu0 %v5404_v22, %s4871_s5 }
0x1845   :  { %2633 = vrot.lane.b32.xlu0 %v5394_v17, %s4871_s5  ;;  %s4880_s5 = smov [#allocation3]  }
0x1846   :  { %s3858_s14 = sshll.u32 %s4880_s5, 4  ;;  %s3859_s14 = int_to_ptr.vmem [resolvable:$true] %s3858_s14 }
0x1847   :  { %p4814_p1 = scmp.lt.s32.totalorder %s3859_s14, %s3859_s14 }
0x1873   :  { %v2467_v7 = vpop.xlane.xlu0 %2466 }
0x1874   :  { %4749 = vrcp.f32 %v2467_v7 }
0x1875   :  { %v2464_v9 = vpop.xlane.xlu1 %2463 }
0x1876   :  { %4751 = vrcp.f32 %v2464_v9 }
0x1877   :  { %v2640_v55 = vpop.permute.xlu0 %2639 }
0x187b   :  { %v2470_v10 = vpop.xlane.xlu1 %2469 }
0x187c   :  { %4753 = vrcp.f32 %v2470_v10 }
0x187f   :  { %v2624_v24 = vpop.permute.xlu1 %2623 }
0x1881   :  { %v4750_v11 = vpop.eup %4749 }
0x1882   :  { %v2487_v44 = vmul.f32 %v4750_v11, %v4738_v37 }
0x1883   :  { %v4752_v33 = vpop.eup %4751 }
0x1884   :  { %v2486_v14 = vmul.f32 %v4752_v33, %v4740_v40 }
0x1886   :  { %4474 = vmatprep.mubr.msk.f32.mxu0 %vm2425_vm7, %v2486_v14 }
0x1887   :  { %4475 = vmatmul.mubr.msk.f32.vlgmr.msra.gmra.mxu0 %vm2425_vm7, %v2487_v44 }
0x1888   :  { %4484 = vmatpush3.xpose.msk.msra.mxu0 %vm341_vm1, %v5449_v49 }
0x1889   :  { %v4754_v31 = vpop.eup %4753  ;;  %4485 = vmatprep.subr.msk.mxu0 %vm341_vm1, %v2644_v5 }
0x188a   :  { %v2488_v15 = vmul.f32 %v4754_v31, %v4742_v38 }
0x188c   :  { %4486 = vmatpush3.xpose.msk.msra.mxu0 %vm341_vm1, %v2644_v5  ;;  %4477 = vmatprep.mubr.msk.f32.mxu0 %vm2425_vm7, %v2488_v15 }
0x188d   :  { %4487 = vmatprep.subr.msk.mxu0 %vm341_vm1, %v2642_v47 }
0x1890   :  { %4488 = vmatpush3.xpose.msk.msra.mxu0 %vm341_vm1, %v2642_v47 }
0x1891   :  { %4489 = vmatprep.subr.msk.mxu0 %vm341_vm1, %v2640_v55 }
0x1894   :  { %4490 = vmatpush3.xpose.msk.msra.mxu0 %vm341_vm1, %v2640_v55 }
0x1895   :  { %4491 = vmatprep.subr.msk.mxu0 %vm341_vm1, %v2638_v6 }
0x1898   :  { %4492 = vmatpush3.xpose.msk.msra.mxu0 %vm341_vm1, %v2638_v6 }
0x18a8   :  { %v2473_v49 = vpop.xlane.xlu0 %2472 }
0x18a9   :  { %4755 = vrcp.f32 %v2473_v49 }
0x18ac   :  { %v2479_v25 = vpop.xlane.xlu0 %2478 }
0x18ad   :  { %4757 = vrcp.f32 %v2479_v25 }
0x18b0   :  { %v2636_v26 = vpop.permute.xlu0 %2635  ;;  %v2476_v27 = vpop.xlane.xlu1 %2475 }
0x18b1   :  { %4759 = vrcp.f32 %v2476_v27  ;;  %4493 = vmatprep.subr.msk.mxu0 %vm341_vm1, %v2636_v26 }
0x18b2   :  { %4494 = vmatpush3.xpose.msk.msra.mxu0 %vm341_vm1, %v2636_v26 }
0x18b4   :  { %v2626_v52 = vpop.permute.xlu0 %2625  ;;  %v2628_v36 = vpop.permute.xlu1 %2627 }
0x18b6   :  { %v4756_v28 = vpop.eup %4755 }
0x18b7   :  { %v2489_v29 = vmul.f32 %v4756_v28, %v4744_v59 }
0x18b8   :  { %v2630_v37 = vpop.permute.xlu0 %2629  ;;  %v2632_v39 = vpop.permute.xlu1 %2631 }
0x18b9   :  { %4478 = vmatmul.mubr.msk.f32.gmra.mxu0 %vm2425_vm7, %v2489_v29 }
0x18ba   :  { %v4758_v30 = vpop.eup %4757 }
0x18bb   :  { %v2491_v35 = vmul.f32 %v4758_v30, %v4746_v62 }
0x18bc   :  { %v2634_v40 = vpop.permute.xlu0 %2633 }
0x18be   :  { %v4760_v32 = vpop.eup %4759 }
0x18bf   :  { %v2490_v34 = vmul.f32 %v4760_v32, %v4748_v0 }
0x18c1   :  { %4480 = vmatprep.mubr.msk.f32.mxu0 %vm2425_vm7, %v2490_v34 }
0x18c2   :  { %4481 = vmatmul.mubr.msk.f32.gmra.mxu0 %vm2425_vm7, %v2491_v35 }
0x18c3   :  { %4495 = vmatprep.mubr.msk.f32.mxu0 %vm341_vm1, %v2624_v24 }
0x18c6   :  { %4496 = vmatmul.mubr.msk.f32.vlgmr.msra.gmra.mxu0 %vm341_vm1, %v2626_v52 }
0x18c7   :  { %4498 = vmatprep.mubr.msk.f32.mxu0 %vm341_vm1, %v2628_v36 }
0x18ca   :  { %4499 = vmatmul.mubr.msk.f32.gmra.mxu0 %vm341_vm1, %v2630_v37 }
0x18cb   :  { %4501 = vmatprep.mubr.msk.f32.mxu0 %vm341_vm1, %v2632_v39 }
0x18ce   :  { %4502 = vmatmul.mubr.msk.f32.gmra.mxu0 %vm341_vm1, %v2634_v40 }
0x1947   :  { %v5537_v41 = vpop.f32.mrf.mxu0 }
0x1949   :  { %v5539_v38 = vpop.f32.mrf.mxu0 }
0x1979   :  { %v5541_v42 = vpop.f32.mrf.mxu0 }
0x197b   :  { %v5543_v43 = vpop.f32.mrf.mxu0 }
0x1982   :  { %v5545_v46 = vpop.f32.mrf.mxu0 }
0x1984   :  { %v5547_v47 = vpop.f32.mrf.mxu0 }
0x1986   :  { %v4497_v48 = vpop.f32.mrf.mxu0 }
0x1987   :  { %v2767_v50 = vmul.f32 0.25, %v4497_v48 }
0x1988   :  { %v2737_v51 = vpop.f32.mrf.mxu0 }
0x1989   :  { %v2773_v53 = vadd.f32 %v2767_v50, %v5455_v54  ;;  %v2766_v56 = vmul.f32 0.25, %v2737_v51 }
0x198a   :  { %v4500_v57 = vpop.f32.mrf.mxu0 }
0x198b   :  { %v2772_v59 = vadd.f32 %v2766_v56, %v5459_v60  ;;  %v2781_v61 = vsel %vm2425_vm7, %v2773_v53, -inf  ;;  %v2769_v63 = vmul.f32 0.25, %v4500_v57 }
0x198c   :  { %2782 = vmax.xlane.f32.xlu0 %v2781_v61  ;;  %v2747_v62 = vpop.f32.mrf.mxu0 }
0x198d   :  { %v2768_v0 = vmul.f32 0.25, %v2747_v62  ;;  %v2778_v4 = vsel %vm2425_vm7, %v2772_v59, -inf  ;;  %v2775_v9 = vadd.f32 %v2769_v63, %v5464_v3 }
0x198e   :  { %2779 = vmax.xlane.f32.xlu1 %v2778_v4  ;;  %v4503_v5 = vpop.f32.mrf.mxu0 }
0x198f   :  { %v2774_v6 = vadd.f32 %v2768_v0, %v5469_v8  ;;  %v2771_v54 = vmul.f32 0.25, %v4503_v5  ;;  %v2787_v14 = vsel %vm2425_vm7, %v2775_v9, -inf }
0x1990   :  { %v2757_v7 = vpop.f32.mrf.mxu0 }
0x1991   :  { %v2770_v10 = vmul.f32 0.25, %v2757_v7  ;;  %v2784_v11 = vsel %vm2425_vm7, %v2774_v6, -inf  ;;  %v2777_v33 = vadd.f32 %v2771_v54, %v5474_v45 }
0x1992   :  { %2785 = vmax.xlane.f32.xlu0 %v2784_v11 }
0x1993   :  { %v2776_v60 = vadd.f32 %v2770_v10, %v5485_v18  ;;  %v2793_v8 = vsel %vm2425_vm7, %v2777_v33, -inf }
0x1995   :  { %v2790_v44 = vsel %vm2425_vm7, %v2776_v60, -inf }
0x1996   :  { %2788 = vmax.xlane.f32.xlu0 %v2787_v14  ;;  %2791 = vmax.xlane.f32.xlu1 %v2790_v44 }
0x199a   :  { %2794 = vmax.xlane.f32.xlu0 %v2793_v8 }
0x19a7   :  { %2854 = vrot.lane.b32.xlu1 %v5394_v17, %s4876_s17 }
0x19ab   :  { %2850 = vrot.lane.b32.xlu1 %v5404_v22, %s4876_s17 }
0x19af   :  { %2848 = vrot.lane.b32.xlu1 %v5369_v1, %s4876_s17 }
0x19b0   :  { %2852 = vrot.lane.b32.xlu0 %v5396_v21, %s4876_s17 }
0x1a15   :  { %v2783_v3 = vpop.xlane.xlu0 %2782 }
0x1a16   :  { %v2797_v45 = vsub.f32 %v2773_v53, %v2783_v3 }
0x1a17   :  { %v2780_v18 = vpop.xlane.xlu1 %2779 }
0x1a18   :  { %v2804_v31 = vmul.f32 1.442695, %v2797_v45  ;;  %v2796_v15 = vsub.f32 %v2772_v59, %v2780_v18  ;;  %v3008_v18 = vld [vmem:[%s5826_s27 + $0x18] sm:$0xff] }
0x1a1a   :  { %4761 = vpow2.f32 %v2804_v31  ;;  %v2802_v55 = vmul.f32 1.442695, %v2796_v15  ;;  %v3007_v31 = vld [vmem:[%s5826_s27 + $0x10] sm:$0xff]  ;;  %v3006_v15 = vld [vmem:[%s5826_s27 + $0x8] sm:$0xff] }
0x1a1b   :  { %v2786_v49 = vpop.xlane.xlu0 %2785 }
0x1a1c   :  { %4763 = vpow2.f32 %v2802_v55  ;;  %v2798_v24 = vsub.f32 %v2774_v6, %v2786_v49  ;;  %v3005_v55 = vld [vmem:[%s5826_s27] sm:$0xff] }
0x1a1e   :  { %v2806_v17 = vmul.f32 1.442695, %v2798_v24 }
0x1a1f   :  { %v2789_v25 = vpop.xlane.xlu0 %2788  ;;  %v2792_v26 = vpop.xlane.xlu1 %2791 }
0x1a20   :  { %4765 = vpow2.f32 %v2806_v17  ;;  %v2799_v22 = vsub.f32 %v2775_v9, %v2789_v25  ;;  %v2800_v27 = vsub.f32 %v2776_v60, %v2792_v26 }
0x1a22   :  { %v2808_v1 = vmul.f32 1.442695, %v2799_v22  ;;  %v2810_v28 = vmul.f32 1.442695, %v2800_v27 }
0x1a23   :  { %v2795_v29 = vpop.xlane.xlu0 %2794  ;;  %v2855_v21 = vpop.permute.xlu1 %2854 }
0x1a24   :  { %4767 = vpow2.f32 %v2808_v1  ;;  %v2801_v30 = vsub.f32 %v2777_v33, %v2795_v29  ;;  %4504 = vmatprep.subr.mxu1 %v2855_v21 }
0x1a25   :  { %4769 = vpow2.f32 %v2810_v28  ;;  %4505 = vmatpush3.msra.mxu1 %v2855_v21 }
0x1a26   :  { %v2812_v32 = vmul.f32 1.442695, %v2801_v30 }
0x1a27   :  { %v4762_v34 = vpop.eup %4761  ;;  %v2853_v35 = vpop.permute.xlu0 %2852 }
0x1a28   :  { %v2851_v52 = vpop.permute.xlu1 %2850  ;;  %4771 = vpow2.f32 %v2812_v32  ;;  %4506 = vmatprep.subr.mxu1 %v2853_v35  ;;  %v2817_v36 = vsel %vm2425_vm7, %v4762_v34, 0.0 }
0x1a29   :  { %v4764_v37 = vpop.eup %4763  ;;  %2818 = vadd.xlane.f32.xlu0 %v2817_v36  ;;  %4507 = vmatpush3.msra.mxu1 %v2853_v35 }
0x1a2a   :  { %4508 = vmatprep.subr.mxu1 %v2851_v52  ;;  %v2814_v39 = vsel %vm2425_vm7, %v4764_v37, 0.0 }
0x1a2b   :  { %2815 = vadd.xlane.f32.xlu1 %v2814_v39  ;;  %4509 = vmatpush3.msra.mxu1 %v2851_v52 }
0x1a2c   :  { %v2849_v40 = vpop.permute.xlu1 %2848 }
0x1a2d   :  { %4510 = vmatprep.subr.mxu1 %v2849_v40  ;;  %v4766_v48 = vpop.eup %4765 }
0x1a2e   :  { %4511 = vmatpush3.msra.mxu1 %v2849_v40  ;;  %v2820_v50 = vsel %vm2425_vm7, %v4766_v48, 0.0 }
0x1a2f   :  { %2821 = vadd.xlane.f32.xlu1 %v2820_v50 }
0x1a31   :  { %v4768_v51 = vpop.eup %4767 }
0x1a32   :  { %v4770_v53 = vpop.eup %4769  ;;  %v2823_v56 = vsel %vm2425_vm7, %v4768_v51, 0.0 }
0x1a33   :  { %2824 = vadd.xlane.f32.xlu0 %v2823_v56  ;;  %v2826_v57 = vsel %vm2425_vm7, %v4770_v53, 0.0 }
0x1a34   :  { %2827 = vadd.xlane.f32.xlu1 %v2826_v57 }
0x1a35   :  { %v4772_v59 = vpop.eup %4771 }
0x1a36   :  { %v2829_v61 = vsel %vm2425_vm7, %v4772_v59, 0.0 }
0x1a37   :  { %2830 = vadd.xlane.f32.xlu0 %v2829_v61 }
0x1a45   :  { %2846 = vrot.lane.b32.xlu1 %v5408_v23, %s4876_s17 }
0x1a4d   :  { %2844 = vrot.lane.b32.xlu0 %v5371_v2, %s4876_s17 }
0x1ab2   :  { %v2819_v62 = vpop.xlane.xlu0 %2818 }
0x1ab3   :  { %4773 = vrcp.f32 %v2819_v62 }
0x1ab4   :  { %v2816_v63 = vpop.xlane.xlu1 %2815 }
0x1ab5   :  { %4775 = vrcp.f32 %v2816_v63 }
0x1ab8   :  { %v2822_v0 = vpop.xlane.xlu1 %2821 }
0x1ab9   :  { %4777 = vrcp.f32 %v2822_v0 }
0x1abc   :  { %v2825_v4 = vpop.xlane.xlu0 %2824 }
0x1abd   :  { %4779 = vrcp.f32 %v2825_v4  ;;  %v2828_v5 = vpop.xlane.xlu1 %2827 }
0x1abe   :  { %4781 = vrcp.f32 %v2828_v5 }
0x1ac0   :  { %v2831_v6 = vpop.xlane.xlu0 %2830  ;;  %v4774_v7 = vpop.eup %4773 }
0x1ac1   :  { %4783 = vrcp.f32 %v2831_v6  ;;  %v2847_v9 = vpop.permute.xlu1 %2846  ;;  %v2839_v2 = vmul.f32 %v4774_v7, %v4762_v34 }
0x1ac2   :  { %v4776_v54 = vpop.eup %4775  ;;  %4512 = vmatprep.subr.mxu1 %v2847_v9 }
0x1ac3   :  { %4513 = vmatpush3.msra.mxu1 %v2847_v9  ;;  %v2838_v23 = vmul.f32 %v4776_v54, %v4764_v37 }
0x1ac4   :  { %v2845_v10 = vpop.permute.xlu0 %2844 }
0x1ac5   :  { %4514 = vmatprep.subr.mxu1 %v2845_v10  ;;  %4516 = vmatprep.mubr.msk.f32.mxu1 %vm2425_vm7, %v2838_v23 }
0x1ac6   :  { %v4778_v11 = vpop.eup %4777  ;;  %4515 = vmatpush3.msra.mxu1 %v2845_v10 }
0x1ac7   :  { %4517 = vmatmul.mubr.msk.f32.vlgmr.msra.gmra.mxu1 %vm2425_vm7, %v2839_v2  ;;  %v2840_v60 = vmul.f32 %v4778_v11, %v4766_v48  ;;  %4525 = vmatprep.subr.mxu1 %v3008_v18 }
0x1ac8   :  { %4526 = vmatpush3.msra.mxu1 %v3008_v18 }
0x1ac9   :  { %4519 = vmatprep.mubr.msk.f32.mxu1 %vm2425_vm7, %v2840_v60  ;;  %4527 = vmatprep.subr.mxu1 %v3007_v31 }
0x1aca   :  { %v4780_v33 = vpop.eup %4779  ;;  %4528 = vmatpush3.msra.mxu1 %v3007_v31 }
0x1acb   :  { %v4782_v14 = vpop.eup %4781  ;;  %v2841_v44 = vmul.f32 %v4780_v33, %v4768_v51  ;;  %4529 = vmatprep.subr.mxu1 %v3006_v15 }
0x1acc   :  { %v2842_v8 = vmul.f32 %v4782_v14, %v4770_v53  ;;  %4530 = vmatpush3.msra.mxu1 %v3006_v15 }
0x1acd   :  { %4520 = vmatmul.mubr.msk.f32.gmra.mxu1 %vm2425_vm7, %v2841_v44  ;;  %4531 = vmatprep.subr.mxu1 %v3005_v55 }
0x1ace   :  { %v4784_v3 = vpop.eup %4783  ;;  %4522 = vmatprep.mubr.msk.f32.mxu1 %vm2425_vm7, %v2842_v8  ;;  %4532 = vmatpush3.msra.mxu1 %v3005_v55 }
0x1acf   :  { %v2843_v45 = vmul.f32 %v4784_v3, %v4772_v59 }
0x1ad1   :  { %4523 = vmatmul.mubr.msk.f32.gmra.mxu1 %vm2425_vm7, %v2843_v45 }
0x1b87   :  { %v4518_v49 = vpop.f32.mrf.mxu1 }
0x1b88   :  { %2983 = vrot.lane.b32.xlu0 %v4518_v49, %s4877_s21 }
0x1b89   :  { %v2946_v24 = vpop.f32.mrf.mxu1 }
0x1b8a   :  { %2981 = vrot.lane.b32.xlu1 %v2946_v24, %s4877_s21 }
0x1b8d   :  { %v4521_v17 = vpop.f32.mrf.mxu1 }
0x1b8e   :  { %2987 = vrot.lane.b32.xlu0 %v4521_v17, %s4877_s21 }
0x1b8f   :  { %v2956_v25 = vpop.f32.mrf.mxu1 }
0x1b90   :  { %2985 = vrot.lane.b32.xlu1 %v2956_v25, %s4877_s21 }
0x1b91   :  { %v4524_v26 = vpop.f32.mrf.mxu1 }
0x1b92   :  { %2991 = vrot.lane.b32.xlu0 %v4524_v26, %s4877_s21 }
0x1b93   :  { %v2966_v22 = vpop.f32.mrf.mxu1 }
0x1b94   :  { %2989 = vrot.lane.b32.xlu1 %v2966_v22, %s4877_s21 }
0x1bfa   :  { %v2984_v27 = vpop.permute.xlu0 %2983 }
0x1bfb   :  { %v3000_v29 = vsel %vm341_vm1, %v5537_v41, %v2984_v27 }
0x1bfc   :  { %v2982_v1 = vpop.permute.xlu1 %2981 }
0x1bfd   :  { %v2999_v28 = vsel %vm341_vm1, %v5539_v38, %v2982_v1 }
0x1bfe   :  { %4533 = vmatprep.mubr.msk.f32.mxu1 %vm199_vm0, %v2999_v28 }
0x1bff   :  { %4534 = vmatmul.mubr.msk.f32.vlgmr.msra.gmra.mxu1 %vm199_vm0, %v3000_v29  ;;  %v3242_v29 = vld [vmem:[%s5828_s28 + $0x18] sm:$0xff] }
0x1c00   :  { %v2988_v21 = vpop.permute.xlu0 %2987  ;;  %4542 = vmatprep.subr.mxu0 %v3242_v29 }
0x1c01   :  { %v3002_v34 = vsel %vm341_vm1, %v5541_v42, %v2988_v21  ;;  %v3241_v21 = vld [vmem:[%s5828_s28 + $0x10] sm:$0xff]  ;;  %4543 = vmatpush3.msra.mxu0 %v3242_v29 }
0x1c02   :  { %v2986_v30 = vpop.permute.xlu1 %2985  ;;  %4544 = vmatprep.subr.mxu0 %v3241_v21 }
0x1c03   :  { %v3001_v32 = vsel %vm341_vm1, %v5543_v43, %v2986_v30  ;;  %v4037_v43 = vld [vmem:[%s5827_s4] ss:$0 sm:$0xff]  ;;  %v3240_v30 = vld [vmem:[%s5828_s28 + $0x8] sm:$0xff]  ;;  %4545 = vmatpush3.msra.mxu0 %v3241_v21 }
0x1c04   :  { %4536 = vmatprep.mubr.msk.f32.mxu1 %vm199_vm0, %v3001_v32  ;;  %v2992_v35 = vpop.permute.xlu0 %2991  ;;  %v3239_v32 = vld [vmem:[%s5828_s28] sm:$0xff]  ;;  %4546 = vmatprep.subr.mxu0 %v3240_v30 }
0x1c05   :  { %4537 = vmatmul.mubr.msk.f32.gmra.mxu1 %vm199_vm0, %v3002_v34  ;;  %v3004_v52 = vsel %vm341_vm1, %v5545_v46, %v2992_v35  ;;  %4547 = vmatpush3.msra.mxu0 %v3240_v30  ;;  %v3376_v34 = vld [vmem:[%s5829_s1 + $0x38] sm:$0xff]  ;;  %v3375_v35 = vld [vmem:[%s5829_s1 + $0x30] sm:$0xff] }
0x1c06   :  { %v2990_v38 = vpop.permute.xlu1 %2989  ;;  %4548 = vmatprep.subr.mxu0 %v3239_v32  ;;  %4559 = vmatprep.subr.mxu1 %v3376_v34 }
0x1c07   :  { %v3003_v41 = vsel %vm341_vm1, %v5547_v47, %v2990_v38  ;;  %4549 = vmatpush3.msra.mxu0 %v3239_v32  ;;  %4560 = vmatpush3.msra.mxu1 %v3376_v34  ;;  %v3374_v38 = vld [vmem:[%s5829_s1 + $0x28] sm:$0xff] }
0x1c08   :  { %4539 = vmatprep.mubr.msk.f32.mxu1 %vm199_vm0, %v3003_v41  ;;  %4561 = vmatprep.subr.mxu1 %v3375_v35  ;;  %v3373_v41 = vld [vmem:[%s5829_s1 + $0x20] sm:$0xff] }
0x1c09   :  { %4540 = vmatmul.mubr.msk.f32.gmra.mxu1 %vm199_vm0, %v3004_v52 }
0x1c0a   :  { %4562 = vmatpush3.msra.mxu1 %v3375_v35 }
0x1c0b   :  { %4563 = vmatprep.subr.mxu1 %v3374_v38 }
0x1c0c   :  { %4564 = vmatpush3.msra.mxu1 %v3374_v38 }
0x1c0d   :  { %4565 = vmatprep.subr.mxu1 %v3373_v41 }
0x1c0e   :  { %4566 = vmatpush3.msra.mxu1 %v3373_v41 }
0x1cbf   :  { %v4535_v36 = vpop.f32.mrf.mxu1 }
0x1cc0   :  { %v3106_v37 = vadd.f32 %v4535_v36, %v4037_v43 }
0x1cc1   :  { %v3100_v42 = vpop.f32.mrf.mxu1 }
0x1cc2   :  { %v3130_v39 = vadd.f32 %v3106_v37, %v5337_v13  ;;  %v3101_v40 = vadd.f32 %v4037_v43, %v3100_v42 }
0x1cc4   :  { %v3129_v48 = vadd.f32 %v3101_v40, %v5335_v12  ;;  %v3140_v50 = vsel %vm199_vm0, %v3130_v39, 0.0 }
0x1cc5   :  { %3141 = vadd.xlane.f32.xlu0 %v3140_v50  ;;  %v4538_v47 = vpop.f32.mrf.mxu1 }
0x1cc6   :  { %v3137_v51 = vsel %vm199_vm0, %v3129_v48, 0.0  ;;  %v3116_v53 = vadd.f32 %v4538_v47, %v4037_v43 }
0x1cc7   :  { %v3110_v46 = vpop.f32.mrf.mxu1  ;;  %3138 = vadd.xlane.f32.xlu1 %v3137_v51 }
0x1cc8   :  { %v3111_v56 = vadd.f32 %v4037_v43, %v3110_v46  ;;  %v3132_v62 = vadd.f32 %v3116_v53, %v5356_v20 }
0x1cc9   :  { %v4541_v57 = vpop.f32.mrf.mxu1 }
0x1cca   :  { %v3131_v59 = vadd.f32 %v3111_v56, %v5352_v19  ;;  %v3126_v13 = vadd.f32 %v4541_v57, %v4037_v43  ;;  %v3146_v5 = vsel %vm199_vm0, %v3132_v62, 0.0 }
0x1ccb   :  { %v3120_v61 = vpop.f32.mrf.mxu1 }
0x1ccc   :  { %v3121_v63 = vadd.f32 %v4037_v43, %v3120_v61  ;;  %v3143_v12 = vsel %vm199_vm0, %v3131_v59, 0.0  ;;  %v3134_v4 = vadd.f32 %v3126_v13, %v5388_v58  ;;  %v4044_v13 = vld [vmem:[%s5830_s2] ss:$0 sm:$0xff] }
0x1ccd   :  { %3144 = vadd.xlane.f32.xlu0 %v3143_v12 }
0x1cce   :  { %v3133_v0 = vadd.f32 %v3121_v63, %v5384_v16  ;;  %v3152_v19 = vsel %vm199_vm0, %v3134_v4, 0.0 }
0x1cd0   :  { %v3149_v6 = vsel %vm199_vm0, %v3133_v0, 0.0 }
0x1cd1   :  { %3147 = vadd.xlane.f32.xlu0 %v3146_v5  ;;  %3150 = vadd.xlane.f32.xlu1 %v3149_v6  ;;  %v4045_v6 = vld [vmem:[%s5831_s7] ss:$0 sm:$0xff] }
0x1cd5   :  { %3153 = vadd.xlane.f32.xlu0 %v3152_v19 }
0x1d4e   :  { %v3142_v7 = vpop.xlane.xlu0 %3141 }
0x1d4f   :  { %v3156_v20 = vmul.f32 0.03125, %v3142_v7 }
0x1d50   :  { %v3139_v9 = vpop.xlane.xlu1 %3138 }
0x1d51   :  { %v5626_v54 = vsub.f32 %v3130_v39, %v3156_v20  ;;  %v3155_v23 = vmul.f32 0.03125, %v3139_v9 }
0x1d53   :  { %v5628_v10 = vsub.f32 %v3129_v48, %v3155_v23  ;;  %v3168_v16 = vmul.f32 %v5626_v54, %v5626_v54 }
0x1d55   :  { %v3176_v58 = vsel %vm199_vm0, %v3168_v16, 0.0  ;;  %v3167_v2 = vmul.f32 %v5628_v10, %v5628_v10 }
0x1d56   :  { %3177 = vadd.xlane.f32.xlu0 %v3176_v58  ;;  %v3145_v11 = vpop.xlane.xlu0 %3144 }
0x1d57   :  { %v3157_v60 = vmul.f32 0.03125, %v3145_v11  ;;  %v3173_v33 = vsel %vm199_vm0, %v3167_v2, 0.0 }
0x1d58   :  { %3174 = vadd.xlane.f32.xlu1 %v3173_v33 }
0x1d59   :  { %v5636_v14 = vsub.f32 %v3131_v59, %v3157_v60 }
0x1d5a   :  { %v3148_v44 = vpop.xlane.xlu0 %3147  ;;  %v3151_v8 = vpop.xlane.xlu1 %3150 }
0x1d5b   :  { %v3158_v3 = vmul.f32 0.03125, %v3148_v44  ;;  %v3159_v45 = vmul.f32 0.03125, %v3151_v8  ;;  %v3169_v18 = vmul.f32 %v5636_v14, %v5636_v14 }
0x1d5d   :  { %v5640_v31 = vsub.f32 %v3132_v62, %v3158_v3  ;;  %v5642_v15 = vsub.f32 %v3133_v0, %v3159_v45  ;;  %v3179_v55 = vsel %vm199_vm0, %v3169_v18, 0.0 }
0x1d5e   :  { %v3154_v49 = vpop.xlane.xlu0 %3153  ;;  %3180 = vadd.xlane.f32.xlu1 %v3179_v55  ;;  %v3370_v55 = vld [vmem:[%s5829_s1 + $0x8] sm:$0xff] }
0x1d5f   :  { %v3160_v24 = vmul.f32 0.03125, %v3154_v49  ;;  %v3170_v17 = vmul.f32 %v5640_v31, %v5640_v31  ;;  %v3171_v25 = vmul.f32 %v5642_v15, %v5642_v15  ;;  %v3369_v49 = vld [vmem:[%s5829_s1] sm:$0xff] }
0x1d61   :  { %v5649_v26 = vsub.f32 %v3134_v4, %v3160_v24  ;;  %v3182_v22 = vsel %vm199_vm0, %v3170_v17, 0.0  ;;  %v3185_v27 = vsel %vm199_vm0, %v3171_v25, 0.0  ;;  %v4046_v24 = vld [vmem:[%s5832_s10] ss:$0 sm:$0xff] }
0x1d62   :  { %3183 = vadd.xlane.f32.xlu0 %v3182_v22  ;;  %3186 = vadd.xlane.f32.xlu1 %v3185_v27 }
0x1d63   :  { %v3172_v1 = vmul.f32 %v5649_v26, %v5649_v26 }
0x1d65   :  { %v3188_v28 = vsel %vm199_vm0, %v3172_v1, 0.0 }
0x1d66   :  { %3189 = vadd.xlane.f32.xlu0 %v3188_v28 }
0x1ddf   :  { %v3178_v52 = vpop.xlane.xlu0 %3177 }
0x1de0   :  { %v3192_v43 = vmul.f32 0.03125, %v3178_v52 }
0x1de1   :  { %v3175_v36 = vpop.xlane.xlu1 %3174 }
0x1de2   :  { %v3198_v37 = vadd.f32 1e-05, %v3192_v43  ;;  %v3191_v42 = vmul.f32 0.03125, %v3175_v36 }
0x1de4   :  { %4785 = vrsqrt.f32 %v3198_v37  ;;  %v3197_v39 = vadd.f32 1e-05, %v3191_v42 }
0x1de6   :  { %4787 = vrsqrt.f32 %v3197_v39 }
0x1de7   :  { %v3181_v40 = vpop.xlane.xlu1 %3180 }
0x1de8   :  { %v3193_v48 = vmul.f32 0.03125, %v3181_v40 }
0x1dea   :  { %v3199_v50 = vadd.f32 1e-05, %v3193_v48  ;;  %v4053_v48 = vld [vmem:[%s5833_s11] ss:$0 sm:$0xff] }
0x1deb   :  { %v3184_v47 = vpop.xlane.xlu0 %3183  ;;  %v3187_v51 = vpop.xlane.xlu1 %3186 }
0x1dec   :  { %4789 = vrsqrt.f32 %v3199_v50  ;;  %v3194_v46 = vmul.f32 0.03125, %v3184_v47  ;;  %v3195_v53 = vmul.f32 0.03125, %v3187_v51 }
0x1dee   :  { %v3200_v56 = vadd.f32 1e-05, %v3194_v46  ;;  %v3201_v57 = vadd.f32 1e-05, %v3195_v53 }
0x1def   :  { %v3190_v59 = vpop.xlane.xlu0 %3189 }
0x1df0   :  { %4791 = vrsqrt.f32 %v3200_v56  ;;  %v3196_v61 = vmul.f32 0.03125, %v3190_v59 }
0x1df1   :  { %v4786_v62 = vpop.eup %4785  ;;  %4793 = vrsqrt.f32 %v3201_v57 }
0x1df2   :  { %v3210_v63 = vmul.f32 %v4786_v62, %v5626_v54  ;;  %v3202_v12 = vadd.f32 1e-05, %v3196_v61 }
0x1df3   :  { %v4788_v0 = vpop.eup %4787 }
0x1df4   :  { %4795 = vrsqrt.f32 %v3202_v12  ;;  %v3209_v4 = vmul.f32 %v4788_v0, %v5628_v10  ;;  %v3222_v5 = vmul.f32 %v4044_v13, %v3210_v63 }
0x1df6   :  { %v3221_v19 = vmul.f32 %v4044_v13, %v3209_v4  ;;  %v5670_v9 = vadd.f32 %v4045_v6, %v3222_v5 }
0x1df8   :  { %v5668_v7 = vadd.f32 %v4045_v6, %v3221_v19 }
0x1df9   :  { %v4790_v20 = vpop.eup %4789 }
0x1dfa   :  { %4550 = vmatprep.mubr.msk.f32.mxu0 %vm199_vm0, %v5668_v7  ;;  %v3211_v23 = vmul.f32 %v4790_v20, %v5636_v14 }
0x1dfb   :  { %4551 = vmatmul.mubr.msk.f32.vlgmr.msra.gmra.mxu0 %vm199_vm0, %v5670_v9 }
0x1dfc   :  { %v3223_v54 = vmul.f32 %v4044_v13, %v3211_v23 }
0x1dfd   :  { %v4792_v16 = vpop.eup %4791 }
0x1dfe   :  { %v4794_v58 = vpop.eup %4793  ;;  %v5677_v10 = vadd.f32 %v4045_v6, %v3223_v54  ;;  %v3212_v2 = vmul.f32 %v4792_v16, %v5640_v31  ;;  %v3372_v31 = vld [vmem:[%s5829_s1 + $0x18] sm:$0xff] }
0x1dff   :  { %v3213_v11 = vmul.f32 %v4794_v58, %v5642_v15  ;;  %4567 = vmatprep.subr.mxu1 %v3372_v31  ;;  %v3371_v15 = vld [vmem:[%s5829_s1 + $0x10] sm:$0xff] }
0x1e00   :  { %4553 = vmatprep.mubr.msk.f32.mxu0 %vm199_vm0, %v5677_v10  ;;  %v3224_v60 = vmul.f32 %v4044_v13, %v3212_v2  ;;  %4568 = vmatpush3.msra.mxu1 %v3372_v31 }
0x1e01   :  { %v4796_v33 = vpop.eup %4795  ;;  %v3225_v14 = vmul.f32 %v4044_v13, %v3213_v11  ;;  %4569 = vmatprep.subr.mxu1 %v3371_v15 }
0x1e02   :  { %v3236_v44 = vadd.f32 %v4045_v6, %v3224_v60  ;;  %v3214_v8 = vmul.f32 %v4796_v33, %v5649_v26  ;;  %4570 = vmatpush3.msra.mxu1 %v3371_v15 }
0x1e03   :  { %v3237_v3 = vadd.f32 %v4045_v6, %v3225_v14  ;;  %4571 = vmatprep.subr.mxu1 %v3370_v55 }
0x1e04   :  { %4554 = vmatmul.mubr.msk.f32.gmra.mxu0 %vm199_vm0, %v3236_v44  ;;  %v3226_v45 = vmul.f32 %v4044_v13, %v3214_v8  ;;  %4572 = vmatpush3.msra.mxu1 %v3370_v55 }
0x1e05   :  { %4556 = vmatprep.mubr.msk.f32.mxu0 %vm199_vm0, %v3237_v3  ;;  %4573 = vmatprep.subr.mxu1 %v3369_v49 }
0x1e06   :  { %v3238_v18 = vadd.f32 %v4045_v6, %v3226_v45  ;;  %4574 = vmatpush3.msra.mxu1 %v3369_v49 }
0x1e08   :  { %4557 = vmatmul.mubr.msk.f32.gmra.mxu0 %vm199_vm0, %v3238_v18 }
0x1ebb   :  { %v4552_v17 = vpop.f32.mrf.mxu0 }
0x1ebc   :  { %v3340_v25 = vadd.f32 %v4552_v17, %v4046_v24 }
0x1ebd   :  { %v3334_v26 = vpop.f32.mrf.mxu0 }
0x1ebe   :  { %v3335_v22 = vadd.f32 %v4046_v24, %v3334_v26  ;;  %v3364_v1 = vmax.f32 %v3340_v25, 0.0 }
0x1ec0   :  { %v3363_v27 = vmax.f32 %v3335_v22, 0.0 }
0x1ec2   :  { %4575 = vmatprep.mubr.msk.f32.mxu1 %vm1015_vm4, %v3363_v27 }
0x1ec3   :  { %4576 = vmatmul.mubr.msk.f32.vlgmr.msra.gmra.mxu1 %vm1015_vm4, %v3364_v1 }
0x1ec4   :  { %v4555_v28 = vpop.f32.mrf.mxu0 }
0x1ec5   :  { %v3350_v29 = vadd.f32 %v4555_v28, %v4046_v24 }
0x1ec6   :  { %v3344_v21 = vpop.f32.mrf.mxu0 }
0x1ec7   :  { %v3345_v30 = vadd.f32 %v4046_v24, %v3344_v21  ;;  %v3366_v35 = vmax.f32 %v3350_v29, 0.0 }
0x1ec8   :  { %v4558_v32 = vpop.f32.mrf.mxu0 }
0x1ec9   :  { %v3365_v34 = vmax.f32 %v3345_v30, 0.0  ;;  %v3360_v38 = vadd.f32 %v4558_v32, %v4046_v24  ;;  %v4878_v30 = vmov 0.0  }
0x1eca   :  { %v3354_v41 = vpop.f32.mrf.mxu0  ;;  %4584 = vmatprep.subr.mxu0 %v4878_v30  ;;  %4610 = vmatprep.subr.mxu1 %v4878_v30 }
0x1ecb   :  { %v3355_v52 = vadd.f32 %v4046_v24, %v3354_v41  ;;  %4578 = vmatprep.mubr.msk.f32.mxu1 %vm1015_vm4, %v3365_v34  ;;  %v3368_v36 = vmax.f32 %v3360_v38, 0.0  ;;  %4596 = vmatprep.mubr.msk.f32.mxu0 %vm4879_vm12, %v4878_v30 }
0x1ecc   :  { %4579 = vmatmul.mubr.msk.f32.gmra.mxu1 %vm1015_vm4, %v3366_v35 }
0x1ecd   :  { %v3367_v43 = vmax.f32 %v3355_v52, 0.0 }
0x1ecf   :  { %4581 = vmatprep.mubr.msk.f32.mxu1 %vm1015_vm4, %v3367_v43 }
0x1ed0   :  { %4582 = vmatmul.mubr.msk.f32.gmra.mxu1 %vm1015_vm4, %v3368_v36 }
0x1ed1   :  { %4618 = vmatprep.mubr.msk.f32.mxu1 %vm4879_vm12, %v4878_v30 }
0x1f83   :  { %v4577_v37 = vpop.f32.mrf.mxu1 }
0x1f84   :  { %v3474_v59 = vadd.f32 %v4577_v37, %v4053_v48 }
0x1f85   :  { %v3468_v42 = vpop.f32.mrf.mxu1 }
0x1f86   :  { %v3469_v63 = vadd.f32 %v4053_v48, %v3468_v42  ;;  %v3498_v4 = vadd.f32 %v3474_v59, %v5670_v9 }
0x1f88   :  { %v3497_v6 = vadd.f32 %v3469_v63, %v5668_v7  ;;  %v3508_v20 = vsel %vm199_vm0, %v3498_v4, 0.0 }
0x1f8a   :  { %v3505_v23 = vsel %vm199_vm0, %v3497_v6, 0.0 }
0x1f8c   :  { %v4580_v39 = vpop.f32.mrf.mxu1 }
0x1f8d   :  { %v3484_v47 = vadd.f32 %v4580_v39, %v4053_v48 }
0x1f8e   :  { %v3478_v40 = vpop.f32.mrf.mxu1 }
0x1f8f   :  { %v3479_v53 = vadd.f32 %v4053_v48, %v3478_v40  ;;  %v3500_v61 = vadd.f32 %v3484_v47, %v3236_v44 }
0x1f90   :  { %v4583_v50 = vpop.f32.mrf.mxu1 }
0x1f91   :  { %v3494_v51 = vadd.f32 %v4583_v50, %v4053_v48  ;;  %v3499_v12 = vadd.f32 %v3479_v53, %v5677_v10  ;;  %v3514_v5 = vsel %vm199_vm0, %v3500_v61, 0.0 }
0x1f92   :  { %v3488_v46 = vpop.f32.mrf.mxu1 }
0x1f93   :  { %v3502_v56 = vadd.f32 %v3494_v51, %v3238_v18  ;;  %v3489_v57 = vadd.f32 %v4053_v48, %v3488_v46  ;;  %v3511_v19 = vsel %vm199_vm0, %v3499_v12, 0.0 }
0x1f95   :  { %v3501_v62 = vadd.f32 %v3489_v57, %v3237_v3  ;;  %v3520_v13 = vsel %vm199_vm0, %v3502_v56, 0.0  ;;  %v4060_v57 = vld [vmem:[%s5834_s15] ss:$0 sm:$0xff] }
0x1f96   :  { %3521 = vadd.xlane.f32.xlu1 %v3520_v13 }
0x1f97   :  { %v3517_v0 = vsel %vm199_vm0, %v3501_v62, 0.0 }
0x1f98   :  { %3518 = vadd.xlane.f32.xlu0 %v3517_v0 }
0x1f9a   :  { %3515 = vadd.xlane.f32.xlu1 %v3514_v5 }
0x1f9c   :  { %3512 = vadd.xlane.f32.xlu0 %v3511_v19 }
0x1f9e   :  { %3509 = vadd.xlane.f32.xlu1 %v3508_v20 }
0x1fa0   :  { %3506 = vadd.xlane.f32.xlu0 %v3505_v23 }
0x201f   :  { %v3522_v54 = vpop.xlane.xlu1 %3521 }
0x2020   :  { %v3528_v16 = vmul.f32 0.03125, %v3522_v54 }
0x2021   :  { %v3519_v58 = vpop.xlane.xlu0 %3518 }
0x2022   :  { %v5708_v10 = vsub.f32 %v3502_v56, %v3528_v16  ;;  %v3527_v9 = vmul.f32 0.03125, %v3519_v58 }
0x2023   :  { %v3516_v2 = vpop.xlane.xlu1 %3515 }
0x2024   :  { %v5710_v11 = vsub.f32 %v3501_v62, %v3527_v9  ;;  %v3526_v60 = vmul.f32 0.03125, %v3516_v2  ;;  %v3540_v7 = vmul.f32 %v5708_v10, %v5708_v10  ;;  %v4061_v62 = vld [vmem:[%s5835_s16] ss:$0 sm:$0xff] }
0x2025   :  { %v3513_v33 = vpop.xlane.xlu0 %3512 }
0x2026   :  { %v5714_v14 = vsub.f32 %v3500_v61, %v3526_v60  ;;  %v3525_v44 = vmul.f32 0.03125, %v3513_v33  ;;  %v3556_v8 = vsel %vm199_vm0, %v3540_v7, 0.0  ;;  %v3539_v3 = vmul.f32 %v5710_v11, %v5710_v11 }
0x2027   :  { %3557 = vadd.xlane.f32.xlu1 %v3556_v8  ;;  %v3510_v45 = vpop.xlane.xlu1 %3509  ;;  %v3684_v8 = vld [vmem:[%s5837_s0 + $0x18] sm:$0xff] }
0x2028   :  { %v5719_v18 = vsub.f32 %v3499_v12, %v3525_v44  ;;  %v3524_v31 = vmul.f32 0.03125, %v3510_v45  ;;  %v3553_v15 = vsel %vm199_vm0, %v3539_v3, 0.0  ;;  %v3538_v55 = vmul.f32 %v5714_v14, %v5714_v14  ;;  %v3607_v44 = vld [vmem:[%s5836_s18] sm:$0x3]  ;;  %v3683_v3 = vld [vmem:[%s5837_s0 + $0x10] sm:$0xff]  ;;  %v3682_v45 = vld [vmem:[%s5837_s0 + $0x8] sm:$0xff] }
0x2029   :  { %3554 = vadd.xlane.f32.xlu0 %v3553_v15  ;;  %v3507_v49 = vpop.xlane.xlu0 %3506  ;;  %v3768_v15 = vld [vmem:[%s5074_s25 + $0x10] sm:$0xff] }
0x202a   :  { %v5724_v24 = vsub.f32 %v3498_v4, %v3524_v31  ;;  %v3523_v17 = vmul.f32 0.03125, %v3507_v49  ;;  %v3550_v25 = vsel %vm199_vm0, %v3538_v55, 0.0  ;;  %v3537_v26 = vmul.f32 %v5719_v18, %v5719_v18  ;;  %v3769_v31 = vld [vmem:[%s5074_s25 + $0x18] sm:$0xff] }
0x202b   :  { %3551 = vadd.xlane.f32.xlu1 %v3550_v25  ;;  %4611 = vmatpush3.msra.mxu1 %v3769_v31  ;;  %v4063_v25 = vld [vmem:[%s5069_s29] ss:$0 sm:$0xff] }
0x202c   :  { %v5729_v22 = vsub.f32 %v3497_v6, %v3523_v17  ;;  %v3547_v27 = vsel %vm199_vm0, %v3537_v26, 0.0  ;;  %v3536_v1 = vmul.f32 %v5724_v24, %v5724_v24  ;;  %4612 = vmatprep.subr.mxu1 %v4878_v30  ;;  %v3766_v17 = vld [vmem:[%s5074_s25] sm:$0xff] }
0x202d   :  { %3548 = vadd.xlane.f32.xlu0 %v3547_v27  ;;  %4613 = vmatpush3.msra.mxu1 %v3768_v15 }
0x202e   :  { %v3544_v28 = vsel %vm199_vm0, %v3536_v1, 0.0  ;;  %v3535_v29 = vmul.f32 %v5729_v22, %v5729_v22  ;;  %4614 = vmatprep.subr.mxu1 %v4878_v30 }
0x202f   :  { %3545 = vadd.xlane.f32.xlu1 %v3544_v28  ;;  %v4065_v28 = vld [vmem:[%s5079_s9] ss:$0 sm:$0xff] }
0x2030   :  { %v3541_v21 = vsel %vm199_vm0, %v3535_v29, 0.0 }
0x2031   :  { %3542 = vadd.xlane.f32.xlu0 %v3541_v21 }
0x20b0   :  { %v3558_v32 = vpop.xlane.xlu1 %3557 }
0x20b1   :  { %v3564_v34 = vmul.f32 0.03125, %v3558_v32 }
0x20b2   :  { %v3555_v35 = vpop.xlane.xlu0 %3554 }
0x20b3   :  { %v3570_v38 = vadd.f32 1e-05, %v3564_v34  ;;  %v3563_v41 = vmul.f32 0.03125, %v3555_v35 }
0x20b4   :  { %v3552_v52 = vpop.xlane.xlu1 %3551 }
0x20b5   :  { %4797 = vrsqrt.f32 %v3570_v38  ;;  %v3569_v43 = vadd.f32 1e-05, %v3563_v41  ;;  %v3562_v36 = vmul.f32 0.03125, %v3552_v52 }
0x20b6   :  { %v3549_v37 = vpop.xlane.xlu0 %3548 }
0x20b7   :  { %4799 = vrsqrt.f32 %v3569_v43  ;;  %v3568_v42 = vadd.f32 1e-05, %v3562_v36  ;;  %v3561_v39 = vmul.f32 0.03125, %v3549_v37 }
0x20b8   :  { %v3546_v40 = vpop.xlane.xlu1 %3545 }
0x20b9   :  { %4801 = vrsqrt.f32 %v3568_v42  ;;  %v3567_v48 = vadd.f32 1e-05, %v3561_v39  ;;  %v3560_v50 = vmul.f32 0.03125, %v3546_v40 }
0x20ba   :  { %v3543_v47 = vpop.xlane.xlu0 %3542 }
0x20bb   :  { %4803 = vrsqrt.f32 %v3567_v48  ;;  %v3566_v51 = vadd.f32 1e-05, %v3560_v50  ;;  %v3559_v46 = vmul.f32 0.03125, %v3543_v47 }
0x20bd   :  { %4805 = vrsqrt.f32 %v3566_v51  ;;  %v3565_v53 = vadd.f32 1e-05, %v3559_v46 }
0x20bf   :  { %4807 = vrsqrt.f32 %v3565_v53 }
0x20c2   :  { %v4798_v56 = vpop.eup %4797 }
0x20c3   :  { %v3582_v59 = vmul.f32 %v4798_v56, %v5708_v10 }
0x20c4   :  { %v4800_v61 = vpop.eup %4799 }
0x20c5   :  { %v3594_v13 = vmul.f32 %v4060_v57, %v3582_v59  ;;  %v3581_v63 = vmul.f32 %v4800_v61, %v5710_v11 }
0x20c6   :  { %v4802_v12 = vpop.eup %4801 }
0x20c7   :  { %v3606_v0 = vadd.f32 %v4061_v62, %v3594_v13  ;;  %v3593_v4 = vmul.f32 %v4060_v57, %v3581_v63  ;;  %v3580_v5 = vmul.f32 %v4802_v12, %v5714_v14 }
0x20c8   :  { %v4804_v6 = vpop.eup %4803 }
0x20c9   :  { %4585 = vmatpush3.msra.mxu0 %v3606_v0  ;;  %v3605_v19 = vadd.f32 %v4061_v62, %v3593_v4  ;;  %v3592_v20 = vmul.f32 %v4060_v57, %v3580_v5  ;;  %v3579_v23 = vmul.f32 %v4804_v6, %v5719_v18  ;;  %v3681_v18 = vld [vmem:[%s5837_s0] sm:$0xff] }
0x20ca   :  { %v4806_v54 = vpop.eup %4805  ;;  %4586 = vmatprep.subr.mxu0 %v4878_v30 }
0x20cb   :  { %4587 = vmatpush3.msra.mxu0 %v3605_v19  ;;  %v3604_v16 = vadd.f32 %v4061_v62, %v3592_v20  ;;  %v3591_v58 = vmul.f32 %v4060_v57, %v3579_v23  ;;  %v3578_v10 = vmul.f32 %v4806_v54, %v5724_v24  ;;  %v3767_v24 = vld [vmem:[%s5074_s25 + $0x8] sm:$0xff]  ;;  %s4809_s25 = scalar_lea.vmem %s3859_s14, 32 }
0x20cc   :  { %v4808_v9 = vpop.eup %4807  ;;  %4588 = vmatprep.subr.mxu0 %v4878_v30  ;;  %4615 = vmatpush3.msra.mxu1 %v3767_v24  ;;  %p4810_p0 = scmp.ne.s32.totalorder %s3859_s14, %s4809_s25  ;;  %p4815_p2 = scmp.lt.s32.totalorder %s4809_s25, %s4809_s25 }
0x20cd   :  { %4589 = vmatpush3.msra.mxu0 %v3604_v16  ;;  %v3603_v2 = vadd.f32 %v4061_v62, %v3591_v58  ;;  %v3590_v11 = vmul.f32 %v4060_v57, %v3578_v10  ;;  %v3577_v60 = vmul.f32 %v4808_v9, %v5729_v22  ;;  %4616 = vmatprep.subr.mxu1 %v4878_v30 }
0x20ce   :  { %4590 = vmatprep.subr.mxu0 %v4878_v30  ;;  %4617 = vmatpush3.msra.mxu1 %v3766_v17  ;;  %p4816_p3 = por %p4815_p2, %p4814_p1 }
0x20cf   :  { %4591 = vmatpush3.msra.mxu0 %v3603_v2  ;;  %v3602_v7 = vadd.f32 %v4061_v62, %v3590_v11  ;;  %v3589_v33 = vmul.f32 %v4060_v57, %v3577_v60 }
0x20d0   :  { %4592 = vmatprep.subr.mxu0 %v4878_v30  ;;  %p4817_p4 = pnand %p4816_p3, %p4810_p0 }
0x20d1   :  { %4593 = vmatpush3.msra.mxu0 %v3602_v7  ;;  %v3601_v14 = vadd.f32 %v4061_v62, %v3589_v33 }
0x20d2   :  { %4594 = vmatprep.subr.mxu0 %v4878_v30 }
0x20d3   :  { %4595 = vmatpush3.msra.mxu0 %v3601_v14 }
0x20d4   :  { %4597 = vmatmul.mubr.msk.f32.vlgmr.msra.gmra.mxu0 %vm2425_vm7, %v3607_v44  ;;  %4599 = vmatprep.subr.mxu0 %v4878_v30 }
0x20d5   :  { %4600 = vmatpush3.msra.mxu0 %v3684_v8  ;;  %4607 = vmatprep.mubr.msk.f32.mxu0 %vm4879_vm12, %v4878_v30 }
0x20d6   :  { %4601 = vmatprep.subr.mxu0 %v4878_v30 }
0x20d7   :  { %4602 = vmatpush3.msra.mxu0 %v3683_v3 }
0x20d8   :  { %4603 = vmatprep.subr.mxu0 %v4878_v30 }
0x20d9   :  { %4604 = vmatpush3.msra.mxu0 %v3682_v45 }
0x20da   :  { %4605 = vmatprep.subr.mxu0 %v4878_v30 }
0x20db   :  { %4606 = vmatpush3.msra.mxu0 %v3681_v18 }
0x2194   :  { %v3677_v55 = vpop.f32.mrf.mxu0 }
0x2195   :  { %4608 = vmatmul.mubr.msk.f32.vlgmr.msra.gmra.mxu0 %vm199_vm0, %v3677_v55 }
0x2196   :  { %v4598_v49 = vpop.f32.mrf.mxu0 }
0x2255   :  { %v3761_v26 = vpop.f32.mrf.mxu0 }
0x2256   :  { %v3762_v22 = vadd.f32 %v4063_v25, %v3761_v26 }
0x2257   :  { %v4609_v27 = vpop.f32.mrf.mxu0 }
0x2258   :  { %v3765_v1 = vmax.f32 %v3762_v22, 0.0 }
0x225a   :  { %4619 = vmatmul.mubr.msk.f32.vlgmr.msra.gmra.mxu1 %vm199_vm0, %v3765_v1 }
0x231a   :  { %v3846_v29 = vpop.f32.mrf.mxu1 }
0x231b   :  { %v3847_v21 = vadd.f32 %v4065_v28, %v3846_v29 }
0x231c   :  { %v4620_v32 = vpop.f32.mrf.mxu1 }
0x231d   :  { %3851 = vst.msk [vmem:[#allocation3] sm:$0x3] %vm3850_vm13, %v3847_v21 }
0x231e   :  { %4820 = shalt.err (!%p4817_p4)
}
0x231f   :  { %3861 = dma.vmem_to_hbm [thread:$0]  %s3859_s14, 32, %s5084_s8, [#allocation4]  }
0x2320   :  { %4829 = dma.done.wait [#allocation4], 32  }
0x2321   :  { %4830 = vsyncadd [#allocation4], 4294967264 }
0x2322   :  { %3865 = vsyncpa [#allocation4], 1 }

</bundles_post_ra>
